<compile_context>
chip_gen: v7x
topology: tpu7x:2x2x1
jax: 0.10.0
libtpu: 0.0.40
codegen_flags: <defaults>
</compile_context>

<pallas_src>
import functools

import jax
import jax.numpy as jnp
import numpy as np
from jax import lax
from jax.experimental import pallas as pl
from jax.experimental.pallas import tpu as pltpu

CIN = 12
COUT = 12
K = 4
STRIDE = 2
PHASES = 8                      # 2*2*2 output parities for stride 2
NROWS = PHASES * COUT           # 96 output rows (phase-major, channel-minor)
EPS = 0.129270716508965
# TODO(synk): the original module passes running_var=tensor([4 elems]) to BatchNorm3d(12);
# that kwarg is invalid in torch and has no effect on forward math -> ignored here.


def _convt_hs_kernel(xs_ref, w_ref, mask_ref, out_ref, stats_ref):
    """One column chunk of the fused phase-decomposed conv-transpose + hard-sigmoid.

    xs_ref    : (8*CIN, tn)          pre-shifted, tap-stacked input columns
    w_ref     : (NROWS, 8*CIN)       merged per-(phase,tap) weights
    mask_ref  : (1, tn)              1.0 at valid flattened output columns, else 0.0
    out_ref   : (NROWS, tn)          v4 = clamp(conv + 3, 0, 6) / 6
    stats_ref : (NROWS, 128)         col 0 = masked sum, col 1 = masked sum of squares
    """
    acc = jnp.dot(w_ref[...], xs_ref[...], preferred_element_type=jnp.float32)
    v4 = jnp.clip(acc + 3.0, 0.0, 6.0) * (1.0 / 6.0)
    out_ref[...] = v4
    v4m = v4 * mask_ref[...]
    stats_ref[:, 0:1] = jnp.sum(v4m, axis=1, keepdims=True)
    stats_ref[:, 1:2] = jnp.sum(v4m * v4m, axis=1, keepdims=True)


def _round_up(x, m):
    return ((x + m - 1) // m) * m


def model_forward(x_ncdhw, w_t, *, tn=2048):
    """x_ncdhw: (N, Cin, D, H, W) f32; w_t: (Cin, Cout, K, K, K) torch ConvTranspose3d weight."""
    N, cin, D, H, W = x_ncdhw.shape
    assert cin == CIN
    Do, Ho, Wo = [(s - 1) * STRIDE + K for s in (D, H, W)]
    Dp, Hp, Wp = D + 2, H + 2, W + 2          # one halo voxel on each side of the input
    sd = Hp * Wp                              # flat-index stride of the d axis
    sh = Wp                                   # flat-index stride of the h axis
    blk = Dp * sd                             # flattened per-batch block
    n_flat = N * blk

    n_cols_out = _round_up(n_flat, tn)        # lane extent of the kernel output
    n_chunks = n_cols_out // tn
    max_shift = sd + sh + 1

    # --- padded input, channels-first, flattened spatial on the lane axis ---
    xp = jnp.transpose(x_ncdhw, (1, 0, 2, 3, 4))                      # (Cin, N, D, H, W)
    xp = jnp.pad(xp, ((0, 0), (0, 0), (1, 1), (1, 1), (1, 1)))        # (Cin, N, Dp, Hp, Wp)
    xp = xp.reshape(CIN, n_flat)
    xp = jnp.pad(xp, ((0, 0), (0, n_cols_out + max_shift - n_flat)))

    # tap order t = a*4 + b*2 + c; tap (a,b,c) reads input shifted by shifts[t]
    shifts = tuple((1 - a) * sd + (1 - b) * sh + (1 - c)
                   for a in (0, 1) for b in (0, 1) for c in (0, 1))

    # pre-stacked shifted slab: row t*CIN + ci, column j  ==  xp[ci, j + shifts[t]]
    xs_stack = jnp.concatenate([xp[:, s:s + n_cols_out] for s in shifts],
                               axis=0)                                # (8*CIN, n_cols_out)

    # --- merged weights: row = (pd,ph,pw,co), col = (a,b,c,ci); kd = 2a + pd etc. ---
    w8 = w_t.reshape(CIN, COUT, 2, 2, 2, 2, 2, 2)                     # (ci,co,a,pd,b,ph,c,pw)
    w2 = jnp.transpose(w8, (3, 5, 7, 1, 2, 4, 6, 0)).reshape(NROWS, 8 * CIN)

    # --- validity mask over the flattened (padded) output columns ---
    col = np.arange(n_cols_out)
    nn = col // blk
    ii = col % blk
    qd = ii // sd
    qh = (ii % sd) // sh
    qw = ii % sh
    mask = ((nn < N) & (qd <= D) & (qh <= H) & (qw <= W)).astype(np.float32)
    mask = jnp.asarray(mask.reshape(1, n_cols_out))

    out_flat, stats = pl.pallas_call(
        _convt_hs_kernel,
        grid=(n_chunks,),
        in_specs=[
            pl.BlockSpec((NROWS, tn), lambda c: (0, c)),          # stacked input slab
            pl.BlockSpec((NROWS, 8 * CIN), lambda c: (0, 0)),     # merged weights
            pl.BlockSpec((1, tn), lambda c: (0, c)),              # validity mask
        ],
        out_specs=(
            pl.BlockSpec((NROWS, tn), lambda c: (0, c)),          # v4 (lane-dense)
            pl.BlockSpec((NROWS, 128), lambda c: (0, c)),         # per-chunk BN partials
        ),
        out_shape=(
            jax.ShapeDtypeStruct((NROWS, n_cols_out), jnp.float32),
            jax.ShapeDtypeStruct((NROWS, n_chunks * 128), jnp.float32),
        ),
        compiler_params=pltpu.CompilerParams(dimension_semantics=("parallel",)),
    )(xs_stack, w2, mask)

    # --- BatchNorm statistics (training mode, biased variance, gamma=1, beta=0) ---
    count = N * Do * Ho * Wo
    st = stats.reshape(NROWS, n_chunks, 128)
    s96 = jnp.sum(st[:, :, 0], axis=1)                                # (96,)
    q96 = jnp.sum(st[:, :, 1], axis=1)
    s12 = s96.reshape(PHASES, COUT).sum(axis=0)                       # (12,)
    q12 = q96.reshape(PHASES, COUT).sum(axis=0)
    mean = s12 / count
    var = q12 / count - mean * mean
    rstd = lax.rsqrt(var + EPS)
    scale = rstd.reshape(1, 1, 1, COUT, 1, 1, 1, 1)
    shift = (-mean * rstd).reshape(1, 1, 1, COUT, 1, 1, 1, 1)

    # --- affine + interleave the 8 parity phases back into NCDHW (fused by XLA) ---
    y = out_flat[:, :n_flat].reshape(2, 2, 2, COUT, N, Dp, Hp, Wp)    # (pd,ph,pw,co,n,qd,qh,qw)
    y = y * scale + shift
    y = y[..., :D + 1, :H + 1, :W + 1]
    y = jnp.transpose(y, (4, 3, 5, 0, 6, 1, 7, 2))                    # (n,co,qd,pd,qh,ph,qw,pw)
    return y.reshape(N, COUT, Do, Ho, Wo)


def reference_forward(x_ncdhw, w_t):
    """Pure-JAX reference matching torch semantics (training-mode BN, gamma=1, beta=0)."""
    w_conv = jnp.transpose(w_t, (1, 0, 2, 3, 4))[:, :, ::-1, ::-1, ::-1]
    y = lax.conv_general_dilated(
        x_ncdhw, w_conv, window_strides=(1, 1, 1),
        padding=[(K - 1, K - 1)] * 3, lhs_dilation=(STRIDE,) * 3,
        rhs_dilation=(1, 1, 1),
        dimension_numbers=("NCDHW", "OIDHW", "NCDHW"),
        precision=lax.Precision.HIGHEST)
    v1 = y + 3.0
    v4 = jnp.clip(v1, 0.0, 6.0) / 6.0
    mean = jnp.mean(v4, axis=(0, 2, 3, 4), keepdims=True)
    var = jnp.mean((v4 - mean) ** 2, axis=(0, 2, 3, 4), keepdims=True)
    return (v4 - mean) * lax.rsqrt(var + EPS)


if __name__ == "__main__":
    key = jax.random.PRNGKey(0)
    kx, kw = jax.random.split(key)

    # shapes consistent with the module: x1 = (1, 12, 16, 16, 16)
    N, D, H, W = 1, 16, 16, 16
    x1 = jax.random.normal(kx, (N, CIN, D, H, W), dtype=jnp.float32)
    # deterministic ConvTranspose3d weight (Cin, Cout, K, K, K), bias=False
    w_t = (jax.random.normal(kw, (CIN, COUT, K, K, K), dtype=jnp.float32)
           * (1.0 / (CIN * K * K * K) ** 0.5))

    fwd = jax.jit(functools.partial(model_forward, tn=2048))
    out = jax.block_until_ready(fwd(x1, w_t))
    assert out.shape == (N, COUT, (D - 1) * STRIDE + K,
                         (H - 1) * STRIDE + K, (W - 1) * STRIDE + K)
    ref = reference_forward(x1, w_t)
    np.testing.assert_allclose(np.asarray(out), np.asarray(ref), rtol=5e-3, atol=5e-3)

    # extra check: batch > 1 and multiple column chunks (review concern)
    x2 = jax.random.normal(jax.random.PRNGKey(1), (2, CIN, 8, 8, 8), dtype=jnp.float32)
    fwd2 = jax.jit(functools.partial(model_forward, tn=1024))
    out2 = jax.block_until_ready(fwd2(x2, w_t))
    ref2 = reference_forward(x2, w_t)
    np.testing.assert_allclose(np.asarray(out2), np.asarray(ref2), rtol=5e-3, atol=5e-3)

    print("KERNEL_OK")
</pallas_src>

<mosaic_0001>
module attributes {stable_mosaic.version = 11 : i64} {
  func.func @_convt_hs_kernel(%arg0: i32, %arg1: memref<96x2048xf32, #tpu.memory_space<vmem>>, %arg2: memref<96x96xf32, #tpu.memory_space<vmem>>, %arg3: memref<1x2048xf32, #tpu.memory_space<vmem>>, %arg4: memref<96x2048xf32, #tpu.memory_space<vmem>>, %arg5: memref<96x128xf32, #tpu.memory_space<vmem>>) attributes {dimension_semantics = [#tpu.dimension_semantics<parallel>], iteration_bounds = array<i64: 3>, scalar_prefetch = 0 : i64, scratch_operands = 0 : i64, tpu.core_type = #tpu.core_type<tc>, window_params = [{transform_indices = @transform_0, window_bounds = array<i64: 96, 2048>}, {pipeline_mode = #tpu.pipeline_mode<synchronous>, transform_indices = @transform_1, window_bounds = array<i64: 96, 96>}, {transform_indices = @transform_2, window_bounds = array<i64: 1, 2048>}, {transform_indices = @transform_3, window_bounds = array<i64: 96, 2048>}, {transform_indices = @transform_4, window_bounds = array<i64: 96, 128>}]} {
    %c0 = arith.constant 0 : index
    %c0_0 = arith.constant 0 : index
    %0 = vector.load %arg2[%c0, %c0_0] : memref<96x96xf32, #tpu.memory_space<vmem>>, vector<96x96xf32>
    %c0_1 = arith.constant 0 : index
    %c0_2 = arith.constant 0 : index
    %1 = vector.load %arg1[%c0_1, %c0_2] : memref<96x2048xf32, #tpu.memory_space<vmem>>, vector<96x2048xf32>
    %cst = arith.constant dense<0.000000e+00> : vector<96x2048xf32>
    %2 = tpu.matmul %0, %1, %cst {dimension_numbers = #tpu.dot_dimension_numbers<[1], [0], [0], [1], [0, 0, 1, 1], [], []>} : vector<96x96xf32>, vector<96x2048xf32>, vector<96x2048xf32> -> vector<96x2048xf32>
    %cst_3 = arith.constant 3.000000e+00 : f32
    %3 = vector.broadcast %cst_3 : f32 to vector<96x2048xf32>
    %4 = arith.addf %2, %3 : vector<96x2048xf32>
    %cst_4 = arith.constant 0.000000e+00 : f32
    %cst_5 = arith.constant 6.000000e+00 : f32
    %5 = vector.broadcast %cst_4 : f32 to vector<96x2048xf32>
    %6 = arith.maximumf %5, %4 : vector<96x2048xf32>
    %7 = vector.broadcast %cst_5 : f32 to vector<96x2048xf32>
    %8 = arith.minimumf %7, %6 : vector<96x2048xf32>
    %cst_6 = arith.constant 0.166666672 : f32
    %9 = vector.broadcast %cst_6 : f32 to vector<96x2048xf32>
    %10 = arith.mulf %8, %9 : vector<96x2048xf32>
    %c0_7 = arith.constant 0 : index
    %c0_8 = arith.constant 0 : index
    %11 = vector.load %arg4[%c0_7, %c0_8] : memref<96x2048xf32, #tpu.memory_space<vmem>>, vector<96x2048xf32>
    tpu.vector_store %arg4[%c0_7, %c0_8], %10 {strides = array<i32>} : memref<96x2048xf32, #tpu.memory_space<vmem>>, vector<96x2048xf32>,
    %c0_9 = arith.constant 0 : index
    %c0_10 = arith.constant 0 : index
    %12 = vector.load %arg3[%c0_9, %c0_10] : memref<1x2048xf32, #tpu.memory_space<vmem>>, vector<1x2048xf32>
    %13 = vector.broadcast %12 : vector<1x2048xf32> to vector<96x2048xf32>
    %14 = arith.mulf %10, %13 : vector<96x2048xf32>
    %cst_11 = arith.constant dense<0.000000e+00> : vector<96xf32>
    %15 = vector.multi_reduction <add>, %14, %cst_11 [1] : vector<96x2048xf32> to vector<96xf32>
    %16 = vector.shape_cast %15 : vector<96xf32> to vector<96x1xf32>
    %c0_12 = arith.constant 0 : index
    %c0_13 = arith.constant 0 : index
    %17 = vector.load %arg5[%c0_12, %c0_13] : memref<96x128xf32, #tpu.memory_space<vmem>>, vector<96x1xf32>
    tpu.vector_store %arg5[%c0_12, %c0_13], %16 {strides = array<i32>} : memref<96x128xf32, #tpu.memory_space<vmem>>, vector<96x1xf32>,
    %18 = arith.mulf %14, %14 : vector<96x2048xf32>
    %cst_14 = arith.constant dense<0.000000e+00> : vector<96xf32>
    %19 = vector.multi_reduction <add>, %18, %cst_14 [1] : vector<96x2048xf32> to vector<96xf32>
    %20 = vector.shape_cast %19 : vector<96xf32> to vector<96x1xf32>
    %c0_15 = arith.constant 0 : index
    %c1 = arith.constant 1 : index
    %21 = vector.load %arg5[%c0_15, %c1] : memref<96x128xf32, #tpu.memory_space<vmem>>, vector<96x1xf32>
    tpu.vector_store %arg5[%c0_15, %c1], %20 {strides = array<i32>} : memref<96x128xf32, #tpu.memory_space<vmem>>, vector<96x1xf32>,
    return
  }
  func.func @transform_0(%arg0: i32) -> (i32, i32) {
    %c0_i32 = arith.constant 0 : i32
    %c0_i32_0 = arith.constant 0 : i32
    return %c0_i32, %arg0 : i32, i32
  }
  func.func @transform_1(%arg0: i32) -> (i32, i32) {
    %c0_i32 = arith.constant 0 : i32
    %c0_i32_0 = arith.constant 0 : i32
    %c0_i32_1 = arith.constant 0 : i32
    return %c0_i32, %c0_i32_0 : i32, i32
  }
  func.func @transform_2(%arg0: i32) -> (i32, i32) {
    %c0_i32 = arith.constant 0 : i32
    %c0_i32_0 = arith.constant 0 : i32
    return %c0_i32, %arg0 : i32, i32
  }
  func.func @transform_3(%arg0: i32) -> (i32, i32) {
    %c0_i32 = arith.constant 0 : i32
    %c0_i32_0 = arith.constant 0 : i32
    return %c0_i32, %arg0 : i32, i32
  }
  func.func @transform_4(%arg0: i32) -> (i32, i32) {
    %c0_i32 = arith.constant 0 : i32
    %c0_i32_0 = arith.constant 0 : i32
    return %c0_i32, %arg0 : i32, i32
  }
}

</mosaic_0001>

<bundles_post_ra>
// kernel: model_forward.1
= control target key start
LH: loop header
LB: loop body
LE: loop exit
PB: predicated region body
PF: predicated region fallthrough
CT: control target
= control target key end

     0   :  { %10 = vsyncpa [#allocation4], 0  ;;  %s7667_s0 = inlined_call_operand.vmem [shape: f32[96,6144], index: 0, kind: input, shape index: {}]   ;;  %s7668_s1 = inlined_call_operand.vmem [shape: f32[96,96], index: 1, kind: input, shape index: {}]   ;;  %s7669_s2 = inlined_call_operand.hbm [shape: f32[1,6144], index: 2, kind: input, shape index: {}]   ;;  %s7670_s3 = inlined_call_operand.vmem [shape: f32[96,6144], index: 3, kind: output, shape index: {0}]   ;;  %s7671_s4 = inlined_call_operand.vmem [shape: f32[96,384], index: 4, kind: output, shape index: {1}]  }
   0x1   :  { %12 = vsyncpa [#allocation4 + $0x1], 0  ;;  %s4687_s15 = smov 0   ;;  %s4689_s16 = smov 0  }
   0x2   :  { %s4691_s17 = smov 0   ;;  %s4693_s18 = smov 0  }
   0x3 LB: > { %s4706_s19 = sadd.s32 4294967295, %s4658_s18   ;;  %s4709_s20 = sadd.s32 1, %s4658_s18   ;;  %s4658_s18 = sphi %s4693_s18, %s7924_s18   ;;  %s4654_s17 = sphi %s4691_s17, %s7923_s17   ;;  %s4650_s16 = sphi %s4689_s16, %s7922_s16   ;;  %s4646_s15 = sphi %s4687_s15, %s7921_s15  }
   0x4   : > { %s22_s21 = ssub.s32 %s4658_s18, %s4709_s20  ;;  %s25_s22 = sadd.s32 1, %s4654_s17 }
   0x5   : > { %p23_p0 = scmp.eq.s32.totalorder %s22_s21, 0  ;;  %p32_p1 = scmp.ne.s32.totalorder %s4654_s17, %s4650_s16 }
   0x6   : > { %p33_p2 = scmp.eq.s32.totalorder %s4658_s18, 0  ;;  %p85_p3 = scmp.ne.s32.totalorder %s4650_s16, %s4646_s15 }
   0x7   : > { %s4719_s23 = scalar_select %p23_p0, %s4654_s17, %s25_s22  }
   0x8   : > { %p4721_p4 = por %p33_p2, %p32_p1  ;;  %p86_p5 = scmp.eq.s32.totalorder %s4706_s19, 0 }
   0x9   : > { %p109_p6 = scmp.eq.s32.totalorder %s4706_s19, 2  ;;  %p4253_p9 = scmp.ge.s32.totalorder %s4658_s18, 3 }
   0xa   : > { %p4727_p7 = por %p86_p5, %p85_p3 }
   0xb   : > { %p4731_p8 = por %p109_p6, %p32_p1  ;;  %160 = sbr.rel (%p4253_p9) target bundleno = 144 (0x90), region = 20 }
   0xc   : > { %s7684_s25 = scalar_select %p4727_p7, 1, 0 }
   0xd   : > { %s7685_s26 = scalar_select %p4731_p8, 1, 0 }
  0x12   : > { %163 = sbr.rel (!%p4721_p4) target bundleno = 119 (0x77), region = 24  ;;  %s165_s27 = sand.u32 (%p4721_p4), 1, %s4654_s17  }
  0x13   : > { %s4362_s28 = sshll.u32 (%p4721_p4), %s4658_s18, 7  ;;  %s4557_s29 = smul.u32 (%p4721_p4), 1536, %s165_s27 }
  0x14   : > { %s4743_s6 = scalar_lea.vmem (%p4721_p4), %s7667_s0, %s4362_s28 }
  0x15   : > { %v183_v0 = vld [vmem:[%s4743_s6] sm:$0xff] (%p4721_p4)  ;;  %v185_v1 = vld [vmem:[%s4743_s6 + $0x8] sm:$0xff] (%p4721_p4)  ;;  %v187_v2 = vld [vmem:[%s4743_s6 + $0x10] sm:$0xff] (%p4721_p4)  ;;  %s4751_s7 = scalar_lea.vmem (%p4721_p4), [#allocation2], %s4557_s29 }
  0x16   : > { %v189_v3 = vld [vmem:[%s4743_s6 + $0x18] sm:$0xff] (%p4721_p4)  ;;  %v191_v4 = vld [vmem:[%s4743_s6 + $0x20] sm:$0xff] (%p4721_p4)  ;;  %v193_v5 = vld [vmem:[%s4743_s6 + $0x28] sm:$0xff] (%p4721_p4)  ;;  %184 = vst [vmem:[%s4751_s7] sm:$0xff] (%p4721_p4), %v183_v0 }
  0x17   : > { %186 = vst [vmem:[%s4751_s7 + $0x8] sm:$0xff] (%p4721_p4), %v185_v1  ;;  %188 = vst [vmem:[%s4751_s7 + $0x10] sm:$0xff] (%p4721_p4), %v187_v2  ;;  %v195_v6 = vld [vmem:[%s4743_s6 + $0x30] sm:$0xff] (%p4721_p4)  ;;  %v197_v7 = vld [vmem:[%s4743_s6 + $0x38] sm:$0xff] (%p4721_p4) }
  0x18   : > { %190 = vst [vmem:[%s4751_s7 + $0x18] sm:$0xff] (%p4721_p4), %v189_v3  ;;  %192 = vst [vmem:[%s4751_s7 + $0x20] sm:$0xff] (%p4721_p4), %v191_v4  ;;  %v199_v8 = vld [vmem:[%s4743_s6 + $0x40] sm:$0xff] (%p4721_p4)  ;;  %v201_v9 = vld [vmem:[%s4743_s6 + $0x48] sm:$0xff] (%p4721_p4) }
  0x19   : > { %194 = vst [vmem:[%s4751_s7 + $0x28] sm:$0xff] %v193_v5  ;;  %196 = vst [vmem:[%s4751_s7 + $0x30] sm:$0xff] %v195_v6  ;;  %v203_v10 = vld [vmem:[%s4743_s6 + $0x50] sm:$0xff]  ;;  %v205_v11 = vld [vmem:[%s4743_s6 + $0x58] sm:$0xff] }
  0x1a   : > { %198 = vst [vmem:[%s4751_s7 + $0x38] sm:$0xff] %v197_v7  ;;  %200 = vst [vmem:[%s4751_s7 + $0x40] sm:$0xff] %v199_v8  ;;  %v207_v12 = vld [vmem:[%s4743_s6 + $0x60] sm:$0xff]  ;;  %v209_v13 = vld [vmem:[%s4743_s6 + $0x68] sm:$0xff] }
  0x1b   : > { %202 = vst [vmem:[%s4751_s7 + $0x48] sm:$0xff] %v201_v9  ;;  %204 = vst [vmem:[%s4751_s7 + $0x50] sm:$0xff] %v203_v10  ;;  %v211_v14 = vld [vmem:[%s4743_s6 + $0x70] sm:$0xff]  ;;  %v213_v15 = vld [vmem:[%s4743_s6 + $0x78] sm:$0xff] }
  0x1c   : > { %206 = vst [vmem:[%s4751_s7 + $0x58] sm:$0xff] %v205_v11  ;;  %208 = vst [vmem:[%s4751_s7 + $0x60] sm:$0xff] %v207_v12  ;;  %v215_v16 = vld [vmem:[%s4743_s6 + $0x180] sm:$0xff]  ;;  %v217_v17 = vld [vmem:[%s4743_s6 + $0x188] sm:$0xff] }
  0x1d   : > { %210 = vst [vmem:[%s4751_s7 + $0x68] sm:$0xff] %v209_v13  ;;  %212 = vst [vmem:[%s4751_s7 + $0x70] sm:$0xff] %v211_v14  ;;  %v219_v18 = vld [vmem:[%s4743_s6 + $0x190] sm:$0xff]  ;;  %v221_v19 = vld [vmem:[%s4743_s6 + $0x198] sm:$0xff] }
  0x1e   : > { %214 = vst [vmem:[%s4751_s7 + $0x78] sm:$0xff] %v213_v15  ;;  %216 = vst [vmem:[%s4751_s7 + $0x80] sm:$0xff] %v215_v16  ;;  %v223_v20 = vld [vmem:[%s4743_s6 + $0x1a0] sm:$0xff]  ;;  %v225_v21 = vld [vmem:[%s4743_s6 + $0x1a8] sm:$0xff] }
  0x1f   : > { %218 = vst [vmem:[%s4751_s7 + $0x88] sm:$0xff] %v217_v17  ;;  %220 = vst [vmem:[%s4751_s7 + $0x90] sm:$0xff] %v219_v18  ;;  %v227_v22 = vld [vmem:[%s4743_s6 + $0x1b0] sm:$0xff]  ;;  %v229_v23 = vld [vmem:[%s4743_s6 + $0x1b8] sm:$0xff] }
  0x20   : > { %222 = vst [vmem:[%s4751_s7 + $0x98] sm:$0xff] %v221_v19  ;;  %224 = vst [vmem:[%s4751_s7 + $0xa0] sm:$0xff] %v223_v20  ;;  %v231_v24 = vld [vmem:[%s4743_s6 + $0x1c0] sm:$0xff]  ;;  %v233_v25 = vld [vmem:[%s4743_s6 + $0x1c8] sm:$0xff] }
  0x21   : > { %226 = vst [vmem:[%s4751_s7 + $0xa8] sm:$0xff] %v225_v21  ;;  %228 = vst [vmem:[%s4751_s7 + $0xb0] sm:$0xff] %v227_v22  ;;  %v235_v26 = vld [vmem:[%s4743_s6 + $0x1d0] sm:$0xff]  ;;  %v237_v27 = vld [vmem:[%s4743_s6 + $0x1d8] sm:$0xff] }
  0x22   : > { %230 = vst [vmem:[%s4751_s7 + $0xb8] sm:$0xff] %v229_v23  ;;  %232 = vst [vmem:[%s4751_s7 + $0xc0] sm:$0xff] %v231_v24  ;;  %v239_v28 = vld [vmem:[%s4743_s6 + $0x1e0] sm:$0xff]  ;;  %v241_v29 = vld [vmem:[%s4743_s6 + $0x1e8] sm:$0xff] }
  0x23   : > { %234 = vst [vmem:[%s4751_s7 + $0xc8] sm:$0xff] %v233_v25  ;;  %236 = vst [vmem:[%s4751_s7 + $0xd0] sm:$0xff] %v235_v26  ;;  %v243_v30 = vld [vmem:[%s4743_s6 + $0x1f0] sm:$0xff]  ;;  %v245_v31 = vld [vmem:[%s4743_s6 + $0x1f8] sm:$0xff] }
  0x24   : > { %238 = vst [vmem:[%s4751_s7 + $0xd8] sm:$0xff] %v237_v27  ;;  %240 = vst [vmem:[%s4751_s7 + $0xe0] sm:$0xff] %v239_v28  ;;  %v247_v32 = vld [vmem:[%s4743_s6 + $0x300] sm:$0xff]  ;;  %v249_v33 = vld [vmem:[%s4743_s6 + $0x308] sm:$0xff] }
  0x25   : > { %242 = vst [vmem:[%s4751_s7 + $0xe8] sm:$0xff] %v241_v29  ;;  %244 = vst [vmem:[%s4751_s7 + $0xf0] sm:$0xff] %v243_v30  ;;  %v251_v34 = vld [vmem:[%s4743_s6 + $0x310] sm:$0xff]  ;;  %v253_v35 = vld [vmem:[%s4743_s6 + $0x318] sm:$0xff] }
  0x26   : > { %246 = vst [vmem:[%s4751_s7 + $0xf8] sm:$0xff] %v245_v31  ;;  %248 = vst [vmem:[%s4751_s7 + $0x100] sm:$0xff] %v247_v32  ;;  %v255_v36 = vld [vmem:[%s4743_s6 + $0x320] sm:$0xff]  ;;  %v257_v37 = vld [vmem:[%s4743_s6 + $0x328] sm:$0xff] }
  0x27   : > { %250 = vst [vmem:[%s4751_s7 + $0x108] sm:$0xff] %v249_v33  ;;  %252 = vst [vmem:[%s4751_s7 + $0x110] sm:$0xff] %v251_v34  ;;  %v259_v38 = vld [vmem:[%s4743_s6 + $0x330] sm:$0xff]  ;;  %v261_v39 = vld [vmem:[%s4743_s6 + $0x338] sm:$0xff] }
  0x28   : > { %254 = vst [vmem:[%s4751_s7 + $0x118] sm:$0xff] %v253_v35  ;;  %256 = vst [vmem:[%s4751_s7 + $0x120] sm:$0xff] %v255_v36  ;;  %v263_v40 = vld [vmem:[%s4743_s6 + $0x340] sm:$0xff]  ;;  %v265_v41 = vld [vmem:[%s4743_s6 + $0x348] sm:$0xff] }
  0x29   : > { %258 = vst [vmem:[%s4751_s7 + $0x128] sm:$0xff] %v257_v37  ;;  %260 = vst [vmem:[%s4751_s7 + $0x130] sm:$0xff] %v259_v38  ;;  %v267_v42 = vld [vmem:[%s4743_s6 + $0x350] sm:$0xff]  ;;  %v269_v43 = vld [vmem:[%s4743_s6 + $0x358] sm:$0xff] }
  0x2a   : > { %262 = vst [vmem:[%s4751_s7 + $0x138] sm:$0xff] %v261_v39  ;;  %264 = vst [vmem:[%s4751_s7 + $0x140] sm:$0xff] %v263_v40  ;;  %v271_v44 = vld [vmem:[%s4743_s6 + $0x360] sm:$0xff]  ;;  %v273_v45 = vld [vmem:[%s4743_s6 + $0x368] sm:$0xff] }
  0x2b   : > { %266 = vst [vmem:[%s4751_s7 + $0x148] sm:$0xff] %v265_v41  ;;  %268 = vst [vmem:[%s4751_s7 + $0x150] sm:$0xff] %v267_v42  ;;  %v275_v46 = vld [vmem:[%s4743_s6 + $0x370] sm:$0xff]  ;;  %v277_v47 = vld [vmem:[%s4743_s6 + $0x378] sm:$0xff] }
  0x2c   : > { %270 = vst [vmem:[%s4751_s7 + $0x158] sm:$0xff] %v269_v43  ;;  %272 = vst [vmem:[%s4751_s7 + $0x160] sm:$0xff] %v271_v44  ;;  %v279_v48 = vld [vmem:[%s4743_s6 + $0x480] sm:$0xff]  ;;  %v281_v49 = vld [vmem:[%s4743_s6 + $0x488] sm:$0xff] }
  0x2d   : > { %274 = vst [vmem:[%s4751_s7 + $0x168] sm:$0xff] %v273_v45  ;;  %276 = vst [vmem:[%s4751_s7 + $0x170] sm:$0xff] %v275_v46  ;;  %v283_v50 = vld [vmem:[%s4743_s6 + $0x490] sm:$0xff]  ;;  %v285_v51 = vld [vmem:[%s4743_s6 + $0x498] sm:$0xff] }
  0x2e   : > { %278 = vst [vmem:[%s4751_s7 + $0x178] sm:$0xff] %v277_v47  ;;  %280 = vst [vmem:[%s4751_s7 + $0x180] sm:$0xff] %v279_v48  ;;  %v287_v52 = vld [vmem:[%s4743_s6 + $0x4a0] sm:$0xff]  ;;  %v289_v53 = vld [vmem:[%s4743_s6 + $0x4a8] sm:$0xff] }
  0x2f   : > { %282 = vst [vmem:[%s4751_s7 + $0x188] sm:$0xff] %v281_v49  ;;  %284 = vst [vmem:[%s4751_s7 + $0x190] sm:$0xff] %v283_v50  ;;  %v291_v54 = vld [vmem:[%s4743_s6 + $0x4b0] sm:$0xff]  ;;  %v293_v55 = vld [vmem:[%s4743_s6 + $0x4b8] sm:$0xff] }
  0x30   : > { %286 = vst [vmem:[%s4751_s7 + $0x198] sm:$0xff] %v285_v51  ;;  %288 = vst [vmem:[%s4751_s7 + $0x1a0] sm:$0xff] %v287_v52  ;;  %v295_v56 = vld [vmem:[%s4743_s6 + $0x4c0] sm:$0xff]  ;;  %v297_v57 = vld [vmem:[%s4743_s6 + $0x4c8] sm:$0xff] }
  0x31   : > { %290 = vst [vmem:[%s4751_s7 + $0x1a8] sm:$0xff] %v289_v53  ;;  %292 = vst [vmem:[%s4751_s7 + $0x1b0] sm:$0xff] %v291_v54  ;;  %v299_v58 = vld [vmem:[%s4743_s6 + $0x4d0] sm:$0xff]  ;;  %v301_v59 = vld [vmem:[%s4743_s6 + $0x4d8] sm:$0xff] }
  0x32   : > { %294 = vst [vmem:[%s4751_s7 + $0x1b8] sm:$0xff] %v293_v55  ;;  %296 = vst [vmem:[%s4751_s7 + $0x1c0] sm:$0xff] %v295_v56  ;;  %v303_v60 = vld [vmem:[%s4743_s6 + $0x4e0] sm:$0xff]  ;;  %v305_v61 = vld [vmem:[%s4743_s6 + $0x4e8] sm:$0xff] }
  0x33   : > { %298 = vst [vmem:[%s4751_s7 + $0x1c8] sm:$0xff] %v297_v57  ;;  %300 = vst [vmem:[%s4751_s7 + $0x1d0] sm:$0xff] %v299_v58  ;;  %v307_v62 = vld [vmem:[%s4743_s6 + $0x4f0] sm:$0xff]  ;;  %v309_v63 = vld [vmem:[%s4743_s6 + $0x4f8] sm:$0xff] }
  0x34   : > { %302 = vst [vmem:[%s4751_s7 + $0x1d8] sm:$0xff] %v301_v59  ;;  %304 = vst [vmem:[%s4751_s7 + $0x1e0] sm:$0xff] %v303_v60  ;;  %v311_v0 = vld [vmem:[%s4743_s6 + $0x600] sm:$0xff]  ;;  %v313_v1 = vld [vmem:[%s4743_s6 + $0x608] sm:$0xff] }
  0x35   : > { %306 = vst [vmem:[%s4751_s7 + $0x1e8] sm:$0xff] %v305_v61  ;;  %308 = vst [vmem:[%s4751_s7 + $0x1f0] sm:$0xff] %v307_v62  ;;  %v315_v2 = vld [vmem:[%s4743_s6 + $0x610] sm:$0xff]  ;;  %v317_v3 = vld [vmem:[%s4743_s6 + $0x618] sm:$0xff] }
  0x36   : > { %310 = vst [vmem:[%s4751_s7 + $0x1f8] sm:$0xff] %v309_v63  ;;  %312 = vst [vmem:[%s4751_s7 + $0x200] sm:$0xff] %v311_v0  ;;  %v319_v4 = vld [vmem:[%s4743_s6 + $0x620] sm:$0xff]  ;;  %v321_v5 = vld [vmem:[%s4743_s6 + $0x628] sm:$0xff] }
  0x37   : > { %314 = vst [vmem:[%s4751_s7 + $0x208] sm:$0xff] %v313_v1  ;;  %316 = vst [vmem:[%s4751_s7 + $0x210] sm:$0xff] %v315_v2  ;;  %v323_v6 = vld [vmem:[%s4743_s6 + $0x630] sm:$0xff]  ;;  %v325_v7 = vld [vmem:[%s4743_s6 + $0x638] sm:$0xff] }
  0x38   : > { %318 = vst [vmem:[%s4751_s7 + $0x218] sm:$0xff] %v317_v3  ;;  %320 = vst [vmem:[%s4751_s7 + $0x220] sm:$0xff] %v319_v4  ;;  %v327_v8 = vld [vmem:[%s4743_s6 + $0x640] sm:$0xff]  ;;  %v329_v9 = vld [vmem:[%s4743_s6 + $0x648] sm:$0xff] }
  0x39   : > { %322 = vst [vmem:[%s4751_s7 + $0x228] sm:$0xff] %v321_v5  ;;  %324 = vst [vmem:[%s4751_s7 + $0x230] sm:$0xff] %v323_v6  ;;  %v331_v10 = vld [vmem:[%s4743_s6 + $0x650] sm:$0xff]  ;;  %v333_v11 = vld [vmem:[%s4743_s6 + $0x658] sm:$0xff] }
  0x3a   : > { %326 = vst [vmem:[%s4751_s7 + $0x238] sm:$0xff] %v325_v7  ;;  %328 = vst [vmem:[%s4751_s7 + $0x240] sm:$0xff] %v327_v8  ;;  %v335_v12 = vld [vmem:[%s4743_s6 + $0x660] sm:$0xff]  ;;  %v337_v13 = vld [vmem:[%s4743_s6 + $0x668] sm:$0xff] }
  0x3b   : > { %330 = vst [vmem:[%s4751_s7 + $0x248] sm:$0xff] %v329_v9  ;;  %332 = vst [vmem:[%s4751_s7 + $0x250] sm:$0xff] %v331_v10  ;;  %v339_v14 = vld [vmem:[%s4743_s6 + $0x670] sm:$0xff]  ;;  %v341_v15 = vld [vmem:[%s4743_s6 + $0x678] sm:$0xff] }
  0x3c   : > { %334 = vst [vmem:[%s4751_s7 + $0x258] sm:$0xff] %v333_v11  ;;  %336 = vst [vmem:[%s4751_s7 + $0x260] sm:$0xff] %v335_v12  ;;  %v343_v16 = vld [vmem:[%s4743_s6 + $0x780] sm:$0xff]  ;;  %v345_v17 = vld [vmem:[%s4743_s6 + $0x788] sm:$0xff] }
  0x3d   : > { %338 = vst [vmem:[%s4751_s7 + $0x268] sm:$0xff] %v337_v13  ;;  %340 = vst [vmem:[%s4751_s7 + $0x270] sm:$0xff] %v339_v14  ;;  %v347_v18 = vld [vmem:[%s4743_s6 + $0x790] sm:$0xff]  ;;  %v349_v19 = vld [vmem:[%s4743_s6 + $0x798] sm:$0xff] }
  0x3e   : > { %342 = vst [vmem:[%s4751_s7 + $0x278] sm:$0xff] %v341_v15  ;;  %344 = vst [vmem:[%s4751_s7 + $0x280] sm:$0xff] %v343_v16  ;;  %v351_v20 = vld [vmem:[%s4743_s6 + $0x7a0] sm:$0xff]  ;;  %v353_v21 = vld [vmem:[%s4743_s6 + $0x7a8] sm:$0xff] }
  0x3f   : > { %346 = vst [vmem:[%s4751_s7 + $0x288] sm:$0xff] %v345_v17  ;;  %348 = vst [vmem:[%s4751_s7 + $0x290] sm:$0xff] %v347_v18  ;;  %v355_v22 = vld [vmem:[%s4743_s6 + $0x7b0] sm:$0xff]  ;;  %v357_v23 = vld [vmem:[%s4743_s6 + $0x7b8] sm:$0xff] }
  0x40   : > { %350 = vst [vmem:[%s4751_s7 + $0x298] sm:$0xff] %v349_v19  ;;  %352 = vst [vmem:[%s4751_s7 + $0x2a0] sm:$0xff] %v351_v20  ;;  %v359_v24 = vld [vmem:[%s4743_s6 + $0x7c0] sm:$0xff]  ;;  %v361_v25 = vld [vmem:[%s4743_s6 + $0x7c8] sm:$0xff] }
  0x41   : > { %354 = vst [vmem:[%s4751_s7 + $0x2a8] sm:$0xff] %v353_v21  ;;  %356 = vst [vmem:[%s4751_s7 + $0x2b0] sm:$0xff] %v355_v22  ;;  %v363_v26 = vld [vmem:[%s4743_s6 + $0x7d0] sm:$0xff]  ;;  %v365_v27 = vld [vmem:[%s4743_s6 + $0x7d8] sm:$0xff] }
  0x42   : > { %358 = vst [vmem:[%s4751_s7 + $0x2b8] sm:$0xff] %v357_v23  ;;  %360 = vst [vmem:[%s4751_s7 + $0x2c0] sm:$0xff] %v359_v24  ;;  %v367_v28 = vld [vmem:[%s4743_s6 + $0x7e0] sm:$0xff]  ;;  %v369_v29 = vld [vmem:[%s4743_s6 + $0x7e8] sm:$0xff] }
  0x43   : > { %362 = vst [vmem:[%s4751_s7 + $0x2c8] sm:$0xff] %v361_v25  ;;  %364 = vst [vmem:[%s4751_s7 + $0x2d0] sm:$0xff] %v363_v26  ;;  %v371_v30 = vld [vmem:[%s4743_s6 + $0x7f0] sm:$0xff]  ;;  %v373_v31 = vld [vmem:[%s4743_s6 + $0x7f8] sm:$0xff] }
  0x44   : > { %366 = vst [vmem:[%s4751_s7 + $0x2d8] sm:$0xff] %v365_v27  ;;  %368 = vst [vmem:[%s4751_s7 + $0x2e0] sm:$0xff] %v367_v28  ;;  %v375_v32 = vld [vmem:[%s4743_s6 + $0x900] sm:$0xff]  ;;  %v377_v33 = vld [vmem:[%s4743_s6 + $0x908] sm:$0xff] }
  0x45   : > { %370 = vst [vmem:[%s4751_s7 + $0x2e8] sm:$0xff] %v369_v29  ;;  %372 = vst [vmem:[%s4751_s7 + $0x2f0] sm:$0xff] %v371_v30  ;;  %v379_v34 = vld [vmem:[%s4743_s6 + $0x910] sm:$0xff]  ;;  %v381_v35 = vld [vmem:[%s4743_s6 + $0x918] sm:$0xff] }
  0x46   : > { %374 = vst [vmem:[%s4751_s7 + $0x2f8] sm:$0xff] %v373_v31  ;;  %376 = vst [vmem:[%s4751_s7 + $0x300] sm:$0xff] %v375_v32  ;;  %v383_v36 = vld [vmem:[%s4743_s6 + $0x920] sm:$0xff]  ;;  %v385_v37 = vld [vmem:[%s4743_s6 + $0x928] sm:$0xff] }
  0x47   : > { %378 = vst [vmem:[%s4751_s7 + $0x308] sm:$0xff] %v377_v33  ;;  %380 = vst [vmem:[%s4751_s7 + $0x310] sm:$0xff] %v379_v34  ;;  %v387_v38 = vld [vmem:[%s4743_s6 + $0x930] sm:$0xff]  ;;  %v389_v39 = vld [vmem:[%s4743_s6 + $0x938] sm:$0xff] }
  0x48   : > { %382 = vst [vmem:[%s4751_s7 + $0x318] sm:$0xff] %v381_v35  ;;  %384 = vst [vmem:[%s4751_s7 + $0x320] sm:$0xff] %v383_v36  ;;  %v391_v40 = vld [vmem:[%s4743_s6 + $0x940] sm:$0xff]  ;;  %v393_v41 = vld [vmem:[%s4743_s6 + $0x948] sm:$0xff] }
  0x49   : > { %386 = vst [vmem:[%s4751_s7 + $0x328] sm:$0xff] %v385_v37  ;;  %388 = vst [vmem:[%s4751_s7 + $0x330] sm:$0xff] %v387_v38  ;;  %v395_v42 = vld [vmem:[%s4743_s6 + $0x950] sm:$0xff]  ;;  %v397_v43 = vld [vmem:[%s4743_s6 + $0x958] sm:$0xff] }
  0x4a   : > { %390 = vst [vmem:[%s4751_s7 + $0x338] sm:$0xff] %v389_v39  ;;  %392 = vst [vmem:[%s4751_s7 + $0x340] sm:$0xff] %v391_v40  ;;  %v399_v44 = vld [vmem:[%s4743_s6 + $0x960] sm:$0xff]  ;;  %v401_v45 = vld [vmem:[%s4743_s6 + $0x968] sm:$0xff] }
  0x4b   : > { %394 = vst [vmem:[%s4751_s7 + $0x348] sm:$0xff] %v393_v41  ;;  %396 = vst [vmem:[%s4751_s7 + $0x350] sm:$0xff] %v395_v42  ;;  %v403_v46 = vld [vmem:[%s4743_s6 + $0x970] sm:$0xff]  ;;  %v405_v47 = vld [vmem:[%s4743_s6 + $0x978] sm:$0xff] }
  0x4c   : > { %398 = vst [vmem:[%s4751_s7 + $0x358] sm:$0xff] %v397_v43  ;;  %400 = vst [vmem:[%s4751_s7 + $0x360] sm:$0xff] %v399_v44  ;;  %v407_v48 = vld [vmem:[%s4743_s6 + $0xa80] sm:$0xff]  ;;  %v409_v49 = vld [vmem:[%s4743_s6 + $0xa88] sm:$0xff] }
  0x4d   : > { %402 = vst [vmem:[%s4751_s7 + $0x368] sm:$0xff] %v401_v45  ;;  %404 = vst [vmem:[%s4751_s7 + $0x370] sm:$0xff] %v403_v46  ;;  %v411_v50 = vld [vmem:[%s4743_s6 + $0xa90] sm:$0xff]  ;;  %v413_v51 = vld [vmem:[%s4743_s6 + $0xa98] sm:$0xff] }
  0x4e   : > { %406 = vst [vmem:[%s4751_s7 + $0x378] sm:$0xff] %v405_v47  ;;  %408 = vst [vmem:[%s4751_s7 + $0x380] sm:$0xff] %v407_v48  ;;  %v415_v52 = vld [vmem:[%s4743_s6 + $0xaa0] sm:$0xff]  ;;  %v417_v53 = vld [vmem:[%s4743_s6 + $0xaa8] sm:$0xff] }
  0x4f   : > { %410 = vst [vmem:[%s4751_s7 + $0x388] sm:$0xff] %v409_v49  ;;  %412 = vst [vmem:[%s4751_s7 + $0x390] sm:$0xff] %v411_v50  ;;  %v419_v54 = vld [vmem:[%s4743_s6 + $0xab0] sm:$0xff]  ;;  %v421_v55 = vld [vmem:[%s4743_s6 + $0xab8] sm:$0xff] }
  0x50   : > { %414 = vst [vmem:[%s4751_s7 + $0x398] sm:$0xff] %v413_v51  ;;  %416 = vst [vmem:[%s4751_s7 + $0x3a0] sm:$0xff] %v415_v52  ;;  %v423_v56 = vld [vmem:[%s4743_s6 + $0xac0] sm:$0xff]  ;;  %v425_v57 = vld [vmem:[%s4743_s6 + $0xac8] sm:$0xff] }
  0x51   : > { %418 = vst [vmem:[%s4751_s7 + $0x3a8] sm:$0xff] %v417_v53  ;;  %420 = vst [vmem:[%s4751_s7 + $0x3b0] sm:$0xff] %v419_v54  ;;  %v427_v58 = vld [vmem:[%s4743_s6 + $0xad0] sm:$0xff]  ;;  %v429_v59 = vld [vmem:[%s4743_s6 + $0xad8] sm:$0xff] }
  0x52   : > { %422 = vst [vmem:[%s4751_s7 + $0x3b8] sm:$0xff] %v421_v55  ;;  %424 = vst [vmem:[%s4751_s7 + $0x3c0] sm:$0xff] %v423_v56  ;;  %v431_v60 = vld [vmem:[%s4743_s6 + $0xae0] sm:$0xff]  ;;  %v433_v61 = vld [vmem:[%s4743_s6 + $0xae8] sm:$0xff] }
  0x53   : > { %426 = vst [vmem:[%s4751_s7 + $0x3c8] sm:$0xff] %v425_v57  ;;  %428 = vst [vmem:[%s4751_s7 + $0x3d0] sm:$0xff] %v427_v58  ;;  %v435_v62 = vld [vmem:[%s4743_s6 + $0xaf0] sm:$0xff]  ;;  %v437_v63 = vld [vmem:[%s4743_s6 + $0xaf8] sm:$0xff] }
  0x54   : > { %430 = vst [vmem:[%s4751_s7 + $0x3d8] sm:$0xff] %v429_v59  ;;  %432 = vst [vmem:[%s4751_s7 + $0x3e0] sm:$0xff] %v431_v60  ;;  %v439_v0 = vld [vmem:[%s4743_s6 + $0xc00] sm:$0xff]  ;;  %v441_v1 = vld [vmem:[%s4743_s6 + $0xc08] sm:$0xff] }
  0x55   : > { %434 = vst [vmem:[%s4751_s7 + $0x3e8] sm:$0xff] %v433_v61  ;;  %436 = vst [vmem:[%s4751_s7 + $0x3f0] sm:$0xff] %v435_v62  ;;  %v443_v2 = vld [vmem:[%s4743_s6 + $0xc10] sm:$0xff]  ;;  %v445_v3 = vld [vmem:[%s4743_s6 + $0xc18] sm:$0xff] }
  0x56   : > { %438 = vst [vmem:[%s4751_s7 + $0x3f8] sm:$0xff] %v437_v63  ;;  %440 = vst [vmem:[%s4751_s7 + $0x400] sm:$0xff] %v439_v0  ;;  %v447_v4 = vld [vmem:[%s4743_s6 + $0xc20] sm:$0xff]  ;;  %v449_v5 = vld [vmem:[%s4743_s6 + $0xc28] sm:$0xff] }
  0x57   : > { %442 = vst [vmem:[%s4751_s7 + $0x408] sm:$0xff] %v441_v1  ;;  %444 = vst [vmem:[%s4751_s7 + $0x410] sm:$0xff] %v443_v2  ;;  %v451_v6 = vld [vmem:[%s4743_s6 + $0xc30] sm:$0xff]  ;;  %v453_v7 = vld [vmem:[%s4743_s6 + $0xc38] sm:$0xff] }
  0x58   : > { %446 = vst [vmem:[%s4751_s7 + $0x418] sm:$0xff] %v445_v3  ;;  %448 = vst [vmem:[%s4751_s7 + $0x420] sm:$0xff] %v447_v4  ;;  %v455_v8 = vld [vmem:[%s4743_s6 + $0xc40] sm:$0xff]  ;;  %v457_v9 = vld [vmem:[%s4743_s6 + $0xc48] sm:$0xff] }
  0x59   : > { %450 = vst [vmem:[%s4751_s7 + $0x428] sm:$0xff] %v449_v5  ;;  %452 = vst [vmem:[%s4751_s7 + $0x430] sm:$0xff] %v451_v6  ;;  %v459_v10 = vld [vmem:[%s4743_s6 + $0xc50] sm:$0xff]  ;;  %v461_v11 = vld [vmem:[%s4743_s6 + $0xc58] sm:$0xff] }
  0x5a   : > { %454 = vst [vmem:[%s4751_s7 + $0x438] sm:$0xff] %v453_v7  ;;  %456 = vst [vmem:[%s4751_s7 + $0x440] sm:$0xff] %v455_v8  ;;  %v463_v12 = vld [vmem:[%s4743_s6 + $0xc60] sm:$0xff]  ;;  %v465_v13 = vld [vmem:[%s4743_s6 + $0xc68] sm:$0xff] }
  0x5b   : > { %458 = vst [vmem:[%s4751_s7 + $0x448] sm:$0xff] %v457_v9  ;;  %460 = vst [vmem:[%s4751_s7 + $0x450] sm:$0xff] %v459_v10  ;;  %v467_v14 = vld [vmem:[%s4743_s6 + $0xc70] sm:$0xff]  ;;  %v469_v15 = vld [vmem:[%s4743_s6 + $0xc78] sm:$0xff] }
  0x5c   : > { %462 = vst [vmem:[%s4751_s7 + $0x458] sm:$0xff] %v461_v11  ;;  %464 = vst [vmem:[%s4751_s7 + $0x460] sm:$0xff] %v463_v12  ;;  %v471_v16 = vld [vmem:[%s4743_s6 + $0xd80] sm:$0xff]  ;;  %v473_v17 = vld [vmem:[%s4743_s6 + $0xd88] sm:$0xff] }
  0x5d   : > { %466 = vst [vmem:[%s4751_s7 + $0x468] sm:$0xff] %v465_v13  ;;  %468 = vst [vmem:[%s4751_s7 + $0x470] sm:$0xff] %v467_v14  ;;  %v475_v18 = vld [vmem:[%s4743_s6 + $0xd90] sm:$0xff]  ;;  %v477_v19 = vld [vmem:[%s4743_s6 + $0xd98] sm:$0xff] }
  0x5e   : > { %470 = vst [vmem:[%s4751_s7 + $0x478] sm:$0xff] %v469_v15  ;;  %472 = vst [vmem:[%s4751_s7 + $0x480] sm:$0xff] %v471_v16  ;;  %v479_v20 = vld [vmem:[%s4743_s6 + $0xda0] sm:$0xff]  ;;  %v481_v21 = vld [vmem:[%s4743_s6 + $0xda8] sm:$0xff] }
  0x5f   : > { %474 = vst [vmem:[%s4751_s7 + $0x488] sm:$0xff] %v473_v17  ;;  %476 = vst [vmem:[%s4751_s7 + $0x490] sm:$0xff] %v475_v18  ;;  %v483_v22 = vld [vmem:[%s4743_s6 + $0xdb0] sm:$0xff]  ;;  %v485_v23 = vld [vmem:[%s4743_s6 + $0xdb8] sm:$0xff] }
  0x60   : > { %478 = vst [vmem:[%s4751_s7 + $0x498] sm:$0xff] %v477_v19  ;;  %480 = vst [vmem:[%s4751_s7 + $0x4a0] sm:$0xff] %v479_v20  ;;  %v487_v24 = vld [vmem:[%s4743_s6 + $0xdc0] sm:$0xff]  ;;  %v489_v25 = vld [vmem:[%s4743_s6 + $0xdc8] sm:$0xff] }
  0x61   : > { %482 = vst [vmem:[%s4751_s7 + $0x4a8] sm:$0xff] %v481_v21  ;;  %484 = vst [vmem:[%s4751_s7 + $0x4b0] sm:$0xff] %v483_v22  ;;  %v491_v26 = vld [vmem:[%s4743_s6 + $0xdd0] sm:$0xff]  ;;  %v493_v27 = vld [vmem:[%s4743_s6 + $0xdd8] sm:$0xff] }
  0x62   : > { %486 = vst [vmem:[%s4751_s7 + $0x4b8] sm:$0xff] %v485_v23  ;;  %488 = vst [vmem:[%s4751_s7 + $0x4c0] sm:$0xff] %v487_v24  ;;  %v495_v28 = vld [vmem:[%s4743_s6 + $0xde0] sm:$0xff]  ;;  %v497_v29 = vld [vmem:[%s4743_s6 + $0xde8] sm:$0xff] }
  0x63   : > { %490 = vst [vmem:[%s4751_s7 + $0x4c8] sm:$0xff] %v489_v25  ;;  %492 = vst [vmem:[%s4751_s7 + $0x4d0] sm:$0xff] %v491_v26  ;;  %v499_v30 = vld [vmem:[%s4743_s6 + $0xdf0] sm:$0xff]  ;;  %v501_v31 = vld [vmem:[%s4743_s6 + $0xdf8] sm:$0xff] }
  0x64   : > { %494 = vst [vmem:[%s4751_s7 + $0x4d8] sm:$0xff] %v493_v27  ;;  %496 = vst [vmem:[%s4751_s7 + $0x4e0] sm:$0xff] %v495_v28  ;;  %v503_v32 = vld [vmem:[%s4743_s6 + $0xf00] sm:$0xff]  ;;  %v505_v33 = vld [vmem:[%s4743_s6 + $0xf08] sm:$0xff] }
  0x65   : > { %498 = vst [vmem:[%s4751_s7 + $0x4e8] sm:$0xff] %v497_v29  ;;  %500 = vst [vmem:[%s4751_s7 + $0x4f0] sm:$0xff] %v499_v30  ;;  %v507_v34 = vld [vmem:[%s4743_s6 + $0xf10] sm:$0xff]  ;;  %v509_v35 = vld [vmem:[%s4743_s6 + $0xf18] sm:$0xff] }
  0x66   : > { %502 = vst [vmem:[%s4751_s7 + $0x4f8] sm:$0xff] %v501_v31  ;;  %504 = vst [vmem:[%s4751_s7 + $0x500] sm:$0xff] %v503_v32  ;;  %v511_v36 = vld [vmem:[%s4743_s6 + $0xf20] sm:$0xff]  ;;  %v513_v37 = vld [vmem:[%s4743_s6 + $0xf28] sm:$0xff] }
  0x67   : > { %506 = vst [vmem:[%s4751_s7 + $0x508] sm:$0xff] %v505_v33  ;;  %508 = vst [vmem:[%s4751_s7 + $0x510] sm:$0xff] %v507_v34  ;;  %v515_v38 = vld [vmem:[%s4743_s6 + $0xf30] sm:$0xff]  ;;  %v517_v39 = vld [vmem:[%s4743_s6 + $0xf38] sm:$0xff] }
  0x68   : > { %510 = vst [vmem:[%s4751_s7 + $0x518] sm:$0xff] %v509_v35  ;;  %512 = vst [vmem:[%s4751_s7 + $0x520] sm:$0xff] %v511_v36  ;;  %v519_v40 = vld [vmem:[%s4743_s6 + $0xf40] sm:$0xff]  ;;  %v521_v41 = vld [vmem:[%s4743_s6 + $0xf48] sm:$0xff] }
  0x69   : > { %514 = vst [vmem:[%s4751_s7 + $0x528] sm:$0xff] %v513_v37  ;;  %516 = vst [vmem:[%s4751_s7 + $0x530] sm:$0xff] %v515_v38  ;;  %v523_v42 = vld [vmem:[%s4743_s6 + $0xf50] sm:$0xff]  ;;  %v525_v43 = vld [vmem:[%s4743_s6 + $0xf58] sm:$0xff] }
  0x6a   : > { %518 = vst [vmem:[%s4751_s7 + $0x538] sm:$0xff] %v517_v39  ;;  %520 = vst [vmem:[%s4751_s7 + $0x540] sm:$0xff] %v519_v40  ;;  %v527_v44 = vld [vmem:[%s4743_s6 + $0xf60] sm:$0xff]  ;;  %v529_v45 = vld [vmem:[%s4743_s6 + $0xf68] sm:$0xff] }
  0x6b   : > { %522 = vst [vmem:[%s4751_s7 + $0x548] sm:$0xff] %v521_v41  ;;  %524 = vst [vmem:[%s4751_s7 + $0x550] sm:$0xff] %v523_v42  ;;  %v531_v46 = vld [vmem:[%s4743_s6 + $0xf70] sm:$0xff]  ;;  %v533_v47 = vld [vmem:[%s4743_s6 + $0xf78] sm:$0xff] }
  0x6c   : > { %526 = vst [vmem:[%s4751_s7 + $0x558] sm:$0xff] %v525_v43  ;;  %528 = vst [vmem:[%s4751_s7 + $0x560] sm:$0xff] %v527_v44  ;;  %v535_v48 = vld [vmem:[%s4743_s6 + $0x1080] sm:$0xff]  ;;  %v537_v49 = vld [vmem:[%s4743_s6 + $0x1088] sm:$0xff] }
  0x6d   : > { %530 = vst [vmem:[%s4751_s7 + $0x568] sm:$0xff] %v529_v45  ;;  %532 = vst [vmem:[%s4751_s7 + $0x570] sm:$0xff] %v531_v46  ;;  %v539_v50 = vld [vmem:[%s4743_s6 + $0x1090] sm:$0xff]  ;;  %v541_v51 = vld [vmem:[%s4743_s6 + $0x1098] sm:$0xff] }
  0x6e   : > { %534 = vst [vmem:[%s4751_s7 + $0x578] sm:$0xff] %v533_v47  ;;  %536 = vst [vmem:[%s4751_s7 + $0x580] sm:$0xff] %v535_v48  ;;  %v543_v52 = vld [vmem:[%s4743_s6 + $0x10a0] sm:$0xff]  ;;  %v545_v53 = vld [vmem:[%s4743_s6 + $0x10a8] sm:$0xff] }
  0x6f   : > { %538 = vst [vmem:[%s4751_s7 + $0x588] sm:$0xff] %v537_v49  ;;  %540 = vst [vmem:[%s4751_s7 + $0x590] sm:$0xff] %v539_v50  ;;  %v547_v54 = vld [vmem:[%s4743_s6 + $0x10b0] sm:$0xff]  ;;  %v549_v55 = vld [vmem:[%s4743_s6 + $0x10b8] sm:$0xff] }
  0x70   : > { %542 = vst [vmem:[%s4751_s7 + $0x598] sm:$0xff] %v541_v51  ;;  %544 = vst [vmem:[%s4751_s7 + $0x5a0] sm:$0xff] %v543_v52  ;;  %v551_v56 = vld [vmem:[%s4743_s6 + $0x10c0] sm:$0xff]  ;;  %v553_v57 = vld [vmem:[%s4743_s6 + $0x10c8] sm:$0xff] }
  0x71   : > { %546 = vst [vmem:[%s4751_s7 + $0x5a8] sm:$0xff] %v545_v53  ;;  %548 = vst [vmem:[%s4751_s7 + $0x5b0] sm:$0xff] %v547_v54  ;;  %v555_v58 = vld [vmem:[%s4743_s6 + $0x10d0] sm:$0xff]  ;;  %v557_v59 = vld [vmem:[%s4743_s6 + $0x10d8] sm:$0xff] }
  0x72   : > { %550 = vst [vmem:[%s4751_s7 + $0x5b8] sm:$0xff] %v549_v55  ;;  %552 = vst [vmem:[%s4751_s7 + $0x5c0] sm:$0xff] %v551_v56  ;;  %v559_v60 = vld [vmem:[%s4743_s6 + $0x10e0] sm:$0xff]  ;;  %v561_v61 = vld [vmem:[%s4743_s6 + $0x10e8] sm:$0xff] }
  0x73   : > { %554 = vst [vmem:[%s4751_s7 + $0x5c8] sm:$0xff] %v553_v57  ;;  %556 = vst [vmem:[%s4751_s7 + $0x5d0] sm:$0xff] %v555_v58  ;;  %v563_v62 = vld [vmem:[%s4743_s6 + $0x10f0] sm:$0xff]  ;;  %v565_v63 = vld [vmem:[%s4743_s6 + $0x10f8] sm:$0xff] }
  0x74   : > { %558 = vst [vmem:[%s4751_s7 + $0x5d8] sm:$0xff] %v557_v59  ;;  %560 = vst [vmem:[%s4751_s7 + $0x5e0] sm:$0xff] %v559_v60 }
  0x75   : > { %562 = vst [vmem:[%s4751_s7 + $0x5e8] sm:$0xff] %v561_v61  ;;  %564 = vst [vmem:[%s4751_s7 + $0x5f0] sm:$0xff] %v563_v62 }
  0x76   : > { %566 = vst [vmem:[%s4751_s7 + $0x5f8] sm:$0xff] %v565_v63 }
  0x77 PF: > { %s573_s8 = sand.u32 1, %s4654_s17   ;;  %s4363_s9 = sshll.u32 %s4658_s18, 8 }
  0x78   : > { %s4256_s10 = sshll.u32 %s573_s8, 4  ;;  %s5136_s13 = scalar_lea.hbm %s7669_s2, %s4363_s9 }
  0x79   : > { %s577_s14 = scalar_lea.vmem [#allocation3], %s4256_s10  ;;  %s574_s21 = scalar_lea.sflag [#allocation4], %s573_s8 }
  0x7a   : > { %s585_s15 = sshll.u32 %s577_s14, 4  ;;  %s4596_s22 = scalar_lea.hbm %s5136_s13, 256  ;;  %s586_s15 = int_to_ptr.vmem [resolvable:$true] %s585_s15 }
  0x7b   : > { %p4597_p10 = scmp.ne.s32.totalorder %s5136_s13, %s4596_s22  ;;  %s4600_s29 = scalar_lea.hbm %s7669_s2, 768 }
  0x7c   : > { %p4601_p13 = scmp.lt.u32.totalorder %s5136_s13, %s7669_s2  ;;  %p4602_p0 = scmp.lt.u32.totalorder %s4600_s29, %s4596_s22 }
  0x7d   : > { %p4598_p11 = pnand %p4597_p10, %p4721_p4  ;;  %p4604_p2 = scmp.lt.u32.totalorder %s4596_s22, %s5136_s13 }
  0x7e   : > { %p4603_p1 = por %p4602_p0, %p4601_p13 }
  0x7f   : > { %p4599_p12 = pneg %p4598_p11 }
  0x80   : > { %p4605_p3 = por %p4604_p2, %p4603_p1 }
  0x82   : > { %p4606_p5 = pnand %p4605_p3, %p4599_p12 }
  0x84   : > { %4609 = shalt.err (!%p4606_p5)
}
  0x85   : > { %s4610_s6 = scalar_lea.vmem %s586_s15, 256  ;;  %s4660_s7 = smov [#allocation3]  }
  0x86   : > { %p4611_p6 = scmp.ne.s32.totalorder %s586_s15, %s4610_s6  ;;  %s4614_s8 = sshll.u32 %s4660_s7, 4  ;;  %s4615_s8 = int_to_ptr.vmem [resolvable:$false] %s4614_s8 }
  0x87   : > { %s4616_s9 = scalar_lea.vmem %s4615_s8, 512  ;;  %p4617_p11 = scmp.lt.s32.totalorder %s586_s15, %s4615_s8 }
  0x88   : > { %p4612_p9 = pnand %p4611_p6, %p4721_p4  ;;  %p4618_p8 = scmp.lt.s32.totalorder %s4616_s9, %s4610_s6 }
  0x8a   : > { %p4613_p10 = pneg %p4612_p9  ;;  %p4619_p7 = por %p4618_p8, %p4617_p11 }
  0x8c   : > { %p4620_p0 = pnand %p4619_p7, %p4613_p10 }
  0x8e   : > { %4623 = shalt.err (!%p4620_p0)
}
  0x8f   : > { %4560 = dma.hbm_to_vmem [thread:$0]  (%p4721_p4), %s5136_s13, 256, %s586_s15, %s574_s21  }
  0x90 PF: > { %p4259_p12 = scmp.ge.s32.totalorder %s4658_s18, 1  ;;  %p590_p13 = scmp.lt.s32.totalorder %s4658_s18, 4 }
  0x92   : > { %p591_p1 = pnand %p4259_p12, %p590_p13 }
  0x94   : > { %594 = sbr.rel (%p591_p1) target bundleno = 955 (0x3bb), region = 51 }
  0x9b   : > { %s5158_s10 = sand.u32 1, %s4650_s16   ;;  %p7686_p4 = scmp.ne.s32.totalorder %s7684_s25, 0 }
  0x9c   : > { %s4558_s11 = smul.u32 1536, %s5158_s10  ;;  %s4260_s12 = sshll.u32 %s5158_s10, 4 }
  0x9d   : > { %s604_s13 = scalar_lea.sflag [#allocation4], %s5158_s10  ;;  %s5167_s14 = scalar_lea.vmem [#allocation3], %s4260_s12 }
  0x9e   : > { %s5164_s24 = scalar_lea.vmem [#allocation2], %s4558_s11 }
  0x9f   : > { %4641 = dma.done.wait (%p7686_p4), %s604_s13, 256  }
  0xa0   : > { %4643 = vsyncadd (%p7686_p4), %s604_s13, 4294967040  ;;  %v4661_v0 = vmov 0.0   ;;  %v655_v1 = vld [vmem:[%s5164_s24 + $0x8] sm:$0xff]  ;;  %v654_v3 = vld [vmem:[%s5164_s24] sm:$0xff]  ;;  %vm846_vm0 = vcmask 785408   ;;  %vm3227_vm1 = vcmask 7168  }
  0xa1   : > { %947 = vmatprep.mubr.f32.mxu0 %v4661_v0  ;;  %1084 = vmatprep.mubr.f32.mxu1 %v4661_v0  ;;  %v671_v2 = vld [vmem:[%s5164_s24 + $0x88] sm:$0xff]  ;;  %v670_v5 = vld [vmem:[%s5164_s24 + $0x80] sm:$0xff]  ;;  %v657_v6 = vld [vmem:[%s5164_s24 + $0x18] sm:$0xff]  ;;  %vm3636_vm2 = vcmask 15368   ;;  %p7919_p7 = scmp.ne.s32.totalorder %s7685_s26, 0 }
  0xa2   : > { %v4365_v4 = vpack.c.bf16 %v671_v2, %v655_v1  ;;  %v673_v7 = vld [vmem:[%s5164_s24 + $0x98] sm:$0xff]  ;;  %v4367_v8 = vpack.c.bf16 %v670_v5, %v654_v3  ;;  %v687_v10 = vld [vmem:[%s5164_s24 + $0x108] sm:$0xff]  ;;  %v656_v12 = vld [vmem:[%s5164_s24 + $0x10] sm:$0xff] }
  0xa3   : > { %v4389_v9 = vpack.c.bf16 %v673_v7, %v657_v6  ;;  %v703_v11 = vld [vmem:[%s5164_s24 + $0x188] sm:$0xff]  ;;  %v672_v14 = vld [vmem:[%s5164_s24 + $0x90] sm:$0xff]  ;;  %v686_v15 = vld [vmem:[%s5164_s24 + $0x100] sm:$0xff] }
  0xa4   : > { %4366 = vmatprep.subr.bf16.mxu0 %v4365_v4  ;;  %v4369_v13 = vpack.c.bf16 %v703_v11, %v687_v10  ;;  %v702_v16 = vld [vmem:[%s5164_s24 + $0x180] sm:$0xff]  ;;  %v4391_v17 = vpack.c.bf16 %v672_v14, %v656_v12  ;;  %v689_v19 = vld [vmem:[%s5164_s24 + $0x118] sm:$0xff]  ;;  %v719_v21 = vld [vmem:[%s5164_s24 + $0x208] sm:$0xff] }
  0xa5   : > { %4368 = vmatpush1.bf16.msra.mxu0 %v4367_v8  ;;  %4390 = vmatprep.subr.bf16.mxu1 %v4389_v9  ;;  %v4371_v18 = vpack.c.bf16 %v702_v16, %v686_v15  ;;  %v705_v20 = vld [vmem:[%s5164_s24 + $0x198] sm:$0xff]  ;;  %v735_v23 = vld [vmem:[%s5164_s24 + $0x288] sm:$0xff]  ;;  %v688_v24 = vld [vmem:[%s5164_s24 + $0x110] sm:$0xff] }
  0xa6   : > { %4370 = vmatprep.subr.bf16.mxu0 %v4369_v13  ;;  %v4393_v22 = vpack.c.bf16 %v705_v20, %v689_v19  ;;  %v704_v25 = vld [vmem:[%s5164_s24 + $0x190] sm:$0xff]  ;;  %4392 = vmatpush1.bf16.msra.mxu1 %v4391_v17  ;;  %v4373_v26 = vpack.c.bf16 %v735_v23, %v719_v21  ;;  %v718_v28 = vld [vmem:[%s5164_s24 + $0x200] sm:$0xff]  ;;  %v721_v30 = vld [vmem:[%s5164_s24 + $0x218] sm:$0xff] }
  0xa7   : > { %v4395_v27 = vpack.c.bf16 %v704_v25, %v688_v24  ;;  %v734_v29 = vld [vmem:[%s5164_s24 + $0x280] sm:$0xff]  ;;  %v737_v31 = vld [vmem:[%s5164_s24 + $0x298] sm:$0xff]  ;;  %v751_v32 = vld [vmem:[%s5164_s24 + $0x308] sm:$0xff] }
  0xa8   : > { %4394 = vmatprep.subr.bf16.mxu1 %v4393_v22  ;;  %v767_v33 = vld [vmem:[%s5164_s24 + $0x388] sm:$0xff]  ;;  %v4375_v34 = vpack.c.bf16 %v734_v29, %v718_v28  ;;  %v4397_v35 = vpack.c.bf16 %v737_v31, %v721_v30  ;;  %v720_v36 = vld [vmem:[%s5164_s24 + $0x210] sm:$0xff]  ;;  %v750_v38 = vld [vmem:[%s5164_s24 + $0x300] sm:$0xff] }
  0xa9   : > { %4372 = vmatpush1.bf16.msra.mxu0 %v4371_v18  ;;  %v736_v37 = vld [vmem:[%s5164_s24 + $0x290] sm:$0xff]  ;;  %v4377_v39 = vpack.c.bf16 %v767_v33, %v751_v32  ;;  %v766_v40 = vld [vmem:[%s5164_s24 + $0x380] sm:$0xff]  ;;  %v753_v41 = vld [vmem:[%s5164_s24 + $0x318] sm:$0xff] }
  0xaa   : > { %4374 = vmatprep.subr.bf16.mxu0 %v4373_v26  ;;  %v769_v42 = vld [vmem:[%s5164_s24 + $0x398] sm:$0xff]  ;;  %4396 = vmatpush1.bf16.msra.mxu1 %v4395_v27  ;;  %v4399_v43 = vpack.c.bf16 %v736_v37, %v720_v36  ;;  %v783_v44 = vld [vmem:[%s5164_s24 + $0x408] sm:$0xff]  ;;  %v752_v47 = vld [vmem:[%s5164_s24 + $0x310] sm:$0xff]  ;;  %v4379_v49 = vpack.c.bf16 %v766_v40, %v750_v38 }
  0xab   : > { %v799_v45 = vld [vmem:[%s5164_s24 + $0x488] sm:$0xff]  ;;  %4398 = vmatprep.subr.bf16.mxu1 %v4397_v35  ;;  %v4401_v46 = vpack.c.bf16 %v769_v42, %v753_v41  ;;  %v768_v48 = vld [vmem:[%s5164_s24 + $0x390] sm:$0xff]  ;;  %v785_v50 = vld [vmem:[%s5164_s24 + $0x418] sm:$0xff] }
  0xac   : > { %v801_v51 = vld [vmem:[%s5164_s24 + $0x498] sm:$0xff]  ;;  %v4381_v52 = vpack.c.bf16 %v799_v45, %v783_v44  ;;  %v782_v53 = vld [vmem:[%s5164_s24 + $0x400] sm:$0xff]  ;;  %v4403_v55 = vpack.c.bf16 %v768_v48, %v752_v47  ;;  %v815_v56 = vld [vmem:[%s5164_s24 + $0x508] sm:$0xff] }
  0xad   : > { %4376 = vmatpush1.bf16.msra.mxu0 %v4375_v34  ;;  %v798_v54 = vld [vmem:[%s5164_s24 + $0x480] sm:$0xff]  ;;  %v831_v57 = vld [vmem:[%s5164_s24 + $0x588] sm:$0xff]  ;;  %v4405_v58 = vpack.c.bf16 %v801_v51, %v785_v50  ;;  %v784_v59 = vld [vmem:[%s5164_s24 + $0x410] sm:$0xff] }
  0xae   : > { %4378 = vmatprep.subr.bf16.mxu0 %v4377_v39  ;;  %4400 = vmatpush1.bf16.msra.mxu1 %v4399_v43  ;;  %v800_v60 = vld [vmem:[%s5164_s24 + $0x490] sm:$0xff]  ;;  %v4383_v61 = vpack.c.bf16 %v798_v54, %v782_v53  ;;  %v817_v62 = vld [vmem:[%s5164_s24 + $0x518] sm:$0xff]  ;;  %v4385_v1 = vpack.c.bf16 %v831_v57, %v815_v56  ;;  %v814_v2 = vld [vmem:[%s5164_s24 + $0x500] sm:$0xff] }
  0xaf   : > { %4402 = vmatprep.subr.bf16.mxu1 %v4401_v46  ;;  %v833_v63 = vld [vmem:[%s5164_s24 + $0x598] sm:$0xff]  ;;  %v830_v3 = vld [vmem:[%s5164_s24 + $0x580] sm:$0xff]  ;;  %v4407_v4 = vpack.c.bf16 %v800_v60, %v784_v59  ;;  %v659_v5 = vld [vmem:[%s5164_s24 + $0x28] sm:$0xff] }
  0xb0   : > { %v675_v6 = vld [vmem:[%s5164_s24 + $0xa8] sm:$0xff]  ;;  %v4409_v7 = vpack.c.bf16 %v833_v63, %v817_v62  ;;  %v816_v8 = vld [vmem:[%s5164_s24 + $0x510] sm:$0xff]  ;;  %v4387_v10 = vpack.c.bf16 %v830_v3, %v814_v2  ;;  %v661_v11 = vld [vmem:[%s5164_s24 + $0x38] sm:$0xff] }
  0xb1   : > { %4380 = vmatpush1.bf16.msra.mxu0 %v4379_v49  ;;  %v832_v9 = vld [vmem:[%s5164_s24 + $0x590] sm:$0xff]  ;;  %v677_v12 = vld [vmem:[%s5164_s24 + $0xb8] sm:$0xff]  ;;  %v4413_v13 = vpack.c.bf16 %v675_v6, %v659_v5  ;;  %v658_v14 = vld [vmem:[%s5164_s24 + $0x20] sm:$0xff] }
  0xb2   : > { %4382 = vmatprep.subr.bf16.mxu0 %v4381_v52  ;;  %4404 = vmatpush1.bf16.msra.mxu1 %v4403_v55  ;;  %v674_v15 = vld [vmem:[%s5164_s24 + $0xa0] sm:$0xff]  ;;  %v4411_v16 = vpack.c.bf16 %v832_v9, %v816_v8  ;;  %v691_v17 = vld [vmem:[%s5164_s24 + $0x128] sm:$0xff]  ;;  %v4437_v19 = vpack.c.bf16 %v677_v12, %v661_v11  ;;  %v660_v20 = vld [vmem:[%s5164_s24 + $0x30] sm:$0xff] }
  0xb3   : > { %4406 = vmatprep.subr.bf16.mxu1 %v4405_v58  ;;  %v707_v18 = vld [vmem:[%s5164_s24 + $0x1a8] sm:$0xff]  ;;  %v676_v21 = vld [vmem:[%s5164_s24 + $0xb0] sm:$0xff]  ;;  %v5236_v22 = vld [vmem:[%s7668_s1] sm:$0xff]  ;;  %v4415_v23 = vpack.c.bf16 %v674_v15, %v658_v14 }
  0xb4   : > { %v693_v24 = vld [vmem:[%s5164_s24 + $0x138] sm:$0xff]  ;;  %v4417_v26 = vpack.c.bf16 %v707_v18, %v691_v17  ;;  %v690_v27 = vld [vmem:[%s5164_s24 + $0x120] sm:$0xff]  ;;  %v4439_v29 = vpack.c.bf16 %v676_v21, %v660_v20  ;;  %v723_v30 = vld [vmem:[%s5164_s24 + $0x228] sm:$0xff] }
  0xb5   : > { %4384 = vmatpush1.bf16.msra.mxu0 %v4383_v61  ;;  %v709_v25 = vld [vmem:[%s5164_s24 + $0x1b8] sm:$0xff]  ;;  %v706_v28 = vld [vmem:[%s5164_s24 + $0x1a0] sm:$0xff]  ;;  %v739_v31 = vld [vmem:[%s5164_s24 + $0x2a8] sm:$0xff] }
  0xb6   : > { %4386 = vmatprep.subr.bf16.mxu0 %v4385_v1  ;;  %4408 = vmatpush1.bf16.msra.mxu1 %v4407_v4  ;;  %v4441_v32 = vpack.c.bf16 %v709_v25, %v693_v24  ;;  %v692_v33 = vld [vmem:[%s5164_s24 + $0x130] sm:$0xff]  ;;  %v5252_v35 = vld [vmem:[%s7668_s1 + $0x8] sm:$0xff]  ;;  %v4419_v36 = vpack.c.bf16 %v706_v28, %v690_v27  ;;  %v725_v37 = vld [vmem:[%s5164_s24 + $0x238] sm:$0xff]  ;;  %v4421_v39 = vpack.c.bf16 %v739_v31, %v723_v30 }
  0xb7   : > { %4410 = vmatprep.subr.bf16.mxu1 %v4409_v7  ;;  %v708_v34 = vld [vmem:[%s5164_s24 + $0x1b0] sm:$0xff]  ;;  %v741_v38 = vld [vmem:[%s5164_s24 + $0x2b8] sm:$0xff]  ;;  %v722_v40 = vld [vmem:[%s5164_s24 + $0x220] sm:$0xff] }
  0xb8   : > { %v738_v41 = vld [vmem:[%s5164_s24 + $0x2a0] sm:$0xff]  ;;  %v4443_v42 = vpack.c.bf16 %v708_v34, %v692_v33  ;;  %v755_v43 = vld [vmem:[%s5164_s24 + $0x328] sm:$0xff]  ;;  %v4445_v45 = vpack.c.bf16 %v741_v38, %v725_v37  ;;  %v724_v46 = vld [vmem:[%s5164_s24 + $0x230] sm:$0xff] }
  0xb9   : > { %4388 = vmatpush1.bf16.msra.mxu0 %v4387_v10  ;;  %v771_v44 = vld [vmem:[%s5164_s24 + $0x3a8] sm:$0xff]  ;;  %v740_v47 = vld [vmem:[%s5164_s24 + $0x2b0] sm:$0xff]  ;;  %v4423_v49 = vpack.c.bf16 %v738_v41, %v722_v40  ;;  %v757_v50 = vld [vmem:[%s5164_s24 + $0x338] sm:$0xff] }
  0xba   : > { %4414 = vmatprep.subr.bf16.mxu0 %v4413_v13  ;;  %4412 = vmatpush1.bf16.msra.mxu1 %v4411_v16  ;;  %v5271_v48 = vld [vmem:[%s7668_s1 + $0x10] sm:$0xff]  ;;  %v773_v51 = vld [vmem:[%s5164_s24 + $0x3b8] sm:$0xff]  ;;  %v4425_v52 = vpack.c.bf16 %v771_v44, %v755_v43  ;;  %v754_v53 = vld [vmem:[%s5164_s24 + $0x320] sm:$0xff]  ;;  %v4447_v55 = vpack.c.bf16 %v740_v47, %v724_v46 }
  0xbb   : > { %4438 = vmatprep.subr.bf16.mxu1 %v4437_v19  ;;  %v770_v54 = vld [vmem:[%s5164_s24 + $0x3a0] sm:$0xff]  ;;  %v787_v56 = vld [vmem:[%s5164_s24 + $0x428] sm:$0xff]  ;;  %v4449_v58 = vpack.c.bf16 %v773_v51, %v757_v50  ;;  %v756_v59 = vld [vmem:[%s5164_s24 + $0x330] sm:$0xff] }
  0xbc   : > { %4261 = vmatmul.mubr.msk.f32.vlgmr.msra.gmra.mrb[0].mxu0 %vm846_vm0, %v5236_v22  ;;  %v803_v57 = vld [vmem:[%s5164_s24 + $0x4a8] sm:$0xff]  ;;  %v772_v60 = vld [vmem:[%s5164_s24 + $0x3b0] sm:$0xff]  ;;  %v5290_v61 = vld [vmem:[%s7668_s1 + $0x18] sm:$0xff]  ;;  %v4427_v62 = vpack.c.bf16 %v770_v54, %v754_v53 }
  0xbd   : > { %4416 = vmatpush1.bf16.msra.mxu0 %v4415_v23  ;;  %953 = vmatprep.mubr.f32.mxu0 %v4661_v0  ;;  %v789_v63 = vld [vmem:[%s5164_s24 + $0x438] sm:$0xff]  ;;  %v4429_v2 = vpack.c.bf16 %v803_v57, %v787_v56  ;;  %v786_v3 = vld [vmem:[%s5164_s24 + $0x420] sm:$0xff]  ;;  %v4451_v5 = vpack.c.bf16 %v772_v60, %v756_v59  ;;  %v819_v6 = vld [vmem:[%s5164_s24 + $0x528] sm:$0xff] }
  0xbe   : > { %4273 = vmatmul.mubr.msk.f32.vlgmr.msra.gmra.mrb[0].mxu1 %vm846_vm0, %v5236_v22  ;;  %4418 = vmatprep.subr.bf16.mxu0 %v4417_v26  ;;  %v805_v1 = vld [vmem:[%s5164_s24 + $0x4b8] sm:$0xff]  ;;  %v802_v4 = vld [vmem:[%s5164_s24 + $0x4a0] sm:$0xff]  ;;  %v835_v7 = vld [vmem:[%s5164_s24 + $0x5a8] sm:$0xff] }
  0xbf   : > { %4440 = vmatpush1.bf16.msra.mxu1 %v4439_v29  ;;  %1090 = vmatprep.mubr.f32.mxu1 %v4661_v0  ;;  %v4453_v8 = vpack.c.bf16 %v805_v1, %v789_v63  ;;  %v788_v9 = vld [vmem:[%s5164_s24 + $0x430] sm:$0xff]  ;;  %v5309_v11 = vld [vmem:[%s7668_s1 + $0x20] sm:$0xff]  ;;  %v4431_v12 = vpack.c.bf16 %v802_v4, %v786_v3  ;;  %v821_v13 = vld [vmem:[%s5164_s24 + $0x538] sm:$0xff]  ;;  %v4433_v15 = vpack.c.bf16 %v835_v7, %v819_v6 }
  0xc0   : > { %4262 = vmatmul.mubr.msk.f32.gmra.mrb[2].mxu0 %vm846_vm0, %v5252_v35  ;;  %4442 = vmatprep.subr.bf16.mxu1 %v4441_v32  ;;  %v804_v10 = vld [vmem:[%s5164_s24 + $0x4b0] sm:$0xff]  ;;  %v837_v14 = vld [vmem:[%s5164_s24 + $0x5b8] sm:$0xff]  ;;  %v818_v16 = vld [vmem:[%s5164_s24 + $0x520] sm:$0xff] }
  0xc1   : > { %959 = vmatprep.mubr.f32.mxu0 %v4661_v0  ;;  %4420 = vmatpush1.bf16.msra.mxu0 %v4419_v36  ;;  %v834_v17 = vld [vmem:[%s5164_s24 + $0x5a0] sm:$0xff]  ;;  %v4455_v18 = vpack.c.bf16 %v804_v10, %v788_v9  ;;  %v663_v19 = vld [vmem:[%s5164_s24 + $0x48] sm:$0xff]  ;;  %v4457_v21 = vpack.c.bf16 %v837_v14, %v821_v13  ;;  %v820_v23 = vld [vmem:[%s5164_s24 + $0x530] sm:$0xff] }
  0xc2   : > { %4274 = vmatmul.mubr.msk.f32.gmra.mrb[2].mxu1 %vm846_vm0, %v5252_v35  ;;  %4422 = vmatprep.subr.bf16.mxu0 %v4421_v39  ;;  %v679_v20 = vld [vmem:[%s5164_s24 + $0xc8] sm:$0xff]  ;;  %v836_v24 = vld [vmem:[%s5164_s24 + $0x5b0] sm:$0xff]  ;;  %v4435_v26 = vpack.c.bf16 %v834_v17, %v818_v16  ;;  %v665_v27 = vld [vmem:[%s5164_s24 + $0x58] sm:$0xff] }
  0xc3   : > { %1096 = vmatprep.mubr.f32.mxu1 %v4661_v0  ;;  %4444 = vmatpush1.bf16.msra.mxu1 %v4443_v42  ;;  %v5328_v25 = vld [vmem:[%s7668_s1 + $0x28] sm:$0xff]  ;;  %v681_v28 = vld [vmem:[%s5164_s24 + $0xd8] sm:$0xff]  ;;  %v4461_v29 = vpack.c.bf16 %v679_v20, %v663_v19  ;;  %v4459_v30 = vpack.c.bf16 %v836_v24, %v820_v23  ;;  %v5341_v32 = vld [vmem:[%s7668_s1 + $0x30] sm:$0xff] }
  0xc4   : > { %4263 = vmatmul.mubr.msk.f32.gmra.mrb[4].mxu0 %vm846_vm0, %v5271_v48  ;;  %4446 = vmatprep.subr.bf16.mxu1 %v4445_v45  ;;  %v4485_v31 = vpack.c.bf16 %v681_v28, %v665_v27  ;;  %v5352_v33 = vld [vmem:[%s7668_s1 + $0x38] sm:$0xff]  ;;  %v5363_v34 = vld [vmem:[%s7668_s1 + $0x40] sm:$0xff]  ;;  %v5374_v36 = vld [vmem:[%s7668_s1 + $0x48] sm:$0xff] }
  0xc5   : > { %965 = vmatprep.mubr.f32.mxu0 %v4661_v0  ;;  %4424 = vmatpush1.bf16.msra.mxu0 %v4423_v49  ;;  %v5385_v37 = vld [vmem:[%s7668_s1 + $0x50] sm:$0xff]  ;;  %v5396_v38 = vld [vmem:[%s7668_s1 + $0x58] sm:$0xff]  ;;  %v662_v39 = vld [vmem:[%s5164_s24 + $0x40] sm:$0xff] }
  0xc6   : > { %4275 = vmatmul.mubr.msk.f32.gmra.mrb[4].mxu1 %vm846_vm0, %v5271_v48  ;;  %4426 = vmatprep.subr.bf16.mxu0 %v4425_v52  ;;  %v678_v40 = vld [vmem:[%s5164_s24 + $0xc0] sm:$0xff]  ;;  %v695_v41 = vld [vmem:[%s5164_s24 + $0x148] sm:$0xff]  ;;  %v664_v43 = vld [vmem:[%s5164_s24 + $0x50] sm:$0xff] }
  0xc7   : > { %1102 = vmatprep.mubr.f32.mxu1 %v4661_v0  ;;  %4448 = vmatpush1.bf16.msra.mxu1 %v4447_v55  ;;  %v711_v42 = vld [vmem:[%s5164_s24 + $0x1c8] sm:$0xff]  ;;  %v680_v44 = vld [vmem:[%s5164_s24 + $0xd0] sm:$0xff]  ;;  %v4463_v45 = vpack.c.bf16 %v678_v40, %v662_v39  ;;  %v697_v46 = vld [vmem:[%s5164_s24 + $0x158] sm:$0xff] }
  0xc8   : > { %4264 = vmatmul.mubr.msk.f32.gmra.mrb[6].mxu0 %vm846_vm0, %v5290_v61  ;;  %4450 = vmatprep.subr.bf16.mxu1 %v4449_v58  ;;  %v713_v47 = vld [vmem:[%s5164_s24 + $0x1d8] sm:$0xff]  ;;  %v4465_v49 = vpack.c.bf16 %v711_v42, %v695_v41  ;;  %v694_v50 = vld [vmem:[%s5164_s24 + $0x140] sm:$0xff]  ;;  %v4487_v52 = vpack.c.bf16 %v680_v44, %v664_v43  ;;  %v727_v53 = vld [vmem:[%s5164_s24 + $0x248] sm:$0xff] }
  0xc9   : > { %971 = vmatprep.mubr.f32.mxu0 %v4661_v0  ;;  %4428 = vmatpush1.bf16.msra.mxu0 %v4427_v62  ;;  %v710_v51 = vld [vmem:[%s5164_s24 + $0x1c0] sm:$0xff]  ;;  %v743_v54 = vld [vmem:[%s5164_s24 + $0x2c8] sm:$0xff]  ;;  %v4489_v55 = vpack.c.bf16 %v713_v47, %v697_v46  ;;  %v696_v56 = vld [vmem:[%s5164_s24 + $0x150] sm:$0xff] }
  0xca   : > { %4276 = vmatmul.mubr.msk.f32.gmra.mrb[6].mxu1 %vm846_vm0, %v5290_v61  ;;  %4430 = vmatprep.subr.bf16.mxu0 %v4429_v2  ;;  %v712_v57 = vld [vmem:[%s5164_s24 + $0x1d0] sm:$0xff]  ;;  %v4467_v58 = vpack.c.bf16 %v710_v51, %v694_v50  ;;  %v729_v59 = vld [vmem:[%s5164_s24 + $0x258] sm:$0xff]  ;;  %v4469_v62 = vpack.c.bf16 %v743_v54, %v727_v53  ;;  %v726_v63 = vld [vmem:[%s5164_s24 + $0x240] sm:$0xff] }
  0xcb   : > { %1108 = vmatprep.mubr.f32.mxu1 %v4661_v0  ;;  %4452 = vmatpush1.bf16.msra.mxu1 %v4451_v5  ;;  %v745_v60 = vld [vmem:[%s5164_s24 + $0x2d8] sm:$0xff]  ;;  %v742_v1 = vld [vmem:[%s5164_s24 + $0x2c0] sm:$0xff]  ;;  %v4491_v2 = vpack.c.bf16 %v712_v57, %v696_v56  ;;  %v759_v3 = vld [vmem:[%s5164_s24 + $0x348] sm:$0xff] }
  0xcc   : > { %4265 = vmatmul.mubr.msk.f32.gmra.mrb[8].mxu0 %vm846_vm0, %v5309_v11  ;;  %4454 = vmatprep.subr.bf16.mxu1 %v4453_v8  ;;  %v775_v4 = vld [vmem:[%s5164_s24 + $0x3c8] sm:$0xff]  ;;  %v4493_v5 = vpack.c.bf16 %v745_v60, %v729_v59  ;;  %v728_v6 = vld [vmem:[%s5164_s24 + $0x250] sm:$0xff]  ;;  %v4471_v8 = vpack.c.bf16 %v742_v1, %v726_v63  ;;  %v761_v9 = vld [vmem:[%s5164_s24 + $0x358] sm:$0xff] }
  0xcd   : > { %977 = vmatprep.mubr.f32.mxu0 %v4661_v0  ;;  %4432 = vmatpush1.bf16.msra.mxu0 %v4431_v12  ;;  %v744_v7 = vld [vmem:[%s5164_s24 + $0x2d0] sm:$0xff]  ;;  %v777_v10 = vld [vmem:[%s5164_s24 + $0x3d8] sm:$0xff]  ;;  %v4473_v12 = vpack.c.bf16 %v775_v4, %v759_v3  ;;  %v758_v13 = vld [vmem:[%s5164_s24 + $0x340] sm:$0xff] }
  0xce   : > { %4277 = vmatmul.mubr.msk.f32.gmra.mrb[8].mxu1 %vm846_vm0, %v5309_v11  ;;  %4434 = vmatprep.subr.bf16.mxu0 %v4433_v15  ;;  %v774_v14 = vld [vmem:[%s5164_s24 + $0x3c0] sm:$0xff]  ;;  %v4495_v15 = vpack.c.bf16 %v744_v7, %v728_v6  ;;  %v791_v16 = vld [vmem:[%s5164_s24 + $0x448] sm:$0xff]  ;;  %v760_v19 = vld [vmem:[%s5164_s24 + $0x350] sm:$0xff] }
  0xcf   : > { %1114 = vmatprep.mubr.f32.mxu1 %v4661_v0  ;;  %4456 = vmatpush1.bf16.msra.mxu1 %v4455_v18  ;;  %v807_v17 = vld [vmem:[%s5164_s24 + $0x4c8] sm:$0xff]  ;;  %v4497_v18 = vpack.c.bf16 %v777_v10, %v761_v9  ;;  %v776_v20 = vld [vmem:[%s5164_s24 + $0x3d0] sm:$0xff]  ;;  %v793_v23 = vld [vmem:[%s5164_s24 + $0x458] sm:$0xff] }
  0xd0   : > { %4266 = vmatmul.mubr.msk.f32.gmra.mrb[10].mxu0 %vm846_vm0, %v5328_v25  ;;  %4458 = vmatprep.subr.bf16.mxu1 %v4457_v21  ;;  %v4475_v21 = vpack.c.bf16 %v774_v14, %v758_v13  ;;  %v809_v24 = vld [vmem:[%s5164_s24 + $0x4d8] sm:$0xff]  ;;  %v790_v27 = vld [vmem:[%s5164_s24 + $0x440] sm:$0xff]  ;;  %v792_v40 = vld [vmem:[%s5164_s24 + $0x450] sm:$0xff] }
  0xd1   : > { %983 = vmatprep.mubr.f32.mxu0 %v4661_v0  ;;  %4436 = vmatpush1.bf16.msra.mxu0 %v4435_v26  ;;  %v4477_v26 = vpack.c.bf16 %v807_v17, %v791_v16  ;;  %v806_v28 = vld [vmem:[%s5164_s24 + $0x4c0] sm:$0xff]  ;;  %v4501_v39 = vpack.c.bf16 %v809_v24, %v793_v23  ;;  %v808_v41 = vld [vmem:[%s5164_s24 + $0x4d0] sm:$0xff]  ;;  %v825_v43 = vld [vmem:[%s5164_s24 + $0x558] sm:$0xff] }
  0xd2   : > { %4278 = vmatmul.mubr.msk.f32.gmra.mrb[10].mxu1 %vm846_vm0, %v5328_v25  ;;  %4462 = vmatprep.subr.bf16.mxu0 %v4461_v29  ;;  %v4499_v29 = vpack.c.bf16 %v776_v20, %v760_v19  ;;  %v4479_v42 = vpack.c.bf16 %v806_v28, %v790_v27  ;;  %v841_v44 = vld [vmem:[%s5164_s24 + $0x5d8] sm:$0xff]  ;;  %v822_v46 = vld [vmem:[%s5164_s24 + $0x540] sm:$0xff]  ;;  %v667_v50 = vld [vmem:[%s5164_s24 + $0x68] sm:$0xff] }
  0xd3   : > { %1120 = vmatprep.mubr.f32.mxu1 %v4661_v0  ;;  %4460 = vmatpush1.bf16.msra.mxu1 %v4459_v30  ;;  %v823_v30 = vld [vmem:[%s5164_s24 + $0x548] sm:$0xff]  ;;  %v838_v47 = vld [vmem:[%s5164_s24 + $0x5c0] sm:$0xff]  ;;  %v824_v53 = vld [vmem:[%s5164_s24 + $0x550] sm:$0xff] }
  0xd4   : > { %4267 = vmatmul.mubr.msk.f32.gmra.mrb[12].mxu0 %vm846_vm0, %v5341_v32  ;;  %4486 = vmatprep.subr.bf16.mxu1 %v4485_v31  ;;  %v839_v31 = vld [vmem:[%s5164_s24 + $0x5c8] sm:$0xff]  ;;  %v840_v54 = vld [vmem:[%s5164_s24 + $0x5d0] sm:$0xff]  ;;  %v669_v56 = vld [vmem:[%s5164_s24 + $0x78] sm:$0xff] }
  0xd5   : > { %989 = vmatprep.mubr.f32.mxu0 %v4661_v0  ;;  %v683_v51 = vld [vmem:[%s5164_s24 + $0xe8] sm:$0xff]  ;;  %v685_v57 = vld [vmem:[%s5164_s24 + $0xf8] sm:$0xff]  ;;  %v4507_v59 = vpack.c.bf16 %v840_v54, %v824_v53  ;;  %v682_v63 = vld [vmem:[%s5164_s24 + $0xe0] sm:$0xff] }
  0xd6   : > { %4279 = vmatmul.mubr.msk.f32.gmra.mrb[12].mxu1 %vm846_vm0, %v5341_v32  ;;  %v4533_v60 = vpack.c.bf16 %v685_v57, %v669_v56  ;;  %v699_v1 = vld [vmem:[%s5164_s24 + $0x168] sm:$0xff]  ;;  %v668_v3 = vld [vmem:[%s5164_s24 + $0x70] sm:$0xff]  ;;  %v701_v6 = vld [vmem:[%s5164_s24 + $0x178] sm:$0xff] }
  0xd7   : > { %1126 = vmatprep.mubr.f32.mxu1 %v4661_v0  ;;  %v684_v4 = vld [vmem:[%s5164_s24 + $0xf0] sm:$0xff]  ;;  %v717_v7 = vld [vmem:[%s5164_s24 + $0x1f8] sm:$0xff]  ;;  %v698_v9 = vld [vmem:[%s5164_s24 + $0x160] sm:$0xff] }
  0xd8   : > { %4268 = vmatmul.mubr.msk.f32.gmra.mrb[14].mxu0 %vm846_vm0, %v5352_v33  ;;  %v714_v10 = vld [vmem:[%s5164_s24 + $0x1e0] sm:$0xff]  ;;  %v731_v13 = vld [vmem:[%s5164_s24 + $0x268] sm:$0xff]  ;;  %v700_v16 = vld [vmem:[%s5164_s24 + $0x170] sm:$0xff] }
  0xd9   : > { %995 = vmatprep.mubr.f32.mxu0 %v4661_v0  ;;  %v747_v14 = vld [vmem:[%s5164_s24 + $0x2e8] sm:$0xff]  ;;  %v716_v17 = vld [vmem:[%s5164_s24 + $0x1f0] sm:$0xff]  ;;  %v733_v19 = vld [vmem:[%s5164_s24 + $0x278] sm:$0xff] }
  0xda   : > { %4280 = vmatmul.mubr.msk.f32.gmra.mrb[14].mxu1 %vm846_vm0, %v5352_v33  ;;  %v749_v20 = vld [vmem:[%s5164_s24 + $0x2f8] sm:$0xff]  ;;  %v730_v23 = vld [vmem:[%s5164_s24 + $0x260] sm:$0xff]  ;;  %v763_v27 = vld [vmem:[%s5164_s24 + $0x368] sm:$0xff] }
  0xdb   : > { %1132 = vmatprep.mubr.f32.mxu1 %v4661_v0  ;;  %v746_v24 = vld [vmem:[%s5164_s24 + $0x2e0] sm:$0xff]  ;;  %v779_v28 = vld [vmem:[%s5164_s24 + $0x3e8] sm:$0xff]  ;;  %v797_v53 = vld [vmem:[%s5164_s24 + $0x478] sm:$0xff] }
  0xdc   : > { %4269 = vmatmul.mubr.msk.f32.gmra.mrb[16].mxu0 %vm846_vm0, %v5363_v34  ;;  %v813_v54 = vld [vmem:[%s5164_s24 + $0x4f8] sm:$0xff]  ;;  %v794_v56 = vld [vmem:[%s5164_s24 + $0x460] sm:$0xff] }
  0xdd   : > { %1001 = vmatprep.mubr.f32.mxu0 %v4661_v0  ;;  %v810_v57 = vld [vmem:[%s5164_s24 + $0x4e0] sm:$0xff] }
  0xde   : > { %4281 = vmatmul.mubr.msk.f32.gmra.mrb[16].mxu1 %vm846_vm0, %v5363_v34 }
  0xdf   : > { %1138 = vmatprep.mubr.f32.mxu1 %v4661_v0 }
  0xe0   : > { %4270 = vmatmul.mubr.msk.f32.gmra.mrb[18].mxu0 %vm846_vm0, %v5374_v36 }
  0xe1   : > { %1007 = vmatprep.mubr.f32.mxu0 %v4661_v0 }
  0xe2   : > { %4282 = vmatmul.mubr.msk.f32.gmra.mrb[18].mxu1 %vm846_vm0, %v5374_v36 }
  0xe3   : > { %1144 = vmatprep.mubr.f32.mxu1 %v4661_v0 }
  0xe4   : > { %4271 = vmatmul.mubr.msk.f32.gmra.mrb[20].mxu0 %vm846_vm0, %v5385_v37 }
  0xe5   : > { %1013 = vmatprep.mubr.f32.mxu0 %v4661_v0 }
  0xe6   : > { %4283 = vmatmul.mubr.msk.f32.gmra.mrb[20].mxu1 %vm846_vm0, %v5385_v37 }
  0xe7   : > { %1150 = vmatprep.mubr.f32.mxu1 %v4661_v0 }
  0xe8   : > { %4272 = vmatmul.mubr.msk.f32.gmra.mrb[22].mxu0 %vm846_vm0, %v5396_v38 }
  0xe9   : > { %1221 = vmatprep.mubr.f32.mxu0 %v4661_v0 }
  0xea   : > { %4284 = vmatmul.mubr.msk.f32.gmra.mrb[22].mxu1 %vm846_vm0, %v5396_v38 }
  0xeb   : > { %1358 = vmatprep.mubr.f32.mxu1 %v4661_v0 }
  0xec   : > { %4285 = vmatmul.mubr.msk.f32.vlgmr.msra.gmra.mrb[24].mxu0 %vm846_vm0, %v5236_v22 }
  0xed   : > { %4464 = vmatpush1.bf16.msra.mxu0 %v4463_v45  ;;  %1227 = vmatprep.mubr.f32.mxu0 %v4661_v0  ;;  %v4481_v45 = vpack.c.bf16 %v839_v31, %v823_v30  ;;  %v732_v30 = vld [vmem:[%s5164_s24 + $0x270] sm:$0xff] }
  0xee   : > { %4297 = vmatmul.mubr.msk.f32.vlgmr.msra.gmra.mrb[24].mxu1 %vm846_vm0, %v5236_v22  ;;  %4466 = vmatprep.subr.bf16.mxu0 %v4465_v49  ;;  %v4503_v49 = vpack.c.bf16 %v808_v41, %v792_v40  ;;  %v748_v31 = vld [vmem:[%s5164_s24 + $0x2f0] sm:$0xff]  ;;  %v765_v40 = vld [vmem:[%s5164_s24 + $0x378] sm:$0xff] }
  0xef   : > { %4488 = vmatpush1.bf16.msra.mxu1 %v4487_v52  ;;  %1364 = vmatprep.mubr.f32.mxu1 %v4661_v0  ;;  %v4505_v52 = vpack.c.bf16 %v841_v44, %v825_v43  ;;  %v781_v41 = vld [vmem:[%s5164_s24 + $0x3f8] sm:$0xff]  ;;  %v762_v43 = vld [vmem:[%s5164_s24 + $0x360] sm:$0xff] }
  0xf0   : > { %4286 = vmatmul.mubr.msk.f32.gmra.mrb[26].mxu0 %vm846_vm0, %v5252_v35  ;;  %4490 = vmatprep.subr.bf16.mxu1 %v4489_v55  ;;  %v4483_v55 = vpack.c.bf16 %v838_v47, %v822_v46  ;;  %v778_v44 = vld [vmem:[%s5164_s24 + $0x3e0] sm:$0xff]  ;;  %v795_v46 = vld [vmem:[%s5164_s24 + $0x468] sm:$0xff] }
  0xf1   : > { %1233 = vmatprep.mubr.f32.mxu0 %v4661_v0  ;;  %4468 = vmatpush1.bf16.msra.mxu0 %v4467_v58  ;;  %v4509_v58 = vpack.c.bf16 %v683_v51, %v667_v50  ;;  %v811_v47 = vld [vmem:[%s5164_s24 + $0x4e8] sm:$0xff]  ;;  %v764_v50 = vld [vmem:[%s5164_s24 + $0x370] sm:$0xff] }
  0xf2   : > { %4298 = vmatmul.mubr.msk.f32.gmra.mrb[26].mxu1 %vm846_vm0, %v5252_v35  ;;  %4470 = vmatprep.subr.bf16.mxu0 %v4469_v62  ;;  %v666_v62 = vld [vmem:[%s5164_s24 + $0x60] sm:$0xff]  ;;  %v780_v51 = vld [vmem:[%s5164_s24 + $0x3f0] sm:$0xff] }
  0xf3   : > { %1370 = vmatprep.mubr.f32.mxu1 %v4661_v0  ;;  %4492 = vmatpush1.bf16.msra.mxu1 %v4491_v2  ;;  %v715_v2 = vld [vmem:[%s5164_s24 + $0x1e8] sm:$0xff] }
  0xf4   : > { %4287 = vmatmul.mubr.msk.f32.gmra.mrb[28].mxu0 %vm846_vm0, %v5271_v48  ;;  %4494 = vmatprep.subr.bf16.mxu1 %v4493_v5  ;;  %v4511_v5 = vpack.c.bf16 %v682_v63, %v666_v62  ;;  %v4549_v62 = vpack.c.bf16 %v813_v54, %v797_v53  ;;  %v796_v63 = vld [vmem:[%s5164_s24 + $0x470] sm:$0xff] }
  0xf5   : > { %1239 = vmatprep.mubr.f32.mxu0 %v4661_v0  ;;  %4472 = vmatpush1.bf16.msra.mxu0 %v4471_v8  ;;  %v4513_v8 = vpack.c.bf16 %v715_v2, %v699_v1  ;;  %v812_v1 = vld [vmem:[%s5164_s24 + $0x4f0] sm:$0xff]  ;;  %v4527_v2 = vpack.c.bf16 %v810_v57, %v794_v56 }
  0xf6   : > { %4299 = vmatmul.mubr.msk.f32.gmra.mrb[28].mxu1 %vm846_vm0, %v5271_v48  ;;  %4474 = vmatprep.subr.bf16.mxu0 %v4473_v12  ;;  %v4535_v12 = vpack.c.bf16 %v684_v4, %v668_v3  ;;  %v829_v3 = vld [vmem:[%s5164_s24 + $0x578] sm:$0xff] }
  0xf7   : > { %1376 = vmatprep.mubr.f32.mxu1 %v4661_v0  ;;  %4496 = vmatpush1.bf16.msra.mxu1 %v4495_v15  ;;  %v4537_v15 = vpack.c.bf16 %v717_v7, %v701_v6  ;;  %v845_v4 = vld [vmem:[%s5164_s24 + $0x5f8] sm:$0xff]  ;;  %v826_v6 = vld [vmem:[%s5164_s24 + $0x560] sm:$0xff] }
  0xf8   : > { %4288 = vmatmul.mubr.msk.f32.gmra.mrb[30].mxu0 %vm846_vm0, %v5290_v61  ;;  %4498 = vmatprep.subr.bf16.mxu1 %v4497_v18  ;;  %v4515_v18 = vpack.c.bf16 %v714_v10, %v698_v9  ;;  %v842_v7 = vld [vmem:[%s5164_s24 + $0x5e0] sm:$0xff]  ;;  %v4553_v9 = vpack.c.bf16 %v845_v4, %v829_v3  ;;  %v828_v10 = vld [vmem:[%s5164_s24 + $0x570] sm:$0xff] }
  0xf9   : > { %1245 = vmatprep.mubr.f32.mxu0 %v4661_v0  ;;  %4476 = vmatpush1.bf16.msra.mxu0 %v4475_v21  ;;  %v4517_v21 = vpack.c.bf16 %v747_v14, %v731_v13  ;;  %v4531_v13 = vpack.c.bf16 %v842_v7, %v826_v6 }
  0xfa   : > { %4300 = vmatmul.mubr.msk.f32.gmra.mrb[30].mxu1 %vm846_vm0, %v5290_v61  ;;  %4478 = vmatprep.subr.bf16.mxu0 %v4477_v26  ;;  %v4539_v26 = vpack.c.bf16 %v716_v17, %v700_v16 }
  0xfb   : > { %1382 = vmatprep.mubr.f32.mxu1 %v4661_v0  ;;  %4500 = vmatpush1.bf16.msra.mxu1 %v4499_v29  ;;  %v4541_v29 = vpack.c.bf16 %v749_v20, %v733_v19 }
  0xfc   : > { %4289 = vmatmul.mubr.msk.f32.gmra.mrb[32].mxu0 %vm846_vm0, %v5309_v11  ;;  %4502 = vmatprep.subr.bf16.mxu1 %v4501_v39  ;;  %v4519_v39 = vpack.c.bf16 %v746_v24, %v730_v23 }
  0xfd   : > { %1251 = vmatprep.mubr.f32.mxu0 %v4661_v0  ;;  %4480 = vmatpush1.bf16.msra.mxu0 %v4479_v42  ;;  %v4521_v42 = vpack.c.bf16 %v779_v28, %v763_v27 }
  0xfe   : > { %4301 = vmatmul.mubr.msk.f32.gmra.mrb[32].mxu1 %vm846_vm0, %v5309_v11  ;;  %4482 = vmatprep.subr.bf16.mxu0 %v4481_v45  ;;  %v4543_v45 = vpack.c.bf16 %v748_v31, %v732_v30 }
  0xff   : > { %1388 = vmatprep.mubr.f32.mxu1 %v4661_v0  ;;  %4504 = vmatpush1.bf16.msra.mxu1 %v4503_v49  ;;  %v4545_v49 = vpack.c.bf16 %v781_v41, %v765_v40 }
 0x100   : > { %4290 = vmatmul.mubr.msk.f32.gmra.mrb[34].mxu0 %vm846_vm0, %v5328_v25  ;;  %4506 = vmatprep.subr.bf16.mxu1 %v4505_v52  ;;  %v4523_v52 = vpack.c.bf16 %v778_v44, %v762_v43 }
 0x101   : > { %1257 = vmatprep.mubr.f32.mxu0 %v4661_v0  ;;  %4484 = vmatpush1.bf16.msra.mxu0 %v4483_v55  ;;  %v4525_v55 = vpack.c.bf16 %v811_v47, %v795_v46 }
 0x102   : > { %4302 = vmatmul.mubr.msk.f32.gmra.mrb[34].mxu1 %vm846_vm0, %v5328_v25  ;;  %4510 = vmatprep.subr.bf16.mxu0 %v4509_v58  ;;  %v4547_v58 = vpack.c.bf16 %v780_v51, %v764_v50 }
 0x103   : > { %1394 = vmatprep.mubr.f32.mxu1 %v4661_v0  ;;  %4508 = vmatpush1.bf16.msra.mxu1 %v4507_v59  ;;  %v827_v59 = vld [vmem:[%s5164_s24 + $0x568] sm:$0xff] }
 0x104   : > { %4291 = vmatmul.mubr.msk.f32.gmra.mrb[36].mxu0 %vm846_vm0, %v5341_v32  ;;  %4534 = vmatprep.subr.bf16.mxu1 %v4533_v60  ;;  %v843_v60 = vld [vmem:[%s5164_s24 + $0x5e8] sm:$0xff] }
 0x105   : > { %1263 = vmatprep.mubr.f32.mxu0 %v4661_v0 }
 0x106   : > { %4303 = vmatmul.mubr.msk.f32.gmra.mrb[36].mxu1 %vm846_vm0, %v5341_v32 }
 0x107   : > { %1400 = vmatprep.mubr.f32.mxu1 %v4661_v0 }
 0x108   : > { %4292 = vmatmul.mubr.msk.f32.gmra.mrb[38].mxu0 %vm846_vm0, %v5352_v33 }
 0x109   : > { %1269 = vmatprep.mubr.f32.mxu0 %v4661_v0 }
 0x10a   : > { %4304 = vmatmul.mubr.msk.f32.gmra.mrb[38].mxu1 %vm846_vm0, %v5352_v33 }
 0x10b   : > { %1406 = vmatprep.mubr.f32.mxu1 %v4661_v0 }
 0x10c   : > { %4293 = vmatmul.mubr.msk.f32.gmra.mrb[40].mxu0 %vm846_vm0, %v5363_v34 }
 0x10d   : > { %1275 = vmatprep.mubr.f32.mxu0 %v4661_v0 }
 0x10e   : > { %4305 = vmatmul.mubr.msk.f32.gmra.mrb[40].mxu1 %vm846_vm0, %v5363_v34 }
 0x10f   : > { %1412 = vmatprep.mubr.f32.mxu1 %v4661_v0 }
 0x110   : > { %4294 = vmatmul.mubr.msk.f32.gmra.mrb[42].mxu0 %vm846_vm0, %v5374_v36 }
 0x111   : > { %1281 = vmatprep.mubr.f32.mxu0 %v4661_v0 }
 0x112   : > { %4306 = vmatmul.mubr.msk.f32.gmra.mrb[42].mxu1 %vm846_vm0, %v5374_v36 }
 0x113   : > { %1418 = vmatprep.mubr.f32.mxu1 %v4661_v0 }
 0x114   : > { %4295 = vmatmul.mubr.msk.f32.gmra.mrb[44].mxu0 %vm846_vm0, %v5385_v37 }
 0x115   : > { %1287 = vmatprep.mubr.f32.mxu0 %v4661_v0 }
 0x116   : > { %4307 = vmatmul.mubr.msk.f32.gmra.mrb[44].mxu1 %vm846_vm0, %v5385_v37 }
 0x117   : > { %1424 = vmatprep.mubr.f32.mxu1 %v4661_v0 }
 0x118   : > { %4296 = vmatmul.mubr.msk.f32.gmra.mrb[46].mxu0 %vm846_vm0, %v5396_v38 }
 0x119   : > { %1495 = vmatprep.mubr.f32.mxu0 %v4661_v0 }
 0x11a   : > { %4308 = vmatmul.mubr.msk.f32.gmra.mrb[46].mxu1 %vm846_vm0, %v5396_v38 }
 0x11b   : > { %1632 = vmatprep.mubr.f32.mxu1 %v4661_v0 }
 0x11c   : > { %4309 = vmatmul.mubr.msk.f32.vlgmr.msra.gmra.mrb[48].mxu0 %vm846_vm0, %v5236_v22 }
 0x11d   : > { %4512 = vmatpush1.bf16.msra.mxu0 %v4511_v5  ;;  %1501 = vmatprep.mubr.f32.mxu0 %v4661_v0  ;;  %v4529_v5 = vpack.c.bf16 %v843_v60, %v827_v59 }
 0x11e   : > { %4321 = vmatmul.mubr.msk.f32.vlgmr.msra.gmra.mrb[48].mxu1 %vm846_vm0, %v5236_v22  ;;  %4514 = vmatprep.subr.bf16.mxu0 %v4513_v8  ;;  %v4551_v8 = vpack.c.bf16 %v812_v1, %v796_v63 }
 0x11f   : > { %4536 = vmatpush1.bf16.msra.mxu1 %v4535_v12  ;;  %1638 = vmatprep.mubr.f32.mxu1 %v4661_v0  ;;  %v844_v12 = vld [vmem:[%s5164_s24 + $0x5f0] sm:$0xff]  ;;  %s5763_s24 = scalar_lea.vmem [#allocation5], %s4558_s11  ;;  %s4559_s11 = smul.u32 96, %s5158_s10 }
 0x120   : > { %4310 = vmatmul.mubr.msk.f32.gmra.mrb[50].mxu0 %vm846_vm0, %v5252_v35  ;;  %4538 = vmatprep.subr.bf16.mxu1 %v4537_v15  ;;  %v4555_v14 = vpack.c.bf16 %v844_v12, %v828_v10  ;;  %s4364_s10 = sshll.u32 (%p7919_p7), %s4706_s19, 7 }
 0x121   : > { %1507 = vmatprep.mubr.f32.mxu0 %v4661_v0  ;;  %4516 = vmatpush1.bf16.msra.mxu0 %v4515_v18  ;;  %s7253_s6 = scalar_lea.vmem (%p7919_p7), %s7670_s3, %s4364_s10 }
 0x122   : > { %4322 = vmatmul.mubr.msk.f32.gmra.mrb[50].mxu1 %vm846_vm0, %v5252_v35  ;;  %4518 = vmatprep.subr.bf16.mxu0 %v4517_v21 }
 0x123   : > { %1644 = vmatprep.mubr.f32.mxu1 %v4661_v0  ;;  %4540 = vmatpush1.bf16.msra.mxu1 %v4539_v26 }
 0x124   : > { %4311 = vmatmul.mubr.msk.f32.gmra.mrb[52].mxu0 %vm846_vm0, %v5271_v48  ;;  %4542 = vmatprep.subr.bf16.mxu1 %v4541_v29 }
 0x125   : > { %1513 = vmatprep.mubr.f32.mxu0 %v4661_v0  ;;  %4520 = vmatpush1.bf16.msra.mxu0 %v4519_v39 }
 0x126   : > { %4323 = vmatmul.mubr.msk.f32.gmra.mrb[52].mxu1 %vm846_vm0, %v5271_v48  ;;  %4522 = vmatprep.subr.bf16.mxu0 %v4521_v42 }
 0x127   : > { %1650 = vmatprep.mubr.f32.mxu1 %v4661_v0  ;;  %4544 = vmatpush1.bf16.msra.mxu1 %v4543_v45 }
 0x128   : > { %4312 = vmatmul.mubr.msk.f32.gmra.mrb[54].mxu0 %vm846_vm0, %v5290_v61  ;;  %4546 = vmatprep.subr.bf16.mxu1 %v4545_v49 }
 0x129   : > { %1519 = vmatprep.mubr.f32.mxu0 %v4661_v0  ;;  %4524 = vmatpush1.bf16.msra.mxu0 %v4523_v52 }
 0x12a   : > { %4324 = vmatmul.mubr.msk.f32.gmra.mrb[54].mxu1 %vm846_vm0, %v5290_v61  ;;  %4526 = vmatprep.subr.bf16.mxu0 %v4525_v55 }
 0x12b   : > { %1656 = vmatprep.mubr.f32.mxu1 %v4661_v0  ;;  %4548 = vmatpush1.bf16.msra.mxu1 %v4547_v58 }
 0x12c   : > { %4313 = vmatmul.mubr.msk.f32.gmra.mrb[56].mxu0 %vm846_vm0, %v5309_v11  ;;  %4550 = vmatprep.subr.bf16.mxu1 %v4549_v62 }
 0x12d   : > { %1525 = vmatprep.mubr.f32.mxu0 %v4661_v0  ;;  %4528 = vmatpush1.bf16.msra.mxu0 %v4527_v2 }
 0x12e   : > { %4325 = vmatmul.mubr.msk.f32.gmra.mrb[56].mxu1 %vm846_vm0, %v5309_v11  ;;  %4530 = vmatprep.subr.bf16.mxu0 %v4529_v5 }
 0x12f   : > { %1662 = vmatprep.mubr.f32.mxu1 %v4661_v0  ;;  %4552 = vmatpush1.bf16.msra.mxu1 %v4551_v8 }
 0x130   : > { %4314 = vmatmul.mubr.msk.f32.gmra.mrb[58].mxu0 %vm846_vm0, %v5328_v25  ;;  %4554 = vmatprep.subr.bf16.mxu1 %v4553_v9 }
 0x131   : > { %1531 = vmatprep.mubr.f32.mxu0 %v4661_v0  ;;  %4532 = vmatpush1.bf16.msra.mxu0 %v4531_v13 }
 0x132   : > { %4326 = vmatmul.mubr.msk.f32.gmra.mrb[58].mxu1 %vm846_vm0, %v5328_v25 }
 0x133   : > { %1668 = vmatprep.mubr.f32.mxu1 %v4661_v0  ;;  %4556 = vmatpush1.bf16.msra.mxu1 %v4555_v14 }
 0x134   : > { %4315 = vmatmul.mubr.msk.f32.gmra.mrb[60].mxu0 %vm846_vm0, %v5341_v32 }
 0x135   : > { %1537 = vmatprep.mubr.f32.mxu0 %v4661_v0 }
 0x136   : > { %4327 = vmatmul.mubr.msk.f32.gmra.mrb[60].mxu1 %vm846_vm0, %v5341_v32 }
 0x137   : > { %1674 = vmatprep.mubr.f32.mxu1 %v4661_v0 }
 0x138   : > { %4316 = vmatmul.mubr.msk.f32.gmra.mrb[62].mxu0 %vm846_vm0, %v5352_v33 }
 0x139   : > { %1543 = vmatprep.mubr.f32.mxu0 %v4661_v0 }
 0x13a   : > { %4328 = vmatmul.mubr.msk.f32.gmra.mrb[62].mxu1 %vm846_vm0, %v5352_v33 }
 0x13b   : > { %1680 = vmatprep.mubr.f32.mxu1 %v4661_v0 }
 0x13c   : > { %4317 = vmatmul.mubr.msk.f32.gmra.mrb[64].mxu0 %vm846_vm0, %v5363_v34 }
 0x13d   : > { %1549 = vmatprep.mubr.f32.mxu0 %v4661_v0 }
 0x13e   : > { %4329 = vmatmul.mubr.msk.f32.gmra.mrb[64].mxu1 %vm846_vm0, %v5363_v34 }
 0x13f   : > { %1686 = vmatprep.mubr.f32.mxu1 %v4661_v0 }
 0x140   : > { %4318 = vmatmul.mubr.msk.f32.gmra.mrb[66].mxu0 %vm846_vm0, %v5374_v36 }
 0x141   : > { %1555 = vmatprep.mubr.f32.mxu0 %v4661_v0 }
 0x142   : > { %4330 = vmatmul.mubr.msk.f32.gmra.mrb[66].mxu1 %vm846_vm0, %v5374_v36 }
 0x143   : > { %1692 = vmatprep.mubr.f32.mxu1 %v4661_v0 }
 0x144   : > { %4319 = vmatmul.mubr.msk.f32.gmra.mrb[68].mxu0 %vm846_vm0, %v5385_v37 }
 0x145   : > { %1561 = vmatprep.mubr.f32.mxu0 %v4661_v0 }
 0x146   : > { %4331 = vmatmul.mubr.msk.f32.gmra.mrb[68].mxu1 %vm846_vm0, %v5385_v37 }
 0x147   : > { %1698 = vmatprep.mubr.f32.mxu1 %v4661_v0 }
 0x148   : > { %4320 = vmatmul.mubr.msk.f32.gmra.mrb[70].mxu0 %vm846_vm0, %v5396_v38 }
 0x149   : > { %1769 = vmatprep.mubr.f32.mxu0 %v4661_v0 }
 0x14a   : > { %4332 = vmatmul.mubr.msk.f32.gmra.mrb[70].mxu1 %vm846_vm0, %v5396_v38 }
 0x14b   : > { %1906 = vmatprep.mubr.f32.mxu1 %v4661_v0 }
 0x14c   : > { %4333 = vmatmul.mubr.msk.f32.vlgmr.msra.gmra.mrb[72].mxu0 %vm846_vm0, %v5236_v22 }
 0x14d   : > { %1775 = vmatprep.mubr.f32.mxu0 %v4661_v0 }
 0x14e   : > { %4345 = vmatmul.mubr.msk.f32.vlgmr.msra.gmra.mrb[72].mxu1 %vm846_vm0, %v5236_v22  ;;  %v2751_v22 = vlaneseq }
 0x14f   : > { %1912 = vmatprep.mubr.f32.mxu1 %v4661_v0 }
 0x150   : > { %4334 = vmatmul.mubr.msk.f32.gmra.mrb[74].mxu0 %vm846_vm0, %v5252_v35 }
 0x151   : > { %1781 = vmatprep.mubr.f32.mxu0 %v4661_v0 }
 0x152   : > { %4346 = vmatmul.mubr.msk.f32.gmra.mrb[74].mxu1 %vm846_vm0, %v5252_v35  ;;  %v5713_v35 = vshrl.u32 %v2751_v22, 7 }
 0x153   : > { %1918 = vmatprep.mubr.f32.mxu1 %v4661_v0 }
 0x154   : > { %4335 = vmatmul.mubr.msk.f32.gmra.mrb[76].mxu0 %vm846_vm0, %v5271_v48  ;;  %7687 = vst [vmem:[#allocation8_spill] sm:$0xff] %v5713_v35  ;;  %v7673_v47 = vsub.s32 7, %v5713_v35 }
 0x155   : > { %1787 = vmatprep.mubr.f32.mxu0 %v4661_v0 }
 0x156   : > { %4347 = vmatmul.mubr.msk.f32.gmra.mrb[76].mxu1 %vm846_vm0, %v5271_v48  ;;  %v7680_v48 = vsub.s32 0, %v5713_v35 }
 0x157   : > { %1924 = vmatprep.mubr.f32.mxu1 %v4661_v0 }
 0x158   : > { %4336 = vmatmul.mubr.msk.f32.gmra.mrb[78].mxu0 %vm846_vm0, %v5290_v61 }
 0x159   : > { %1793 = vmatprep.mubr.f32.mxu0 %v4661_v0 }
 0x15a   : > { %4348 = vmatmul.mubr.msk.f32.gmra.mrb[78].mxu1 %vm846_vm0, %v5290_v61  ;;  %v7679_v61 = vsub.s32 1, %v5713_v35 }
 0x15b   : > { %1930 = vmatprep.mubr.f32.mxu1 %v4661_v0 }
 0x15c   : > { %4337 = vmatmul.mubr.msk.f32.gmra.mrb[80].mxu0 %vm846_vm0, %v5309_v11 }
 0x15d   : > { %1799 = vmatprep.mubr.f32.mxu0 %v4661_v0 }
 0x15e   : > { %4349 = vmatmul.mubr.msk.f32.gmra.mrb[80].mxu1 %vm846_vm0, %v5309_v11  ;;  %v5718_v11 = vld [vmem:[%s5167_s14] sm:$0xff] }
 0x15f   : > { %1936 = vmatprep.mubr.f32.mxu1 %v4661_v0  ;;  %v5728_v15 = vrot.slane %v5718_v11, %v7680_v48  ;;  %v5733_v17 = vrot.slane %v5718_v11, %v7679_v61 }
 0x160   : > { %4338 = vmatmul.mubr.msk.f32.gmra.mrb[82].mxu0 %vm846_vm0, %v5328_v25 }
 0x161   : > { %1805 = vmatprep.mubr.f32.mxu0 %v4661_v0 }
 0x162   : > { %4350 = vmatmul.mubr.msk.f32.gmra.mrb[82].mxu1 %vm846_vm0, %v5328_v25  ;;  %v7678_v25 = vsub.s32 2, %v5713_v35 }
 0x163   : > { %1942 = vmatprep.mubr.f32.mxu1 %v4661_v0 }
 0x164   : > { %4339 = vmatmul.mubr.msk.f32.gmra.mrb[84].mxu0 %vm846_vm0, %v5341_v32  ;;  %v5738_v21 = vrot.slane %v5718_v11, %v7678_v25 }
 0x165   : > { %1811 = vmatprep.mubr.f32.mxu0 %v4661_v0 }
 0x166   : > { %4351 = vmatmul.mubr.msk.f32.gmra.mrb[84].mxu1 %vm846_vm0, %v5341_v32  ;;  %v7677_v32 = vsub.s32 3, %v5713_v35 }
 0x167   : > { %1948 = vmatprep.mubr.f32.mxu1 %v4661_v0 }
 0x168   : > { %4340 = vmatmul.mubr.msk.f32.gmra.mrb[86].mxu0 %vm846_vm0, %v5352_v33  ;;  %v5743_v24 = vrot.slane %v5718_v11, %v7677_v32 }
 0x169   : > { %1817 = vmatprep.mubr.f32.mxu0 %v4661_v0 }
 0x16a   : > { %4352 = vmatmul.mubr.msk.f32.gmra.mrb[86].mxu1 %vm846_vm0, %v5352_v33  ;;  %v7676_v33 = vsub.s32 4, %v5713_v35 }
 0x16b   : > { %1954 = vmatprep.mubr.f32.mxu1 %v4661_v0 }
 0x16c   : > { %4341 = vmatmul.mubr.msk.f32.gmra.mrb[88].mxu0 %vm846_vm0, %v5363_v34  ;;  %v5748_v29 = vrot.slane %v5718_v11, %v7676_v33 }
 0x16d   : > { %1823 = vmatprep.mubr.f32.mxu0 %v4661_v0 }
 0x16e   : > { %4353 = vmatmul.mubr.msk.f32.gmra.mrb[88].mxu1 %vm846_vm0, %v5363_v34  ;;  %v7675_v34 = vsub.s32 5, %v5713_v35 }
 0x16f   : > { %1960 = vmatprep.mubr.f32.mxu1 %v4661_v0 }
 0x170   : > { %4342 = vmatmul.mubr.msk.f32.gmra.mrb[90].mxu0 %vm846_vm0, %v5374_v36  ;;  %v5753_v30 = vrot.slane %v5718_v11, %v7675_v34 }
 0x171   : > { %1829 = vmatprep.mubr.f32.mxu0 %v4661_v0 }
 0x172   : > { %4354 = vmatmul.mubr.msk.f32.gmra.mrb[90].mxu1 %vm846_vm0, %v5374_v36 }
 0x173   : > { %1966 = vmatprep.mubr.f32.mxu1 %v4661_v0 }
 0x174   : > { %4343 = vmatmul.mubr.msk.f32.gmra.mrb[92].mxu0 %vm846_vm0, %v5385_v37 }
 0x175   : > { %1835 = vmatprep.mubr.f32.mxu0 %v4661_v0 }
 0x176   : > { %4355 = vmatmul.mubr.msk.f32.gmra.mrb[92].mxu1 %vm846_vm0, %v5385_v37 }
 0x177   : > { %1972 = vmatprep.mubr.f32.mxu1 %v4661_v0 }
 0x178   : > { %4344 = vmatmul.mubr.msk.f32.gmra.mrb[94].mxu0 %vm846_vm0, %v5396_v38 }
 0x17a   : > { %4356 = vmatmul.mubr.msk.f32.gmra.mrb[94].mxu1 %vm846_vm0, %v5396_v38  ;;  %v7674_v38 = vsub.s32 6, %v5713_v35 }
 0x17c   : > { %v5758_v42 = vrot.slane %v5718_v11, %v7674_v38 }
 0x18f   : > { %v949_v0 = vpop.f32.mrb[0].mxu0 }
 0x190   : > { %v950_v36 = vadd.f32 3.0, %v949_v0  ;;  %v951_v37 = vpop.f32.mrb[1].mxu0 }
 0x191   : > { %v952_v16 = vadd.f32 3.0, %v951_v37  ;;  %v1086_v18 = vpop.f32.mrb[0].mxu1 }
 0x192   : > { %v1979_v19 = vmax.f32 %v950_v36, 0.0  ;;  %v1087_v20 = vadd.f32 3.0, %v1086_v18  ;;  %v1088_v23 = vpop.f32.mrb[1].mxu1 }
 0x193   : > { %v1980_v26 = vmax.f32 %v952_v16, 0.0  ;;  %v955_v27 = vpop.f32.mrb[2].mxu0  ;;  %v1089_v28 = vadd.f32 3.0, %v1088_v23 }
 0x194   : > { %v2171_v31 = vmin.f32 %v1979_v19, 6.0  ;;  %v1981_v39 = vmax.f32 %v1087_v20, 0.0  ;;  %v956_v40 = vadd.f32 3.0, %v955_v27  ;;  %v957_v41 = vpop.f32.mrb[3].mxu0 }
 0x195   : > { %v2172_v43 = vmin.f32 %v1980_v26, 6.0  ;;  %v958_v44 = vadd.f32 3.0, %v957_v41  ;;  %v1982_v45 = vmax.f32 %v1089_v28, 0.0  ;;  %v1092_v46 = vpop.f32.mrb[2].mxu1 }
 0x196   : > { %v2363_v49 = vmul.f32 0.16666667, %v2171_v31  ;;  %v2173_v50 = vmin.f32 %v1981_v39, 6.0  ;;  %v1995_v51 = vmax.f32 %v956_v40, 0.0  ;;  %v1093_v52 = vadd.f32 3.0, %v1092_v46  ;;  %v1094_v53 = vpop.f32.mrb[3].mxu1 }
 0x197   : > { %v2364_v54 = vmul.f32 0.16666667, %v2172_v43  ;;  %v1996_v55 = vmax.f32 %v958_v44, 0.0  ;;  %v2174_v56 = vmin.f32 %v1982_v45, 6.0  ;;  %v961_v57 = vpop.f32.mrb[4].mxu0  ;;  %v1095_v58 = vadd.f32 3.0, %v1094_v53 }
 0x198   : > { %2555 = vst [vmem:[%s5763_s24] sm:$0xff] %v2363_v49  ;;  %v2831_v59 = vmul.f32 %v5728_v15, %v2363_v49  ;;  %v2365_v60 = vmul.f32 0.16666667, %v2173_v50  ;;  %v2187_v62 = vmin.f32 %v1995_v51, 6.0  ;;  %v1997_v63 = vmax.f32 %v1093_v52, 0.0  ;;  %v963_v1 = vpop.f32.mrb[5].mxu0 }
 0x199   : > { %2556 = vst [vmem:[%s5763_s24 + $0x8] sm:$0xff] %v2364_v54  ;;  %v2832_v2 = vmul.f32 %v5733_v17, %v2364_v54  ;;  %v2188_v3 = vmin.f32 %v1996_v55, 6.0  ;;  %v2366_v4 = vmul.f32 0.16666667, %v2174_v56  ;;  %v962_v5 = vadd.f32 3.0, %v961_v57  ;;  %v1098_v6 = vpop.f32.mrb[4].mxu1 }
 0x19a   : > { %v3240_v7 = vmul.f32 %v2831_v59, %v2831_v59  ;;  %2557 = vst [vmem:[%s5763_s24 + $0x10] sm:$0xff] %v2365_v60  ;;  %v2833_v8 = vmul.f32 %v5738_v21, %v2365_v60  ;;  %v2379_v9 = vmul.f32 0.16666667, %v2187_v62  ;;  %v2189_v10 = vmin.f32 %v1997_v63, 6.0  ;;  %v1100_v12 = vpop.f32.mrb[5].mxu1 }
 0x19b   : > { %v3023_v13 = vadd.f32 %v2832_v2, %v2831_v59  ;;  %v3241_v14 = vmul.f32 %v2832_v2, %v2832_v2  ;;  %v2380_v22 = vmul.f32 0.16666667, %v2188_v3  ;;  %2558 = vst [vmem:[%s5763_s24 + $0x18] sm:$0xff] %v2366_v4  ;;  %v2834_v0 = vmul.f32 %v5743_v24, %v2366_v4  ;;  %v967_v36 = vpop.f32.mrb[6].mxu0 }
 0x19c   : > { %v3242_v37 = vmul.f32 %v2833_v8, %v2833_v8  ;;  %2571 = vst [vmem:[%s5763_s24 + $0x80] sm:$0xff] %v2379_v9  ;;  %v2847_v16 = vmul.f32 %v5728_v15, %v2379_v9  ;;  %v2381_v18 = vmul.f32 0.16666667, %v2189_v10  ;;  %v2011_v19 = vmax.f32 %v962_v5, 0.0  ;;  %v969_v20 = vpop.f32.mrb[7].mxu0 }
 0x19d   : > { %v3432_v23 = vadd.f32 %v3241_v14, %v3240_v7  ;;  %v3024_v26 = vadd.f32 %v3023_v13, %v2833_v8  ;;  %2572 = vst [vmem:[%s5763_s24 + $0x88] sm:$0xff] %v2380_v22  ;;  %v2848_v27 = vmul.f32 %v5733_v17, %v2380_v22  ;;  %v3243_v28 = vmul.f32 %v2834_v0, %v2834_v0  ;;  %v1104_v31 = vpop.f32.mrb[6].mxu1 }
 0x19e   : > { %v3256_v39 = vmul.f32 %v2847_v16, %v2847_v16  ;;  %2573 = vst [vmem:[%s5763_s24 + $0x90] sm:$0xff] %v2381_v18  ;;  %v2849_v40 = vmul.f32 %v5738_v21, %v2381_v18  ;;  %v2203_v41 = vmin.f32 %v2011_v19, 6.0  ;;  %v964_v43 = vadd.f32 3.0, %v963_v1  ;;  %v5779_v44 = vpop.f32.mrb[7].mxu1 }
 0x19f   : > { %v3433_v45 = vadd.f32 %v3432_v23, %v3242_v37  ;;  %v3040_v46 = vadd.f32 %v2848_v27, %v2847_v16  ;;  %v3257_v49 = vmul.f32 %v2848_v27, %v2848_v27  ;;  %v5781_v50 = vadd.f32 %v3024_v26, %v2834_v0  ;;  %v973_v51 = vpop.f32.mrb[8].mxu0 }
 0x1a0   : > { %v3258_v52 = vmul.f32 %v2849_v40, %v2849_v40  ;;  %v2395_v53 = vmul.f32 0.16666667, %v2203_v41  ;;  %v2012_v54 = vmax.f32 %v964_v43, 0.0  ;;  %v1998_v55 = vmax.f32 %v1095_v58, 0.0  ;;  %v5783_v56 = vpop.f32.mrb[9].mxu0 }
 0x1a1   : > { %v3449_v57 = vadd.f32 %v3257_v49, %v3256_v39  ;;  %v5785_v59 = vadd.f32 %v3433_v45, %v3243_v28  ;;  %v3041_v60 = vadd.f32 %v3040_v46, %v2849_v40  ;;  %v1099_v62 = vadd.f32 3.0, %v1098_v6  ;;  %v5787_v63 = vpop.f32.mrb[8].mxu1 }
 0x1a2   : > { %2587 = vst [vmem:[%s5763_s24 + $0x100] sm:$0xff] %v2395_v53  ;;  %v2863_v1 = vmul.f32 %v5728_v15, %v2395_v53  ;;  %v2204_v2 = vmin.f32 %v2012_v54, 6.0  ;;  %v2190_v3 = vmin.f32 %v1998_v55, 6.0  ;;  %v968_v4 = vadd.f32 3.0, %v967_v36  ;;  %v5791_v5 = vpop.f32.mrb[9].mxu1 }
 0x1a3   : > { %v3450_v7 = vadd.f32 %v3449_v57, %v3258_v52  ;;  %v2013_v58 = vmax.f32 %v1099_v62, 0.0  ;;  %v970_v8 = vadd.f32 3.0, %v969_v20  ;;  %v1101_v9 = vadd.f32 3.0, %v1100_v12  ;;  %v5793_v10 = vpop.f32.mrb[10].mxu0 }
 0x1a4   : > { %v3272_v13 = vmul.f32 %v2863_v1, %v2863_v1  ;;  %v2396_v6 = vmul.f32 0.16666667, %v2204_v2  ;;  %v2382_v14 = vmul.f32 0.16666667, %v2190_v3  ;;  %v2027_v22 = vmax.f32 %v968_v4, 0.0  ;;  %v5795_v0 = vpop.f32.mrb[11].mxu0 }
 0x1a5   : > { %v2205_v37 = vmin.f32 %v2013_v58, 6.0  ;;  %v2028_v16 = vmax.f32 %v970_v8, 0.0  ;;  %v2014_v18 = vmax.f32 %v1101_v9, 0.0  ;;  %v1105_v36 = vadd.f32 3.0, %v1104_v31  ;;  %v5797_v19 = vpop.f32.mrb[10].mxu1 }
 0x1a6   : > { %2588 = vst [vmem:[%s5763_s24 + $0x108] sm:$0xff] %v2396_v6  ;;  %v2864_v23 = vmul.f32 %v5733_v17, %v2396_v6  ;;  %2574 = vst [vmem:[%s5763_s24 + $0x98] sm:$0xff] %v2382_v14  ;;  %v2850_v12 = vmul.f32 %v5743_v24, %v2382_v14  ;;  %v2219_v20 = vmin.f32 %v2027_v22, 6.0  ;;  %v974_v26 = vadd.f32 3.0, %v973_v51  ;;  %v5803_v27 = vpop.f32.mrb[11].mxu1 }
 0x1a7   : > { %v2397_v28 = vmul.f32 0.16666667, %v2205_v37  ;;  %v2220_v39 = vmin.f32 %v2028_v16, 6.0  ;;  %v2206_v40 = vmin.f32 %v2014_v18, 6.0  ;;  %v2029_v41 = vmax.f32 %v1105_v36, 0.0  ;;  %v5805_v43 = vpop.f32.mrb[12].mxu0 }
 0x1a8   : > { %v3057_v31 = vadd.f32 %v2864_v23, %v2863_v1  ;;  %v3273_v45 = vmul.f32 %v2864_v23, %v2864_v23  ;;  %v5807_v46 = vadd.f32 %v3041_v60, %v2850_v12  ;;  %v3259_v49 = vmul.f32 %v2850_v12, %v2850_v12  ;;  %v5809_v52 = vpop.f32.mrb[13].mxu0 }
 0x1a9   : > { %2589 = vst [vmem:[%s5763_s24 + $0x110] sm:$0xff] %v2397_v28  ;;  %v2865_v51 = vmul.f32 %v5738_v21, %v2397_v28  ;;  %v2411_v53 = vmul.f32 0.16666667, %v2219_v20  ;;  %v2412_v54 = vmul.f32 0.16666667, %v2220_v39  ;;  %v2221_v2 = vmin.f32 %v2029_v41, 6.0 }
 0x1aa   : > { %v2398_v55 = vmul.f32 0.16666667, %v2206_v40  ;;  %v3466_v57 = vadd.f32 %v3273_v45, %v3272_v13  ;;  %v5813_v62 = vadd.f32 %v3450_v7, %v3259_v49  ;;  %v2043_v1 = vmax.f32 %v974_v26, 0.0  ;;  %v5815_v3 = vpop.f32.mrb[12].mxu1 }
 0x1ab   : > { %v3058_v60 = vadd.f32 %v3057_v31, %v2865_v51  ;;  %v3274_v4 = vmul.f32 %v2865_v51, %v2865_v51  ;;  %2603 = vst [vmem:[%s5763_s24 + $0x180] sm:$0xff] %v2411_v53  ;;  %v2879_v58 = vmul.f32 %v5728_v15, %v2411_v53  ;;  %2604 = vst [vmem:[%s5763_s24 + $0x188] sm:$0xff] %v2412_v54  ;;  %v5822_v9 = vpop.f32.mrb[14].mxu0  ;;  %v5824_v6 = vpop.f32.mrb[13].mxu1  ;;  %v2413_v13 = vmul.f32 0.16666667, %v2221_v2 }
 0x1ac   : > { %v2880_v8 = vmul.f32 %v5733_v17, %v2412_v54  ;;  %2590 = vst [vmem:[%s5763_s24 + $0x118] sm:$0xff] %v2398_v55  ;;  %v2866_v7 = vmul.f32 %v5743_v24, %v2398_v55  ;;  %v2235_v14 = vmin.f32 %v2043_v1, 6.0  ;;  %v976_v22 = vadd.f32 3.0, %v5783_v56  ;;  %v5828_v37 = vpop.f32.mrb[15].mxu0 }
 0x1ad   : > { %v3467_v16 = vadd.f32 %v3466_v57, %v3274_v4  ;;  %v3288_v18 = vmul.f32 %v2879_v58, %v2879_v58  ;;  %v5830_v12 = vpop.f32.mrb[14].mxu1  ;;  %2605 = vst [vmem:[%s5763_s24 + $0x190] sm:$0xff] %v2413_v13  ;;  %v2881_v28 = vmul.f32 %v5738_v21, %v2413_v13  ;;  %v1107_v31 = vadd.f32 3.0, %v5779_v44 }
 0x1ae   : > { %v3074_v36 = vadd.f32 %v2880_v8, %v2879_v58  ;;  %v3289_v23 = vmul.f32 %v2880_v8, %v2880_v8  ;;  %v5832_v20 = vadd.f32 %v3058_v60, %v2866_v7  ;;  %v3275_v26 = vmul.f32 %v2866_v7, %v2866_v7  ;;  %v5836_v40 = vpop.f32.mrb[15].mxu1 }
 0x1af   : > { %v2427_v39 = vmul.f32 0.16666667, %v2235_v14  ;;  %v2044_v56 = vmax.f32 %v976_v22, 0.0  ;;  %v1111_v45 = vadd.f32 3.0, %v5787_v63  ;;  %v5840_v49 = vpop.f32.mrb[16].mxu0  ;;  %v3290_v54 = vmul.f32 %v2881_v28, %v2881_v28 }
 0x1b0   : > { %v3483_v41 = vadd.f32 %v3289_v23, %v3288_v18  ;;  %v5842_v51 = vadd.f32 %v3467_v16, %v3275_v26  ;;  %v3075_v53 = vadd.f32 %v3074_v36, %v2881_v28  ;;  %v5846_v57 = vpop.f32.mrb[17].mxu0  ;;  %v2030_v1 = vmax.f32 %v1107_v31, 0.0 }
 0x1b1   : > { %2619 = vst [vmem:[%s5763_s24 + $0x200] sm:$0xff] %v2427_v39  ;;  %v2895_v55 = vmul.f32 %v5728_v15, %v2427_v39  ;;  %v2236_v2 = vmin.f32 %v2044_v56, 6.0  ;;  %v2045_v60 = vmax.f32 %v1111_v45, 0.0  ;;  %v980_v4 = vadd.f32 3.0, %v5793_v10  ;;  %v5849_v58 = vpop.f32.mrb[16].mxu1 }
 0x1b2   : > { %v3484_v44 = vadd.f32 %v3483_v41, %v3290_v54  ;;  %v982_v8 = vadd.f32 3.0, %v5795_v0  ;;  %v1113_v7 = vadd.f32 3.0, %v5791_v5  ;;  %v5853_v13 = vpop.f32.mrb[17].mxu1  ;;  %v2222_v22 = vmin.f32 %v2030_v1, 6.0 }
 0x1b3   : > { %v3304_v63 = vmul.f32 %v2895_v55, %v2895_v55  ;;  %v2428_v14 = vmul.f32 0.16666667, %v2236_v2  ;;  %v2237_v16 = vmin.f32 %v2045_v60, 6.0  ;;  %v2059_v18 = vmax.f32 %v980_v4, 0.0  ;;  %v5855_v36 = vpop.f32.mrb[18].mxu0 }
 0x1b4   : > { %v2060_v23 = vmax.f32 %v982_v8, 0.0  ;;  %v2046_v26 = vmax.f32 %v1113_v7, 0.0  ;;  %v1117_v10 = vadd.f32 3.0, %v5797_v19  ;;  %v986_v28 = vadd.f32 3.0, %v5805_v43  ;;  %v5859_v39 = vpop.f32.mrb[19].mxu0 }
 0x1b5   : > { %2620 = vst [vmem:[%s5763_s24 + $0x208] sm:$0xff] %v2428_v14  ;;  %v2896_v5 = vmul.f32 %v5733_v17, %v2428_v14  ;;  %v2414_v0 = vmul.f32 0.16666667, %v2222_v22  ;;  %v2429_v41 = vmul.f32 0.16666667, %v2237_v16  ;;  %v2251_v56 = vmin.f32 %v2059_v18, 6.0 }
 0x1b6   : > { %v5863_v31 = vpop.f32.mrb[18].mxu1  ;;  %v2252_v45 = vmin.f32 %v2060_v23, 6.0  ;;  %v2238_v54 = vmin.f32 %v2046_v26, 6.0  ;;  %v2061_v2 = vmax.f32 %v1117_v10, 0.0  ;;  %v2075_v1 = vmax.f32 %v986_v28, 0.0 }
 0x1b7   : > { %v5865_v60 = vpop.f32.mrb[19].mxu1  ;;  %v3091_v19 = vadd.f32 %v2896_v5, %v2895_v55  ;;  %v3305_v4 = vmul.f32 %v2896_v5, %v2896_v5  ;;  %2606 = vst [vmem:[%s5763_s24 + $0x198] sm:$0xff] %v2414_v0  ;;  %v2882_v43 = vmul.f32 %v5743_v24, %v2414_v0  ;;  %2621 = vst [vmem:[%s5763_s24 + $0x210] sm:$0xff] %v2429_v41  ;;  %v5871_v7 = vpop.f32.mrb[20].mxu0  ;;  %v2443_v14 = vmul.f32 0.16666667, %v2251_v56 }
 0x1b8   : > { %v2897_v8 = vmul.f32 %v5738_v21, %v2429_v41  ;;  %v2444_v22 = vmul.f32 0.16666667, %v2252_v45  ;;  %v2430_v16 = vmul.f32 0.16666667, %v2238_v54  ;;  %v5876_v18 = vrot.slane %v5718_v11, %v7673_v47  ;;  %v5880_v28 = vpop.f32.mrb[21].mxu0 }
 0x1b9   : > { %v3500_v55 = vadd.f32 %v3305_v4, %v3304_v63  ;;  %v5878_v23 = vadd.f32 %v3075_v53, %v2882_v43  ;;  %v3291_v26 = vmul.f32 %v2882_v43, %v2882_v43  ;;  %v5882_v5 = vpop.f32.mrb[20].mxu1  ;;  %2635 = vst [vmem:[%s5763_s24 + $0x280] sm:$0xff] %v2443_v14  ;;  %v2911_v41 = vmul.f32 %v5728_v15, %v2443_v14 }
 0x1ba   : > { %v3092_v10 = vadd.f32 %v3091_v19, %v2897_v8  ;;  %v3306_v0 = vmul.f32 %v2897_v8, %v2897_v8  ;;  %2636 = vst [vmem:[%s5763_s24 + $0x288] sm:$0xff] %v2444_v22  ;;  %v2912_v56 = vmul.f32 %v5733_v17, %v2444_v22  ;;  %2622 = vst [vmem:[%s5763_s24 + $0x218] sm:$0xff] %v2430_v16  ;;  %v5890_v45 = vpop.f32.mrb[21].mxu1  ;;  %v2253_v63 = vmin.f32 %v2061_v2, 6.0 }
 0x1bb   : > { %7688 = vst [vmem:[#allocation9_spill] sm:$0xff] %v5878_v23  ;;  %v2898_v11 = vmul.f32 %v5743_v24, %v2430_v16  ;;  %v5892_v53 = vadd.f32 %v3484_v44, %v3291_v26  ;;  %v2267_v54 = vmin.f32 %v2075_v1, 6.0  ;;  %v988_v19 = vadd.f32 3.0, %v5809_v52  ;;  %v5895_v4 = vpop.f32.mrb[22].mxu0 }
 0x1bc   : > { %v3501_v43 = vadd.f32 %v3500_v55, %v3306_v0  ;;  %v3320_v8 = vmul.f32 %v2911_v41, %v2911_v41  ;;  %v3108_v14 = vadd.f32 %v2912_v56, %v2911_v41  ;;  %v3321_v47 = vmul.f32 %v2912_v56, %v2912_v56  ;;  %v5897_v22 = vpop.f32.mrb[23].mxu0 }
 0x1bd   : > { %7689 = vst [vmem:[#allocation10_spill] sm:$0xff] %v5892_v53  ;;  %v5899_v38 = vadd.f32 %v3092_v10, %v2898_v11  ;;  %v3307_v16 = vmul.f32 %v2898_v11, %v2898_v11  ;;  %v2445_v34 = vmul.f32 0.16666667, %v2253_v63  ;;  %v2459_v44 = vmul.f32 0.16666667, %v2267_v54  ;;  %v5901_v26 = vpop.f32.mrb[22].mxu1 }
 0x1be   : > { %v3517_v2 = vadd.f32 %v3321_v47, %v3320_v8  ;;  %v2076_v1 = vmax.f32 %v988_v19, 0.0  ;;  %v1119_v52 = vadd.f32 3.0, %v5803_v27  ;;  %v1123_v55 = vadd.f32 3.0, %v5815_v3  ;;  %v5905_v0 = vpop.f32.mrb[23].mxu1 }
 0x1bf   : > { %7690 = vst [vmem:[#allocation11_spill] sm:$0xff] %v5899_v38  ;;  %v5907_v41 = vadd.f32 %v3501_v43, %v3307_v16  ;;  %2637 = vst [vmem:[%s5763_s24 + $0x290] sm:$0xff] %v2445_v34  ;;  %v2913_v56 = vmul.f32 %v5738_v21, %v2445_v34  ;;  %v2927_v10 = vmul.f32 %v5728_v15, %v2459_v44  ;;  %v992_v11 = vadd.f32 3.0, %v5822_v9  ;;  %v5914_v63 = vpop.f32.mrb[24].mxu0 }
 0x1c0   : > { %2651 = vst [vmem:[%s5763_s24 + $0x300] sm:$0xff] %v2459_v44  ;;  %v2268_v47 = vmin.f32 %v2076_v1, 6.0  ;;  %v2062_v54 = vmax.f32 %v1119_v52, 0.0  ;;  %v2077_v19 = vmax.f32 %v1123_v55, 0.0  ;;  %v994_v27 = vadd.f32 3.0, %v5828_v37  ;;  %v5917_v3 = vpop.f32.mrb[25].mxu0 }
 0x1c1   : > { %7691 = vst [vmem:[#allocation12_spill] sm:$0xff] %v5907_v41  ;;  %v3109_v43 = vadd.f32 %v3108_v14, %v2913_v56  ;;  %v3322_v8 = vmul.f32 %v2913_v56, %v2913_v56  ;;  %v3336_v16 = vmul.f32 %v2927_v10, %v2927_v10  ;;  %v2091_v33 = vmax.f32 %v992_v11, 0.0  ;;  %v5919_v34 = vpop.f32.mrb[24].mxu1 }
 0x1c2   : > { %v2460_v32 = vmul.f32 0.16666667, %v2268_v47  ;;  %v2254_v44 = vmin.f32 %v2062_v54, 6.0  ;;  %v2269_v25 = vmin.f32 %v2077_v19, 6.0  ;;  %v2092_v9 = vmax.f32 %v994_v27, 0.0  ;;  %v5921_v61 = vpop.f32.mrb[25].mxu1 }
 0x1c3   : > { %v3518_v1 = vadd.f32 %v3517_v2, %v3322_v8  ;;  %v2283_v52 = vmin.f32 %v2091_v33, 6.0  ;;  %v1125_v55 = vadd.f32 3.0, %v5824_v6  ;;  %v1129_v37 = vadd.f32 3.0, %v5830_v12  ;;  %v5925_v48 = vpop.f32.mrb[26].mxu0 }
 0x1c4   : > { %2652 = vst [vmem:[%s5763_s24 + $0x308] sm:$0xff] %v2460_v32  ;;  %v2928_v14 = vmul.f32 %v5733_v17, %v2460_v32  ;;  %v2446_v56 = vmul.f32 0.16666667, %v2254_v44  ;;  %v2461_v11 = vmul.f32 0.16666667, %v2269_v25  ;;  %v2284_v47 = vmin.f32 %v2092_v9, 6.0 }
 0x1c5   : > { %v5929_v54 = vpop.f32.mrb[27].mxu0  ;;  %v2475_v19 = vmul.f32 0.16666667, %v2283_v52  ;;  %v2078_v2 = vmax.f32 %v1125_v55, 0.0  ;;  %v2093_v33 = vmax.f32 %v1129_v37, 0.0  ;;  %v998_v6 = vadd.f32 3.0, %v5840_v49 }
 0x1c6   : > { %v5932_v27 = vpop.f32.mrb[26].mxu1  ;;  %v3125_v12 = vadd.f32 %v2928_v14, %v2927_v10  ;;  %v3337_v8 = vmul.f32 %v2928_v14, %v2928_v14  ;;  %2638 = vst [vmem:[%s5763_s24 + $0x298] sm:$0xff] %v2446_v56  ;;  %v2914_v35 = vmul.f32 %v5743_v24, %v2446_v56  ;;  %2653 = vst [vmem:[%s5763_s24 + $0x310] sm:$0xff] %v2461_v11  ;;  %v2476_v9 = vmul.f32 0.16666667, %v2284_v47 }
 0x1c7   : > { %v2929_v32 = vmul.f32 %v5738_v21, %v2461_v11  ;;  %v5938_v25 = vpop.f32.mrb[27].mxu1  ;;  %2667 = vst [vmem:[%s5763_s24 + $0x380] sm:$0xff] %v2475_v19  ;;  %v2943_v44 = vmul.f32 %v5728_v15, %v2475_v19  ;;  %v2270_v52 = vmin.f32 %v2078_v2, 6.0  ;;  %v2285_v55 = vmin.f32 %v2093_v33, 6.0  ;;  %v5942_v49 = vpop.f32.mrb[28].mxu0 }
 0x1c8   : > { %v3534_v37 = vadd.f32 %v3337_v8, %v3336_v16  ;;  %v5944_v10 = vadd.f32 %v3109_v43, %v2914_v35  ;;  %v3323_v14 = vmul.f32 %v2914_v35, %v2914_v35  ;;  %v5946_v56 = vpop.f32.mrb[29].mxu0  ;;  %2668 = vst [vmem:[%s5763_s24 + $0x388] sm:$0xff] %v2476_v9  ;;  %v2944_v53 = vmul.f32 %v5733_v17, %v2476_v9 }
 0x1c9   : > { %v3126_v41 = vadd.f32 %v3125_v12, %v2929_v32  ;;  %v3338_v38 = vmul.f32 %v2929_v32, %v2929_v32  ;;  %v3352_v11 = vmul.f32 %v2943_v44, %v2943_v44  ;;  %v2462_v19 = vmul.f32 0.16666667, %v2270_v52  ;;  %v5950_v47 = vpop.f32.mrb[28].mxu1 }
 0x1ca   : > { %7692 = vst [vmem:[#allocation13_spill] sm:$0xff] %v5944_v10  ;;  %v5952_v2 = vadd.f32 %v3518_v1, %v3323_v14  ;;  %v2477_v33 = vmul.f32 0.16666667, %v2285_v55  ;;  %v2107_v16 = vmax.f32 %v998_v6, 0.0  ;;  %v1000_v43 = vadd.f32 3.0, %v5846_v57  ;;  %v5955_v35 = vpop.f32.mrb[29].mxu1 }
 0x1cb   : > { %7694 = vst [vmem:[#allocation15_spill] sm:$0xff] %v5955_v35  ;;  %v3535_v12 = vadd.f32 %v3534_v37, %v3338_v38  ;;  %v3142_v8 = vadd.f32 %v2944_v53, %v2943_v44  ;;  %v3353_v10 = vmul.f32 %v2944_v53, %v2944_v53  ;;  %2654 = vst [vmem:[%s5763_s24 + $0x318] sm:$0xff] %v2462_v19  ;;  %v5959_v23 = vpop.f32.mrb[30].mxu0  ;;  %v1131_v55 = vadd.f32 3.0, %v5836_v40 }
 0x1cc   : > { %7693 = vst [vmem:[#allocation14_spill] sm:$0xff] %v5952_v2  ;;  %v2930_v32 = vmul.f32 %v5743_v24, %v2462_v19  ;;  %2669 = vst [vmem:[%s5763_s24 + $0x390] sm:$0xff] %v2477_v33  ;;  %v2945_v9 = vmul.f32 %v5738_v21, %v2477_v33  ;;  %v2299_v52 = vmin.f32 %v2107_v16, 6.0  ;;  %v2108_v1 = vmax.f32 %v1000_v43, 0.0  ;;  %v5964_v6 = vpop.f32.mrb[31].mxu0 }
 0x1cd   : > { %v3551_v57 = vadd.f32 %v3353_v10, %v3352_v11  ;;  %v1135_v53 = vadd.f32 3.0, %v5849_v58  ;;  %v5969_v44 = vpop.f32.mrb[30].mxu1  ;;  %v2094_v40 = vmax.f32 %v1131_v55, 0.0  ;;  %v1004_v10 = vadd.f32 3.0, %v5855_v36 }
 0x1ce   : > { %v5966_v14 = vadd.f32 %v3126_v41, %v2930_v32  ;;  %v3339_v38 = vmul.f32 %v2930_v32, %v2930_v32  ;;  %v3143_v37 = vadd.f32 %v3142_v8, %v2945_v9  ;;  %v3354_v19 = vmul.f32 %v2945_v9, %v2945_v9  ;;  %v5971_v33 = vpop.f32.mrb[31].mxu1 }
 0x1cf   : > { %v2491_v2 = vmul.f32 0.16666667, %v2299_v52  ;;  %v2300_v35 = vmin.f32 %v2108_v1, 6.0  ;;  %7696 = vst [vmem:[#allocation17_spill] sm:$0xff] %v5971_v33  ;;  %v2109_v43 = vmax.f32 %v1135_v53, 0.0  ;;  %v5976_v41 = vpop.f32.mrb[32].mxu0 }
 0x1d0   : > { %7695 = vst [vmem:[#allocation16_spill] sm:$0xff] %v5966_v14  ;;  %v5973_v16 = vadd.f32 %v3535_v12, %v3339_v38  ;;  %v3552_v11 = vadd.f32 %v3551_v57, %v3354_v19  ;;  %v1006_v8 = vadd.f32 3.0, %v5859_v39  ;;  %v5981_v9 = vpop.f32.mrb[33].mxu0  ;;  %v2286_v52 = vmin.f32 %v2094_v40, 6.0 }
 0x1d1   : > { %2683 = vst [vmem:[%s5763_s24 + $0x400] sm:$0xff] %v2491_v2  ;;  %v2959_v58 = vmul.f32 %v5728_v15, %v2491_v2  ;;  %v2492_v32 = vmul.f32 0.16666667, %v2300_v35  ;;  %v2301_v1 = vmin.f32 %v2109_v43, 6.0  ;;  %v2123_v12 = vmax.f32 %v1004_v10, 0.0  ;;  %v5984_v38 = vpop.f32.mrb[32].mxu1 }
 0x1d2   : > { %7697 = vst [vmem:[#allocation18_spill] sm:$0xff] %v5973_v16  ;;  %v1137_v55 = vadd.f32 3.0, %v5853_v13  ;;  %7698 = vst [vmem:[#allocation19_spill] sm:$0xff] %v5984_v38  ;;  %v2124_v53 = vmax.f32 %v1006_v8, 0.0  ;;  %v1141_v2 = vadd.f32 3.0, %v5863_v31  ;;  %v5989_v35 = vpop.f32.mrb[33].mxu1 }
 0x1d3   : > { %v3368_v36 = vmul.f32 %v2959_v58, %v2959_v58  ;;  %2684 = vst [vmem:[%s5763_s24 + $0x408] sm:$0xff] %v2492_v32  ;;  %v2960_v57 = vmul.f32 %v5733_v17, %v2492_v32  ;;  %7699 = vst [vmem:[#allocation20_spill] sm:$0xff] %v5989_v35  ;;  %v2478_v39 = vmul.f32 0.16666667, %v2286_v52  ;;  %v2493_v19 = vmul.f32 0.16666667, %v2301_v1 }
 0x1d4   : > { %v2315_v40 = vmin.f32 %v2123_v12, 6.0  ;;  %v2110_v43 = vmax.f32 %v1137_v55, 0.0  ;;  %v2316_v13 = vmin.f32 %v2124_v53, 6.0  ;;  %v2125_v14 = vmax.f32 %v1141_v2, 0.0  ;;  %v5991_v38 = vpop.f32.mrb[34].mxu0 }
 0x1d5   : > { %v3159_v10 = vadd.f32 %v2960_v57, %v2959_v58  ;;  %v3369_v16 = vmul.f32 %v2960_v57, %v2960_v57  ;;  %7700 = vst [vmem:[#allocation21_spill] sm:$0xff] %v5991_v38  ;;  %2670 = vst [vmem:[%s5763_s24 + $0x398] sm:$0xff] %v2478_v39  ;;  %v2946_v33 = vmul.f32 %v5743_v24, %v2478_v39  ;;  %v5997_v52 = vpop.f32.mrb[35].mxu0  ;;  %v5999_v1 = vpop.f32.mrb[34].mxu1  ;;  %v1010_v57 = vadd.f32 3.0, %v5871_v7 }
 0x1d6   : > { %2685 = vst [vmem:[%s5763_s24 + $0x410] sm:$0xff] %v2493_v19  ;;  %v2961_v32 = vmul.f32 %v5738_v21, %v2493_v19  ;;  %v2507_v31 = vmul.f32 0.16666667, %v2315_v40  ;;  %v2302_v8 = vmin.f32 %v2110_v43, 6.0  ;;  %v2508_v12 = vmul.f32 0.16666667, %v2316_v13 }
 0x1d7   : > { %v3568_v58 = vadd.f32 %v3369_v16, %v3368_v36  ;;  %v2317_v55 = vmin.f32 %v2125_v14, 6.0  ;;  %v6002_v53 = vpop.f32.mrb[35].mxu1  ;;  %v6004_v2 = vadd.f32 %v3143_v37, %v2946_v33  ;;  %v3355_v39 = vmul.f32 %v2946_v33, %v2946_v33  ;;  %v6007_v19 = vpop.f32.mrb[36].mxu0 }
 0x1d8   : > { %7701 = vst [vmem:[#allocation22_spill] sm:$0xff] %v6002_v53  ;;  %v3160_v35 = vadd.f32 %v3159_v10, %v2961_v32  ;;  %v3370_v38 = vmul.f32 %v2961_v32, %v2961_v32  ;;  %2699 = vst [vmem:[%s5763_s24 + $0x480] sm:$0xff] %v2507_v31  ;;  %v2975_v40 = vmul.f32 %v5728_v15, %v2507_v31  ;;  %v2494_v14 = vmul.f32 0.16666667, %v2302_v8  ;;  %v6012_v7 = vpop.f32.mrb[37].mxu0 }
 0x1d9   : > { %7702 = vst [vmem:[#allocation23_spill] sm:$0xff] %v6004_v2  ;;  %2700 = vst [vmem:[%s5763_s24 + $0x488] sm:$0xff] %v2508_v12  ;;  %v2976_v16 = vmul.f32 %v5733_v17, %v2508_v12  ;;  %v2509_v36 = vmul.f32 0.16666667, %v2317_v55  ;;  %v6014_v43 = vadd.f32 %v3552_v11, %v3355_v39  ;;  %v2139_v33 = vmax.f32 %v1010_v57, 0.0  ;;  %v6017_v13 = vpop.f32.mrb[36].mxu1 }
 0x1da   : > { %v3569_v37 = vadd.f32 %v3568_v58, %v3370_v38  ;;  %v1012_v10 = vadd.f32 3.0, %v5880_v28  ;;  %7704 = vst [vmem:[#allocation25_spill] sm:$0xff] %v6017_v13  ;;  %v3384_v32 = vmul.f32 %v2975_v40, %v2975_v40  ;;  %2686 = vst [vmem:[%s5763_s24 + $0x418] sm:$0xff] %v2494_v14  ;;  %v2962_v31 = vmul.f32 %v5743_v24, %v2494_v14  ;;  %v6022_v12 = vpop.f32.mrb[37].mxu1 }
 0x1db   : > { %7703 = vst [vmem:[#allocation24_spill] sm:$0xff] %v6014_v43  ;;  %v3176_v2 = vadd.f32 %v2976_v16, %v2975_v40  ;;  %v3385_v53 = vmul.f32 %v2976_v16, %v2976_v16  ;;  %2701 = vst [vmem:[%s5763_s24 + $0x490] sm:$0xff] %v2509_v36  ;;  %v2977_v8 = vmul.f32 %v5738_v21, %v2509_v36  ;;  %v2331_v55 = vmin.f32 %v2139_v33, 6.0  ;;  %v6026_v58 = vpop.f32.mrb[38].mxu0 }
 0x1dc   : > { %7705 = vst [vmem:[#allocation26_spill] sm:$0xff] %v6022_v12  ;;  %v2140_v11 = vmax.f32 %v1012_v10, 0.0  ;;  %v1143_v38 = vadd.f32 3.0, %v5865_v60  ;;  %v6028_v57 = vadd.f32 %v3160_v35, %v2962_v31  ;;  %v3371_v39 = vmul.f32 %v2962_v31, %v2962_v31  ;;  %v6031_v16 = vpop.f32.mrb[39].mxu0 }
 0x1dd   : > { %v3585_v28 = vadd.f32 %v3385_v53, %v3384_v32  ;;  %v1147_v40 = vadd.f32 3.0, %v5882_v5  ;;  %v3177_v14 = vadd.f32 %v3176_v2, %v2977_v8  ;;  %v3386_v43 = vmul.f32 %v2977_v8, %v2977_v8  ;;  %v6033_v36 = vpop.f32.mrb[38].mxu1 }
 0x1de   : > { %7706 = vst [vmem:[#allocation27_spill] sm:$0xff] %v6028_v57  ;;  %v2523_v12 = vmul.f32 0.16666667, %v2331_v55  ;;  %v2332_v13 = vmin.f32 %v2140_v11, 6.0  ;;  %v6035_v33 = vadd.f32 %v3569_v37, %v3371_v39  ;;  %v2126_v60 = vmax.f32 %v1143_v38, 0.0  ;;  %v6038_v35 = vpop.f32.mrb[39].mxu1 }
 0x1df   : > { %v2141_v10 = vmax.f32 %v1147_v40, 0.0  ;;  %v1016_v53 = vadd.f32 3.0, %v5895_v4  ;;  %7708 = vst [vmem:[#allocation29_spill] sm:$0xff] %v6038_v35  ;;  %v3586_v32 = vadd.f32 %v3585_v28, %v3386_v43  ;;  %v1018_v2 = vadd.f32 3.0, %v5897_v22  ;;  %v6043_v8 = vpop.f32.mrb[40].mxu0 }
 0x1e0   : > { %7707 = vst [vmem:[#allocation28_spill] sm:$0xff] %v6035_v33  ;;  %2715 = vst [vmem:[%s5763_s24 + $0x500] sm:$0xff] %v2523_v12  ;;  %v2991_v5 = vmul.f32 %v5728_v15, %v2523_v12  ;;  %v2524_v31 = vmul.f32 0.16666667, %v2332_v13  ;;  %v2318_v55 = vmin.f32 %v2126_v60, 6.0  ;;  %v1149_v38 = vadd.f32 3.0, %v5890_v45 }
 0x1e1   : > { %v2333_v11 = vmin.f32 %v2141_v10, 6.0  ;;  %v2155_v37 = vmax.f32 %v1016_v53, 0.0  ;;  %v6046_v39 = vpop.f32.mrb[41].mxu0  ;;  %v2156_v43 = vmax.f32 %v1018_v2, 0.0  ;;  %v1153_v13 = vadd.f32 3.0, %v5901_v26  ;;  %v6051_v12 = vpop.f32.mrb[40].mxu1 }
 0x1e2   : > { %7709 = vst [vmem:[#allocation30_spill] sm:$0xff] %v6046_v39  ;;  %v3400_v40 = vmul.f32 %v2991_v5, %v2991_v5  ;;  %2716 = vst [vmem:[%s5763_s24 + $0x508] sm:$0xff] %v2524_v31  ;;  %v2992_v4 = vmul.f32 %v5733_v17, %v2524_v31  ;;  %v2510_v22 = vmul.f32 0.16666667, %v2318_v55  ;;  %v2142_v10 = vmax.f32 %v1149_v38, 0.0  ;;  %v6055_v39 = vpop.f32.mrb[41].mxu1 }
 0x1e3   : > { %7710 = vst [vmem:[#allocation31_spill] sm:$0xff] %v6051_v12  ;;  %v2525_v28 = vmul.f32 0.16666667, %v2333_v11  ;;  %v2347_v60 = vmin.f32 %v2155_v37, 6.0  ;;  %v2348_v45 = vmin.f32 %v2156_v43, 6.0  ;;  %v2157_v57 = vmax.f32 %v1153_v13, 0.0 }
 0x1e4   : > { %v3193_v53 = vadd.f32 %v2992_v4, %v2991_v5  ;;  %v3401_v33 = vmul.f32 %v2992_v4, %v2992_v4  ;;  %v6053_v35 = vpop.f32.mrb[42].mxu0  ;;  %7711 = vst [vmem:[#allocation32_spill] sm:$0xff] %v6055_v39  ;;  %2702 = vst [vmem:[%s5763_s24 + $0x498] sm:$0xff] %v2510_v22  ;;  %v2978_v31 = vmul.f32 %v5743_v24, %v2510_v22  ;;  %v2334_v55 = vmin.f32 %v2142_v10, 6.0 }
 0x1e5   : > { %2717 = vst [vmem:[%s5763_s24 + $0x510] sm:$0xff] %v2525_v28  ;;  %v2993_v26 = vmul.f32 %v5738_v21, %v2525_v28  ;;  %v2539_v2 = vmul.f32 0.16666667, %v2347_v60  ;;  %v6061_v11 = vpop.f32.mrb[43].mxu0  ;;  %v2540_v37 = vmul.f32 0.16666667, %v2348_v45 }
 0x1e6   : > { %v3602_v5 = vadd.f32 %v3401_v33, %v3400_v40  ;;  %v2349_v38 = vmin.f32 %v2157_v57, 6.0  ;;  %v1224_v4 = vadd.f32 3.0, %v5914_v63  ;;  %v6064_v43 = vpop.f32.mrb[42].mxu1  ;;  %v6066_v13 = vadd.f32 %v3177_v14, %v2978_v31 }
 0x1e7   : > { %v3387_v39 = vmul.f32 %v2978_v31, %v2978_v31  ;;  %v3194_v12 = vadd.f32 %v3193_v53, %v2993_v26  ;;  %v3402_v22 = vmul.f32 %v2993_v26, %v2993_v26  ;;  %2731 = vst [vmem:[%s5763_s24 + $0x580] sm:$0xff] %v2539_v2  ;;  %v6069_v28 = vpop.f32.mrb[43].mxu1  ;;  %v3007_v60 = vmul.f32 %v5728_v15, %v2539_v2  ;;  %v6074_v63 = vpop.f32.mrb[44].mxu0 }
 0x1e8   : > { %7712 = vst [vmem:[#allocation33_spill] sm:$0xff] %v6066_v13  ;;  %7713 = vst [vmem:[#allocation34_spill] sm:$0xff] %v6069_v28  ;;  %v3008_v33 = vmul.f32 %v5733_v17, %v2540_v37  ;;  %v2526_v57 = vmul.f32 0.16666667, %v2334_v55  ;;  %v2541_v40 = vmul.f32 0.16666667, %v2349_v38 }
 0x1e9   : > { %2732 = vst [vmem:[%s5763_s24 + $0x588] sm:$0xff] %v2540_v37  ;;  %v6076_v10 = vadd.f32 %v3586_v32, %v3387_v39  ;;  %v3603_v14 = vadd.f32 %v3602_v5, %v3402_v22  ;;  %v1983_v45 = vmax.f32 %v1224_v4, 0.0  ;;  %v1155_v53 = vadd.f32 3.0, %v5905_v0  ;;  %v6079_v31 = vpop.f32.mrb[45].mxu0  ;;  %v6084_v17 = vpop.f32.mrb[44].mxu1 }
 0x1ea   : > { %v3416_v26 = vmul.f32 %v3007_v60, %v3007_v60  ;;  %v3210_v28 = vadd.f32 %v3008_v33, %v3007_v60  ;;  %v3417_v13 = vmul.f32 %v3008_v33, %v3008_v33  ;;  %2718 = vst [vmem:[%s5763_s24 + $0x518] sm:$0xff] %v2526_v57  ;;  %v2994_v15 = vmul.f32 %v5743_v24, %v2526_v57  ;;  %v6088_v5 = vpop.f32.mrb[45].mxu1 }
 0x1eb   : > { %2733 = vst [vmem:[%s5763_s24 + $0x590] sm:$0xff] %v2541_v40  ;;  %7714 = vst [vmem:[#allocation35_spill] sm:$0xff] %v6084_v17  ;;  %v3009_v2 = vmul.f32 %v5738_v21, %v2541_v40  ;;  %v2175_v55 = vmin.f32 %v1983_v45, 6.0  ;;  %v2158_v32 = vmax.f32 %v1155_v53, 0.0  ;;  %v1226_v39 = vadd.f32 3.0, %v5917_v3  ;;  %v6093_v22 = vpop.f32.mrb[46].mxu0 }
 0x1ec   : > { %v3619_v0 = vadd.f32 %v3417_v13, %v3416_v26  ;;  %v6090_v37 = vadd.f32 %v3194_v12, %v2994_v15  ;;  %v3403_v38 = vmul.f32 %v2994_v15, %v2994_v15  ;;  %v1230_v4 = vadd.f32 3.0, %v5925_v48  ;;  %v6095_v21 = vpop.f32.mrb[47].mxu0 }
 0x1ed   : > { %v3211_v60 = vadd.f32 %v3210_v28, %v3009_v2  ;;  %v3418_v33 = vmul.f32 %v3009_v2, %v3009_v2  ;;  %v2367_v57 = vmul.f32 0.16666667, %v2175_v55  ;;  %v2350_v17 = vmin.f32 %v2158_v32, 6.0  ;;  %v6100_v12 = vpop.f32.mrb[46].mxu1 }
 0x1ee   : > { %v6097_v40 = vadd.f32 %v3603_v14, %v3403_v38  ;;  %v1984_v3 = vmax.f32 %v1226_v39, 0.0  ;;  %v1999_v45 = vmax.f32 %v1230_v4, 0.0  ;;  %v1361_v13 = vadd.f32 3.0, %v5919_v34  ;;  %v6105_v15 = vpop.f32.mrb[47].mxu1 }
 0x1ef   : > { %v3620_v53 = vadd.f32 %v3619_v0, %v3418_v33  ;;  %2559 = vst [vmem:[%s5763_s24 + $0x20] sm:$0xff] %v2367_v57  ;;  %v2835_v48 = vmul.f32 %v5748_v29, %v2367_v57  ;;  %v2542_v26 = vmul.f32 0.16666667, %v2350_v17  ;;  %v1232_v28 = vadd.f32 3.0, %v5929_v54  ;;  %7715 = vst [vmem:[#allocation36_spill] sm:$0xff] %v6105_v15  ;;  %v6108_v39 = vpop.f32.mrb[48].mxu0 }
 0x1f0   : > { %v2176_v2 = vmin.f32 %v1984_v3, 6.0  ;;  %v2191_v55 = vmin.f32 %v1999_v45, 6.0  ;;  %v1985_v14 = vmax.f32 %v1361_v13, 0.0  ;;  %v1363_v32 = vadd.f32 3.0, %v5921_v61  ;;  %7716 = vst [vmem:[#allocation37_spill] sm:$0xff] %v6108_v39  ;;  %v6113_v4 = vpop.f32.mrb[49].mxu0 }
 0x1f1   : > { %v3026_v34 = vadd.f32 %v5781_v50, %v2835_v48  ;;  %v3244_v38 = vmul.f32 %v2835_v48, %v2835_v48  ;;  %2734 = vst [vmem:[%s5763_s24 + $0x598] sm:$0xff] %v2542_v26  ;;  %v3010_v0 = vmul.f32 %v5743_v24, %v2542_v26  ;;  %v2000_v17 = vmax.f32 %v1232_v28, 0.0  ;;  %v6118_v39 = vpop.f32.mrb[48].mxu1 }
 0x1f2   : > { %v2368_v54 = vmul.f32 0.16666667, %v2176_v2  ;;  %v2383_v33 = vmul.f32 0.16666667, %v2191_v55  ;;  %v2177_v57 = vmin.f32 %v1985_v14, 6.0  ;;  %v1986_v3 = vmax.f32 %v1363_v32, 0.0 }
 0x1f3   : > { %v3435_v45 = vadd.f32 %v5785_v59, %v3244_v38  ;;  %v6116_v61 = vadd.f32 %v3211_v60, %v3010_v0  ;;  %v3419_v13 = vmul.f32 %v3010_v0, %v3010_v0  ;;  %v2192_v15 = vmin.f32 %v2000_v17, 6.0  ;;  %v6124_v28 = vpop.f32.mrb[50].mxu0  ;;  %v6126_v2 = vpop.f32.mrb[49].mxu1 }
 0x1f4   : > { %2560 = vst [vmem:[%s5763_s24 + $0x28] sm:$0xff] %v2368_v54  ;;  %v2836_v50 = vmul.f32 %v5753_v30, %v2368_v54  ;;  %2575 = vst [vmem:[%s5763_s24 + $0xa0] sm:$0xff] %v2383_v33  ;;  %v2851_v24 = vmul.f32 %v5748_v29, %v2383_v33  ;;  %v2369_v48 = vmul.f32 0.16666667, %v2177_v57  ;;  %v2178_v26 = vmin.f32 %v1986_v3, 6.0  ;;  %v6132_v32 = vpop.f32.mrb[51].mxu0 }
 0x1f5   : > { %7717 = vst [vmem:[#allocation38_spill] sm:$0xff] %v6126_v2  ;;  %v6128_v59 = vadd.f32 %v3620_v53, %v3419_v13  ;;  %v2384_v60 = vmul.f32 0.16666667, %v2192_v15  ;;  %v1236_v55 = vadd.f32 3.0, %v5942_v49  ;;  %v1367_v14 = vadd.f32 3.0, %v5932_v27  ;;  %7718 = vst [vmem:[#allocation39_spill] sm:$0xff] %v6132_v32 }
 0x1f6   : > { %v3027_v38 = vadd.f32 %v3026_v34, %v2836_v50  ;;  %v3245_v0 = vmul.f32 %v2836_v50, %v2836_v50  ;;  %v3043_v17 = vadd.f32 %v5807_v46, %v2851_v24  ;;  %v3260_v54 = vmul.f32 %v2851_v24, %v2851_v24  ;;  %2561 = vst [vmem:[%s5763_s24 + $0x30] sm:$0xff] %v2369_v48  ;;  %v6136_v33 = vpop.f32.mrb[50].mxu1 }
 0x1f7   : > { %7719 = vst [vmem:[#allocation40_spill] sm:$0xff] %v6136_v33  ;;  %v2837_v57 = vmul.f32 %v5758_v42, %v2369_v48  ;;  %2576 = vst [vmem:[%s5763_s24 + $0xa8] sm:$0xff] %v2384_v60  ;;  %v2852_v53 = vmul.f32 %v5753_v30, %v2384_v60  ;;  %v2370_v15 = vmul.f32 0.16666667, %v2178_v26  ;;  %v2015_v49 = vmax.f32 %v1236_v55, 0.0  ;;  %v6141_v3 = vpop.f32.mrb[51].mxu1 }
 0x1f8   : > { %7720 = vst [vmem:[#allocation41_spill] sm:$0xff] %v6141_v3  ;;  %v3436_v27 = vadd.f32 %v3435_v45, %v3245_v0  ;;  %v3452_v34 = vadd.f32 %v5813_v62, %v3260_v54  ;;  %v2001_v13 = vmax.f32 %v1367_v14, 0.0  ;;  %v1238_v46 = vadd.f32 3.0, %v5946_v56  ;;  %v6145_v50 = vpop.f32.mrb[52].mxu0 }
 0x1f9   : > { %v3028_v24 = vadd.f32 %v3027_v38, %v2837_v57  ;;  %v3246_v33 = vmul.f32 %v2837_v57, %v2837_v57  ;;  %v3044_v2 = vadd.f32 %v3043_v17, %v2852_v53  ;;  %v3261_v32 = vmul.f32 %v2852_v53, %v2852_v53  ;;  %2562 = vst [vmem:[%s5763_s24 + $0x38] sm:$0xff] %v2370_v15  ;;  %v6148_v48 = vpop.f32.mrb[53].mxu0  ;;  %v6151_v45 = vpop.f32.mrb[52].mxu1 }
 0x1fa   : > { %v2838_v26 = vmul.f32 %v5876_v18, %v2370_v15  ;;  %v2207_v60 = vmin.f32 %v2015_v49, 6.0  ;;  %v2193_v55 = vmin.f32 %v2001_v13, 6.0  ;;  %v2016_v3 = vmax.f32 %v1238_v46, 0.0  ;;  %v6155_v0 = vpop.f32.mrb[53].mxu1 }
 0x1fb   : > { %v3437_v62 = vadd.f32 %v3436_v27, %v3246_v33  ;;  %v3453_v14 = vadd.f32 %v3452_v34, %v3261_v32  ;;  %v1369_v56 = vadd.f32 3.0, %v5938_v25  ;;  %v1242_v38 = vadd.f32 3.0, %v5959_v23  ;;  %7721 = vst [vmem:[#allocation42_spill] sm:$0xff] %v6155_v0  ;;  %v6159_v15 = vpop.f32.mrb[54].mxu0 }
 0x1fc   : > { %v6157_v17 = vadd.f32 %v3028_v24, %v2838_v26  ;;  %v3247_v54 = vmul.f32 %v2838_v26, %v2838_v26  ;;  %v2399_v57 = vmul.f32 0.16666667, %v2207_v60  ;;  %v2385_v53 = vmul.f32 0.16666667, %v2193_v55  ;;  %v6162_v32 = vpop.f32.mrb[55].mxu0 }
 0x1fd   : > { %v2208_v49 = vmin.f32 %v2016_v3, 6.0  ;;  %v2002_v13 = vmax.f32 %v1369_v56, 0.0  ;;  %v2031_v46 = vmax.f32 %v1242_v38, 0.0  ;;  %v1373_v33 = vadd.f32 3.0, %v5950_v47  ;;  %v6171_v24 = vpop.f32.mrb[54].mxu1 }
 0x1fe   : > { %v6164_v25 = vadd.f32 %v3437_v62, %v3247_v54  ;;  %2591 = vst [vmem:[%s5763_s24 + $0x120] sm:$0xff] %v2399_v57  ;;  %v2867_v23 = vmul.f32 %v5748_v29, %v2399_v57  ;;  %2577 = vst [vmem:[%s5763_s24 + $0xb0] sm:$0xff] %v2385_v53  ;;  %v2853_v27 = vmul.f32 %v5758_v42, %v2385_v53  ;;  %v1244_v34 = vadd.f32 3.0, %v5964_v6  ;;  %v6173_v47 = vpop.f32.mrb[55].mxu1 }
 0x1ff   : > { %7722 = vst [vmem:[#allocation43_spill] sm:$0xff] %v6171_v24  ;;  %v2400_v3 = vmul.f32 0.16666667, %v2208_v49  ;;  %v2194_v26 = vmin.f32 %v2002_v13, 6.0  ;;  %v2223_v60 = vmin.f32 %v2031_v46, 6.0  ;;  %v2017_v55 = vmax.f32 %v1373_v33, 0.0 }
 0x200   : > { %7723 = vst [vmem:[#allocation44_spill] sm:$0xff] %v6173_v47  ;;  %v3060_v62 = vadd.f32 %v5832_v20, %v2867_v23  ;;  %v3276_v56 = vmul.f32 %v2867_v23, %v2867_v23  ;;  %v3045_v38 = vadd.f32 %v3044_v2, %v2853_v27  ;;  %v3262_v54 = vmul.f32 %v2853_v27, %v2853_v27  ;;  %v6176_v57 = vpop.f32.mrb[56].mxu0  ;;  %v7725_v20 = vld [vmem:[#allocation15_spill] sm:$0xff] }
 0x201   : > { %7724 = vst [vmem:[#allocation45_spill] sm:$0xff] %v6176_v57  ;;  %2592 = vst [vmem:[%s5763_s24 + $0x128] sm:$0xff] %v2400_v3  ;;  %v2868_v6 = vmul.f32 %v5753_v30, %v2400_v3  ;;  %v2386_v53 = vmul.f32 0.16666667, %v2194_v26  ;;  %v2415_v24 = vmul.f32 0.16666667, %v2223_v60 }
 0x202   : > { %v2209_v49 = vmin.f32 %v2017_v55, 6.0  ;;  %v6180_v13 = vpop.f32.mrb[57].mxu0  ;;  %v3469_v46 = vadd.f32 %v5842_v51, %v3276_v56  ;;  %v3454_v33 = vadd.f32 %v3453_v14, %v3262_v54  ;;  %v2032_v47 = vmax.f32 %v1244_v34, 0.0  ;;  %v6184_v2 = vpop.f32.mrb[56].mxu1 }
 0x203   : > { %v1375_v23 = vadd.f32 3.0, %v7725_v20  ;;  %7726 = vst [vmem:[#allocation15_spill] sm:$0xff] %v6184_v2  ;;  %v3061_v27 = vadd.f32 %v3060_v62, %v2868_v6  ;;  %v3277_v0 = vmul.f32 %v2868_v6, %v2868_v6  ;;  %2578 = vst [vmem:[%s5763_s24 + $0xb8] sm:$0xff] %v2386_v53  ;;  %v2854_v57 = vmul.f32 %v5876_v18, %v2386_v53  ;;  %v6190_v26 = vpop.f32.mrb[57].mxu1  ;;  %v6193_v34 = vpop.f32.mrb[58].mxu0  ;;  %v7729_v6 = vld [vmem:[#allocation9_spill] sm:$0xff] }
 0x204   : > { %2607 = vst [vmem:[%s5763_s24 + $0x1a0] sm:$0xff] %v2415_v24  ;;  %v2883_v3 = vmul.f32 %v5748_v29, %v2415_v24  ;;  %7727 = vst [vmem:[#allocation46_spill] sm:$0xff] %v6190_v26  ;;  %v2401_v60 = vmul.f32 0.16666667, %v2209_v49  ;;  %v2224_v55 = vmin.f32 %v2032_v47, 6.0  ;;  %v1248_v14 = vadd.f32 3.0, %v5976_v41 }
 0x205   : > { %v2018_v51 = vmax.f32 %v1375_v23, 0.0  ;;  %7728 = vst [vmem:[#allocation47_spill] sm:$0xff] %v6193_v34  ;;  %v3470_v56 = vadd.f32 %v3469_v46, %v3277_v0  ;;  %v6195_v54 = vadd.f32 %v3045_v38, %v2854_v57  ;;  %v3263_v62 = vmul.f32 %v2854_v57, %v2854_v57  ;;  %v6198_v53 = vpop.f32.mrb[59].mxu0  ;;  %v6202_v23 = vpop.f32.mrb[58].mxu1  ;;  %v7733_v46 = vld [vmem:[#allocation10_spill] sm:$0xff] }
 0x206   : > { %v3077_v20 = vadd.f32 %v7729_v6, %v2883_v3  ;;  %7730 = vst [vmem:[#allocation9_spill] sm:$0xff] %v6198_v53  ;;  %v3292_v2 = vmul.f32 %v2883_v3, %v2883_v3  ;;  %2593 = vst [vmem:[%s5763_s24 + $0x130] sm:$0xff] %v2401_v60  ;;  %v2869_v24 = vmul.f32 %v5758_v42, %v2401_v60  ;;  %v2416_v49 = vmul.f32 0.16666667, %v2224_v55  ;;  %v6208_v57 = vpop.f32.mrb[59].mxu1 }
 0x207   : > { %v2210_v47 = vmin.f32 %v2018_v51, 6.0  ;;  %7731 = vst [vmem:[#allocation48_spill] sm:$0xff] %v6202_v23  ;;  %v6204_v41 = vadd.f32 %v3454_v33, %v3263_v62  ;;  %v2047_v26 = vmax.f32 %v1248_v14, 0.0  ;;  %v1379_v0 = vadd.f32 3.0, %v5969_v44  ;;  %7732 = vst [vmem:[#allocation49_spill] sm:$0xff] %v6208_v57  ;;  %v6213_v55 = vpop.f32.mrb[60].mxu0 }
 0x208   : > { %v1250_v38 = vadd.f32 3.0, %v5981_v9  ;;  %v3486_v6 = vadd.f32 %v7733_v46, %v3292_v2  ;;  %v3062_v3 = vadd.f32 %v3061_v27, %v2869_v24  ;;  %v3278_v53 = vmul.f32 %v2869_v24, %v2869_v24  ;;  %2608 = vst [vmem:[%s5763_s24 + $0x1a8] sm:$0xff] %v2416_v49  ;;  %7734 = vst [vmem:[#allocation10_spill] sm:$0xff] %v6213_v55  ;;  %v6215_v23 = vpop.f32.mrb[61].mxu0  ;;  %v7736_v57 = vld [vmem:[#allocation17_spill] sm:$0xff] }
 0x209   : > { %v2884_v60 = vmul.f32 %v5753_v30, %v2416_v49  ;;  %v2402_v51 = vmul.f32 0.16666667, %v2210_v47  ;;  %v2239_v33 = vmin.f32 %v2047_v26, 6.0  ;;  %v2033_v62 = vmax.f32 %v1379_v0, 0.0  ;;  %7735 = vst [vmem:[#allocation50_spill] sm:$0xff] %v6215_v23  ;;  %v6218_v46 = vpop.f32.mrb[60].mxu1 }
 0x20a   : > { %v2048_v14 = vmax.f32 %v1250_v38, 0.0  ;;  %v3471_v44 = vadd.f32 %v3470_v56, %v3278_v53  ;;  %v1381_v2 = vadd.f32 3.0, %v7736_v57  ;;  %7737 = vst [vmem:[#allocation17_spill] sm:$0xff] %v6218_v46  ;;  %v6222_v47 = vpop.f32.mrb[61].mxu1  ;;  %v7739_v38 = vld [vmem:[#allocation21_spill] sm:$0xff]  ;;  %v7740_v56 = vld [vmem:[#allocation19_spill] sm:$0xff] }
 0x20b   : > { %v3078_v9 = vadd.f32 %v3077_v20, %v2884_v60  ;;  %v3293_v34 = vmul.f32 %v2884_v60, %v2884_v60  ;;  %2594 = vst [vmem:[%s5763_s24 + $0x138] sm:$0xff] %v2402_v51  ;;  %v2870_v27 = vmul.f32 %v5876_v18, %v2402_v51  ;;  %v2431_v24 = vmul.f32 0.16666667, %v2239_v33  ;;  %7738 = vst [vmem:[#allocation51_spill] sm:$0xff] %v6222_v47  ;;  %v6226_v53 = vpop.f32.mrb[62].mxu0  ;;  %v7744_v47 = vld [vmem:[#allocation11_spill] sm:$0xff] }
 0x20c   : > { %v2225_v49 = vmin.f32 %v2033_v62, 6.0  ;;  %v2240_v55 = vmin.f32 %v2048_v14, 6.0  ;;  %v2034_v0 = vmax.f32 %v1381_v2, 0.0  ;;  %v1254_v23 = vadd.f32 3.0, %v7739_v38  ;;  %7741 = vst [vmem:[#allocation21_spill] sm:$0xff] %v6226_v53  ;;  %v6232_v62 = vpop.f32.mrb[63].mxu0 }
 0x20d   : > { %v3487_v26 = vadd.f32 %v3486_v6, %v3293_v34  ;;  %v1385_v20 = vadd.f32 3.0, %v7740_v56  ;;  %v6228_v57 = vadd.f32 %v3062_v3, %v2870_v27  ;;  %v3279_v60 = vmul.f32 %v2870_v27, %v2870_v27  ;;  %2623 = vst [vmem:[%s5763_s24 + $0x220] sm:$0xff] %v2431_v24  ;;  %7742 = vst [vmem:[#allocation19_spill] sm:$0xff] %v6232_v62  ;;  %v6234_v38 = vpop.f32.mrb[62].mxu1 }
 0x20e   : > { %v2899_v51 = vmul.f32 %v5748_v29, %v2431_v24  ;;  %v2417_v33 = vmul.f32 0.16666667, %v2225_v49  ;;  %v2432_v14 = vmul.f32 0.16666667, %v2240_v55  ;;  %v2226_v34 = vmin.f32 %v2034_v0, 6.0  ;;  %7743 = vst [vmem:[#allocation52_spill] sm:$0xff] %v6234_v38 }
 0x20f   : > { %v2063_v6 = vmax.f32 %v1254_v23, 0.0  ;;  %v2049_v2 = vmax.f32 %v1385_v20, 0.0  ;;  %v6236_v56 = vadd.f32 %v3471_v44, %v3279_v60  ;;  %v6241_v53 = vpop.f32.mrb[63].mxu1  ;;  %v6245_v0 = vpop.f32.mrb[64].mxu0  ;;  %v7747_v20 = vld [vmem:[#allocation12_spill] sm:$0xff] }
 0x210   : > { %v3094_v46 = vadd.f32 %v7744_v47, %v2899_v51  ;;  %v3308_v3 = vmul.f32 %v2899_v51, %v2899_v51  ;;  %2609 = vst [vmem:[%s5763_s24 + $0x1b0] sm:$0xff] %v2417_v33  ;;  %v2885_v27 = vmul.f32 %v5758_v42, %v2417_v33  ;;  %7745 = vst [vmem:[#allocation11_spill] sm:$0xff] %v6241_v53  ;;  %v2418_v55 = vmul.f32 0.16666667, %v2226_v34  ;;  %v6249_v51 = vpop.f32.mrb[65].mxu0 }
 0x211   : > { %2624 = vst [vmem:[%s5763_s24 + $0x228] sm:$0xff] %v2432_v14  ;;  %v2900_v24 = vmul.f32 %v5753_v30, %v2432_v14  ;;  %v2255_v49 = vmin.f32 %v2063_v6, 6.0  ;;  %v2241_v23 = vmin.f32 %v2049_v2, 6.0  ;;  %7746 = vst [vmem:[#allocation53_spill] sm:$0xff] %v6245_v0  ;;  %v1256_v47 = vadd.f32 3.0, %v5997_v52  ;;  %v6253_v6 = vpop.f32.mrb[64].mxu1 }
 0x212   : > { %v3503_v44 = vadd.f32 %v7747_v20, %v3308_v3  ;;  %v3079_v60 = vadd.f32 %v3078_v9, %v2885_v27  ;;  %v3294_v38 = vmul.f32 %v2885_v27, %v2885_v27  ;;  %7748 = vst [vmem:[#allocation12_spill] sm:$0xff] %v6249_v51  ;;  %2610 = vst [vmem:[%s5763_s24 + $0x1b8] sm:$0xff] %v2418_v55  ;;  %v7750_v3 = vld [vmem:[#allocation20_spill] sm:$0xff]  ;;  %v6256_v27 = vpop.f32.mrb[65].mxu1 }
 0x213   : > { %v3095_v33 = vadd.f32 %v3094_v46, %v2900_v24  ;;  %v3309_v62 = vmul.f32 %v2900_v24, %v2900_v24  ;;  %v2886_v14 = vmul.f32 %v5876_v18, %v2418_v55  ;;  %v2447_v34 = vmul.f32 0.16666667, %v2255_v49  ;;  %7749 = vst [vmem:[#allocation54_spill] sm:$0xff] %v6253_v6  ;;  %7751 = vst [vmem:[#allocation20_spill] sm:$0xff] %v6256_v27  ;;  %v6262_v24 = vpop.f32.mrb[66].mxu0 }
 0x214   : > { %v3488_v2 = vadd.f32 %v3487_v26, %v3294_v38  ;;  %v2433_v53 = vmul.f32 0.16666667, %v2241_v23  ;;  %v2064_v0 = vmax.f32 %v1256_v47, 0.0  ;;  %v1387_v9 = vadd.f32 3.0, %v7750_v3  ;;  %7752 = vst [vmem:[#allocation55_spill] sm:$0xff] %v6262_v24  ;;  %v6267_v23 = vpop.f32.mrb[67].mxu0 }
 0x215   : > { %v3504_v52 = vadd.f32 %v3503_v44, %v3309_v62  ;;  %v6258_v20 = vadd.f32 %v3079_v60, %v2886_v14  ;;  %v3295_v51 = vmul.f32 %v2886_v14, %v2886_v14  ;;  %2639 = vst [vmem:[%s5763_s24 + $0x2a0] sm:$0xff] %v2447_v34  ;;  %v2915_v46 = vmul.f32 %v5748_v29, %v2447_v34  ;;  %v7754_v62 = vld [vmem:[#allocation13_spill] sm:$0xff]  ;;  %v6273_v34 = vpop.f32.mrb[66].mxu1 }
 0x216   : > { %2625 = vst [vmem:[%s5763_s24 + $0x230] sm:$0xff] %v2433_v53  ;;  %v2901_v55 = vmul.f32 %v5758_v42, %v2433_v53  ;;  %v2256_v49 = vmin.f32 %v2064_v0, 6.0  ;;  %v2050_v26 = vmax.f32 %v1387_v9, 0.0  ;;  %v1260_v38 = vadd.f32 3.0, %v6007_v19  ;;  %7753 = vst [vmem:[#allocation56_spill] sm:$0xff] %v6267_v23  ;;  %v7756_v0 = vld [vmem:[#allocation14_spill] sm:$0xff] }
 0x217   : > { %v6269_v47 = vadd.f32 %v3488_v2, %v3295_v51  ;;  %v3111_v44 = vadd.f32 %v7754_v62, %v2915_v46  ;;  %v3324_v60 = vmul.f32 %v2915_v46, %v2915_v46  ;;  %v1391_v14 = vadd.f32 3.0, %v5999_v1  ;;  %7755 = vst [vmem:[#allocation13_spill] sm:$0xff] %v6273_v34  ;;  %v6277_v2 = vpop.f32.mrb[68].mxu0  ;;  %v6279_v23 = vpop.f32.mrb[67].mxu1 }
 0x218   : > { %v3096_v3 = vadd.f32 %v3095_v33, %v2901_v55  ;;  %v3310_v27 = vmul.f32 %v2901_v55, %v2901_v55  ;;  %v2448_v6 = vmul.f32 0.16666667, %v2256_v49  ;;  %v2242_v53 = vmin.f32 %v2050_v26, 6.0  ;;  %7757 = vst [vmem:[#allocation14_spill] sm:$0xff] %v6277_v2  ;;  %7758 = vst [vmem:[#allocation57_spill] sm:$0xff] %v6279_v23  ;;  %v7759_v33 = vld [vmem:[#allocation22_spill] sm:$0xff] }
 0x219   : > { %v3520_v9 = vadd.f32 %v7756_v0, %v3324_v60  ;;  %v2079_v24 = vmax.f32 %v1260_v38, 0.0  ;;  %v2065_v19 = vmax.f32 %v1391_v14, 0.0  ;;  %v1262_v51 = vadd.f32 3.0, %v6012_v7  ;;  %v6284_v49 = vpop.f32.mrb[69].mxu0 }
 0x21a   : > { %v3505_v46 = vadd.f32 %v3504_v52, %v3310_v27  ;;  %2640 = vst [vmem:[%s5763_s24 + $0x2a8] sm:$0xff] %v2448_v6  ;;  %v2916_v1 = vmul.f32 %v5753_v30, %v2448_v6  ;;  %v2434_v62 = vmul.f32 0.16666667, %v2242_v53  ;;  %v1393_v55 = vadd.f32 3.0, %v7759_v33  ;;  %7760 = vst [vmem:[#allocation22_spill] sm:$0xff] %v6284_v49 }
 0x21b   : > { %v2271_v26 = vmin.f32 %v2079_v24, 6.0  ;;  %v2257_v60 = vmin.f32 %v2065_v19, 6.0  ;;  %v2080_v38 = vmax.f32 %v1262_v51, 0.0  ;;  %v1266_v14 = vadd.f32 3.0, %v6026_v58 }
 0x21c   : > { %v3112_v7 = vadd.f32 %v3111_v44, %v2916_v1  ;;  %v3325_v0 = vmul.f32 %v2916_v1, %v2916_v1  ;;  %2626 = vst [vmem:[%s5763_s24 + $0x238] sm:$0xff] %v2434_v62  ;;  %v2902_v27 = vmul.f32 %v5876_v18, %v2434_v62  ;;  %v2066_v52 = vmax.f32 %v1393_v55, 0.0  ;;  %v6295_v62 = vpop.f32.mrb[68].mxu1 }
 0x21d   : > { %v2463_v23 = vmul.f32 0.16666667, %v2271_v26  ;;  %v2449_v6 = vmul.f32 0.16666667, %v2257_v60  ;;  %v2272_v53 = vmin.f32 %v2080_v38, 6.0  ;;  %v2095_v34 = vmax.f32 %v1266_v14, 0.0 }
 0x21e   : > { %v3521_v33 = vadd.f32 %v3520_v9, %v3325_v0  ;;  %v6289_v2 = vadd.f32 %v3096_v3, %v2902_v27  ;;  %v3311_v24 = vmul.f32 %v2902_v27, %v2902_v27  ;;  %v2258_v19 = vmin.f32 %v2066_v52, 6.0  ;;  %7762 = vst [vmem:[#allocation59_spill] sm:$0xff] %v6295_v62  ;;  %v7764_v9 = vld [vmem:[#allocation25_spill] sm:$0xff]  ;;  %v6301_v38 = vpop.f32.mrb[70].mxu0  ;;  %v6303_v14 = vpop.f32.mrb[69].mxu1 }
 0x21f   : > { %2655 = vst [vmem:[%s5763_s24 + $0x320] sm:$0xff] %v2463_v23  ;;  %v2931_v51 = vmul.f32 %v5748_v29, %v2463_v23  ;;  %2641 = vst [vmem:[%s5763_s24 + $0x2b0] sm:$0xff] %v2449_v6  ;;  %v2917_v58 = vmul.f32 %v5758_v42, %v2449_v6  ;;  %v2464_v44 = vmul.f32 0.16666667, %v2272_v53  ;;  %v2287_v1 = vmin.f32 %v2095_v34, 6.0  ;;  %v7767_v23 = vld [vmem:[#allocation16_spill] sm:$0xff] }
 0x220   : > { %7761 = vst [vmem:[#allocation58_spill] sm:$0xff] %v6289_v2  ;;  %v6297_v55 = vadd.f32 %v3505_v46, %v3311_v24  ;;  %v2450_v26 = vmul.f32 0.16666667, %v2258_v19  ;;  %v1397_v3 = vadd.f32 3.0, %v7764_v9  ;;  %v1268_v60 = vadd.f32 3.0, %v6031_v16  ;;  %7765 = vst [vmem:[#allocation25_spill] sm:$0xff] %v6301_v38 }
 0x221   : > { %7766 = vst [vmem:[#allocation61_spill] sm:$0xff] %v6303_v14  ;;  %v3128_v0 = vadd.f32 %v7767_v23, %v2931_v51  ;;  %v3340_v27 = vmul.f32 %v2931_v51, %v2931_v51  ;;  %v3113_v52 = vadd.f32 %v3112_v7, %v2917_v58  ;;  %v3326_v6 = vmul.f32 %v2917_v58, %v2917_v58  ;;  %v6307_v34 = vpop.f32.mrb[71].mxu0  ;;  %v7769_v19 = vld [vmem:[#allocation18_spill] sm:$0xff] }
 0x222   : > { %7763 = vst [vmem:[#allocation60_spill] sm:$0xff] %v6297_v55  ;;  %2656 = vst [vmem:[%s5763_s24 + $0x328] sm:$0xff] %v2464_v44  ;;  %v2932_v46 = vmul.f32 %v5753_v30, %v2464_v44  ;;  %v2918_v53 = vmul.f32 %v5876_v18, %v2450_v26  ;;  %v2479_v24 = vmul.f32 0.16666667, %v2287_v1  ;;  %v2081_v16 = vmax.f32 %v1397_v3, 0.0  ;;  %v7770_v38 = vld [vmem:[#allocation26_spill] sm:$0xff] }
 0x223   : > { %7768 = vst [vmem:[#allocation16_spill] sm:$0xff] %v6307_v34  ;;  %2642 = vst [vmem:[%s5763_s24 + $0x2b8] sm:$0xff] %v2450_v26  ;;  %v3537_v9 = vadd.f32 %v7769_v19, %v3340_v27  ;;  %v3522_v62 = vadd.f32 %v3521_v33, %v3326_v6  ;;  %v2096_v14 = vmax.f32 %v1268_v60, 0.0  ;;  %v1399_v23 = vadd.f32 3.0, %v7770_v38  ;;  %v7771_v60 = vld [vmem:[#allocation23_spill] sm:$0xff]  ;;  %v6323_v6 = vpop.f32.mrb[70].mxu1 }
 0x224   : > { %v3129_v51 = vadd.f32 %v3128_v0, %v2932_v46  ;;  %v3341_v7 = vmul.f32 %v2932_v46, %v2932_v46  ;;  %v6314_v58 = vadd.f32 %v3113_v52, %v2918_v53  ;;  %v3327_v49 = vmul.f32 %v2918_v53, %v2918_v53  ;;  %2671 = vst [vmem:[%s5763_s24 + $0x3a0] sm:$0xff] %v2479_v24  ;;  %v6326_v19 = vpop.f32.mrb[72].mxu0 }
 0x225   : > { %v2947_v34 = vmul.f32 %v5748_v29, %v2479_v24  ;;  %v2273_v44 = vmin.f32 %v2081_v16, 6.0  ;;  %v2288_v55 = vmin.f32 %v2096_v14, 6.0  ;;  %v2082_v2 = vmax.f32 %v1399_v23, 0.0  ;;  %v7772_v24 = vld [vmem:[#allocation30_spill] sm:$0xff]  ;;  %7773 = vst [vmem:[#allocation18_spill] sm:$0xff] %v6326_v19  ;;  %v6338_v19 = vpop.f32.mrb[73].mxu0 }
 0x226   : > { %v3538_v26 = vadd.f32 %v3537_v9, %v3341_v7  ;;  %v6318_v1 = vadd.f32 %v3522_v62, %v3327_v49  ;;  %v1272_v33 = vadd.f32 3.0, %v6043_v8  ;;  %v1403_v3 = vadd.f32 3.0, %v6033_v36  ;;  %v6328_v49 = vpop.f32.mrb[71].mxu1  ;;  %v7775_v8 = vld [vmem:[#allocation24_spill] sm:$0xff]  ;;  %7777 = vst [vmem:[#allocation23_spill] sm:$0xff] %v6338_v19 }
 0x227   : > { %v3145_v38 = vadd.f32 %v7771_v60, %v2947_v34  ;;  %v3356_v0 = vmul.f32 %v2947_v34, %v2947_v34  ;;  %v2465_v27 = vmul.f32 0.16666667, %v2273_v44  ;;  %v2480_v52 = vmul.f32 0.16666667, %v2288_v55  ;;  %7774 = vst [vmem:[#allocation26_spill] sm:$0xff] %v6328_v49  ;;  %v7776_v34 = vld [vmem:[#allocation29_spill] sm:$0xff] }
 0x228   : > { %v2274_v46 = vmin.f32 %v2082_v2, 6.0  ;;  %v2111_v53 = vmax.f32 %v1272_v33, 0.0  ;;  %v2097_v14 = vmax.f32 %v1403_v3, 0.0  ;;  %v1274_v16 = vadd.f32 3.0, %v7772_v24 }
 0x229   : > { %v3554_v62 = vadd.f32 %v7775_v8, %v3356_v0  ;;  %2657 = vst [vmem:[%s5763_s24 + $0x330] sm:$0xff] %v2465_v27  ;;  %v2933_v36 = vmul.f32 %v5758_v42, %v2465_v27  ;;  %2672 = vst [vmem:[%s5763_s24 + $0x3a8] sm:$0xff] %v2480_v52  ;;  %v2948_v55 = vmul.f32 %v5753_v30, %v2480_v52  ;;  %v1405_v9 = vadd.f32 3.0, %v7776_v34 }
 0x22a   : > { %v2466_v2 = vmul.f32 0.16666667, %v2274_v46  ;;  %v2303_v23 = vmin.f32 %v2111_v53, 6.0  ;;  %v2289_v7 = vmin.f32 %v2097_v14, 6.0  ;;  %v2112_v44 = vmax.f32 %v1274_v16, 0.0 }
 0x22b   : > { %v3130_v33 = vadd.f32 %v3129_v51, %v2933_v36  ;;  %v3342_v3 = vmul.f32 %v2933_v36, %v2933_v36  ;;  %v3146_v60 = vadd.f32 %v3145_v38, %v2948_v55  ;;  %v3357_v24 = vmul.f32 %v2948_v55, %v2948_v55  ;;  %v6347_v36 = vpop.f32.mrb[72].mxu1 }
 0x22c   : > { %2658 = vst [vmem:[%s5763_s24 + $0x338] sm:$0xff] %v2466_v2  ;;  %v2934_v0 = vmul.f32 %v5876_v18, %v2466_v2  ;;  %v2495_v8 = vmul.f32 0.16666667, %v2303_v23  ;;  %v2481_v27 = vmul.f32 0.16666667, %v2289_v7  ;;  %v2304_v49 = vmin.f32 %v2112_v44, 6.0 }
 0x22d   : > { %v3539_v52 = vadd.f32 %v3538_v26, %v3342_v3  ;;  %v3555_v34 = vadd.f32 %v3554_v62, %v3357_v24  ;;  %v2098_v46 = vmax.f32 %v1405_v9, 0.0  ;;  %v1278_v53 = vadd.f32 3.0, %v6053_v35  ;;  %7778 = vst [vmem:[#allocation30_spill] sm:$0xff] %v6347_v36  ;;  %v7779_v26 = vld [vmem:[#allocation31_spill] sm:$0xff]  ;;  %v6350_v9 = vpop.f32.mrb[74].mxu0 }
 0x22e   : > { %v6341_v14 = vadd.f32 %v3130_v33, %v2934_v0  ;;  %v3343_v51 = vmul.f32 %v2934_v0, %v2934_v0  ;;  %2687 = vst [vmem:[%s5763_s24 + $0x420] sm:$0xff] %v2495_v8  ;;  %v2963_v38 = vmul.f32 %v5748_v29, %v2495_v8  ;;  %2673 = vst [vmem:[%s5763_s24 + $0x3b0] sm:$0xff] %v2481_v27  ;;  %v2496_v55 = vmul.f32 0.16666667, %v2304_v49  ;;  %v7781_v7 = vld [vmem:[#allocation27_spill] sm:$0xff]  ;;  %v6355_v24 = vpop.f32.mrb[75].mxu0 }
 0x22f   : > { %v2949_v16 = vmul.f32 %v5758_v42, %v2481_v27  ;;  %v2290_v2 = vmin.f32 %v2098_v46, 6.0  ;;  %v2127_v23 = vmax.f32 %v1278_v53, 0.0  ;;  %v1409_v62 = vadd.f32 3.0, %v7779_v26  ;;  %7780 = vst [vmem:[#allocation24_spill] sm:$0xff] %v6350_v9  ;;  %7782 = vst [vmem:[#allocation29_spill] sm:$0xff] %v6355_v24  ;;  %v6359_v46 = vpop.f32.mrb[73].mxu1 }
 0x230   : > { %v6352_v35 = vadd.f32 %v3539_v52, %v3343_v51  ;;  %v3162_v44 = vadd.f32 %v7781_v7, %v2963_v38  ;;  %v3372_v33 = vmul.f32 %v2963_v38, %v2963_v38  ;;  %2688 = vst [vmem:[%s5763_s24 + $0x428] sm:$0xff] %v2496_v55  ;;  %v2964_v8 = vmul.f32 %v5753_v30, %v2496_v55  ;;  %v7784_v53 = vld [vmem:[#allocation28_spill] sm:$0xff] }
 0x231   : > { %v3147_v3 = vadd.f32 %v3146_v60, %v2949_v16  ;;  %v3358_v0 = vmul.f32 %v2949_v16, %v2949_v16  ;;  %v2482_v49 = vmul.f32 0.16666667, %v2290_v2  ;;  %v2319_v27 = vmin.f32 %v2127_v23, 6.0  ;;  %7783 = vst [vmem:[#allocation31_spill] sm:$0xff] %v6359_v46  ;;  %v7785_v51 = vld [vmem:[#allocation32_spill] sm:$0xff] }
 0x232   : > { %v3571_v26 = vadd.f32 %v7784_v53, %v3372_v33  ;;  %v2113_v36 = vmax.f32 %v1409_v62, 0.0  ;;  %v1280_v52 = vadd.f32 3.0, %v6061_v11  ;;  %v1411_v38 = vadd.f32 3.0, %v7785_v51  ;;  %v6369_v62 = vpop.f32.mrb[74].mxu1  ;;  %v7786_v53 = vld [vmem:[#allocation33_spill] sm:$0xff] }
 0x233   : > { %v3556_v7 = vadd.f32 %v3555_v34, %v3358_v0  ;;  %v3163_v60 = vadd.f32 %v3162_v44, %v2964_v8  ;;  %v3373_v9 = vmul.f32 %v2964_v8, %v2964_v8  ;;  %2674 = vst [vmem:[%s5763_s24 + $0x3b8] sm:$0xff] %v2482_v49  ;;  %v2950_v16 = vmul.f32 %v5876_v18, %v2482_v49  ;;  %v6373_v49 = vpop.f32.mrb[76].mxu0 }
 0x234   : > { %v2511_v24 = vmul.f32 0.16666667, %v2319_v27  ;;  %v2305_v55 = vmin.f32 %v2113_v36, 6.0  ;;  %v2128_v2 = vmax.f32 %v1280_v52, 0.0  ;;  %v2114_v23 = vmax.f32 %v1411_v38, 0.0  ;;  %v6375_v36 = vpop.f32.mrb[75].mxu1 }
 0x235   : > { %v3572_v19 = vadd.f32 %v3571_v26, %v3373_v9  ;;  %v6366_v46 = vadd.f32 %v3147_v3, %v2950_v16  ;;  %v3359_v33 = vmul.f32 %v2950_v16, %v2950_v16  ;;  %v1284_v11 = vadd.f32 3.0, %v6074_v63 }
 0x236   : > { %2703 = vst [vmem:[%s5763_s24 + $0x4a0] sm:$0xff] %v2511_v24  ;;  %v2979_v34 = vmul.f32 %v5748_v29, %v2511_v24  ;;  %v2497_v44 = vmul.f32 0.16666667, %v2305_v55  ;;  %v2320_v0 = vmin.f32 %v2128_v2, 6.0  ;;  %v2306_v8 = vmin.f32 %v2114_v23, 6.0 }
 0x237   : > { %v6377_v27 = vadd.f32 %v3556_v7, %v3359_v33  ;;  %v2143_v9 = vmax.f32 %v1284_v11, 0.0  ;;  %v1415_v3 = vadd.f32 3.0, %v6064_v43  ;;  %v1286_v63 = vadd.f32 3.0, %v6079_v31 }
 0x238   : > { %v3179_v26 = vadd.f32 %v7786_v53, %v2979_v34  ;;  %v3388_v52 = vmul.f32 %v2979_v34, %v2979_v34  ;;  %2689 = vst [vmem:[%s5763_s24 + $0x430] sm:$0xff] %v2497_v44  ;;  %v2965_v24 = vmul.f32 %v5758_v42, %v2497_v44  ;;  %v2512_v51 = vmul.f32 0.16666667, %v2320_v0  ;;  %v6389_v44 = vpop.f32.mrb[77].mxu0 }
 0x239   : > { %v2498_v38 = vmul.f32 0.16666667, %v2306_v8  ;;  %v2335_v16 = vmin.f32 %v2143_v9, 6.0  ;;  %v2129_v55 = vmax.f32 %v1415_v3, 0.0  ;;  %v2144_v2 = vmax.f32 %v1286_v63, 0.0  ;;  %v7787_v3 = vld [vmem:[#allocation34_spill] sm:$0xff] }
 0x23a   : > { %v3588_v7 = vadd.f32 %v6076_v10, %v3388_v52  ;;  %v3164_v23 = vadd.f32 %v3163_v60, %v2965_v24  ;;  %v3374_v33 = vmul.f32 %v2965_v24, %v2965_v24  ;;  %2704 = vst [vmem:[%s5763_s24 + $0x4a8] sm:$0xff] %v2512_v51  ;;  %v2980_v43 = vmul.f32 %v5753_v30, %v2512_v51  ;;  %v6396_v51 = vpop.f32.mrb[78].mxu0 }
 0x23b   : > { %2690 = vst [vmem:[%s5763_s24 + $0x438] sm:$0xff] %v2498_v38  ;;  %v2966_v31 = vmul.f32 %v5876_v18, %v2498_v38  ;;  %v2527_v11 = vmul.f32 0.16666667, %v2335_v16  ;;  %v2321_v34 = vmin.f32 %v2129_v55, 6.0  ;;  %v2336_v53 = vmin.f32 %v2144_v2, 6.0  ;;  %v6398_v38 = vpop.f32.mrb[76].mxu1 }
 0x23c   : > { %v3573_v0 = vadd.f32 %v3572_v19, %v3374_v33  ;;  %v3180_v8 = vadd.f32 %v3179_v26, %v2980_v43  ;;  %v3389_v9 = vmul.f32 %v2980_v43, %v2980_v43  ;;  %v1417_v10 = vadd.f32 3.0, %v7787_v3  ;;  %7788 = vst [vmem:[#allocation27_spill] sm:$0xff] %v6398_v38 }
 0x23d   : > { %v6392_v60 = vadd.f32 %v3164_v23, %v2966_v31  ;;  %v3375_v63 = vmul.f32 %v2966_v31, %v2966_v31  ;;  %2719 = vst [vmem:[%s5763_s24 + $0x520] sm:$0xff] %v2527_v11  ;;  %v2995_v52 = vmul.f32 %v5748_v29, %v2527_v11  ;;  %v2513_v24 = vmul.f32 0.16666667, %v2321_v34  ;;  %v6406_v31 = vpop.f32.mrb[79].mxu0  ;;  %v6408_v11 = vpop.f32.mrb[77].mxu1 }
 0x23e   : > { %v3589_v16 = vadd.f32 %v3588_v7, %v3389_v9  ;;  %v2528_v55 = vmul.f32 0.16666667, %v2336_v53  ;;  %v2130_v19 = vmax.f32 %v1417_v10, 0.0  ;;  %v1290_v26 = vadd.f32 3.0, %v6093_v22  ;;  %7789 = vst [vmem:[#allocation28_spill] sm:$0xff] %v6406_v31  ;;  %7790 = vst [vmem:[#allocation32_spill] sm:$0xff] %v6408_v11 }
 0x23f   : > { %v6401_v2 = vadd.f32 %v3573_v0, %v3375_v63  ;;  %v3196_v23 = vadd.f32 %v6090_v37, %v2995_v52  ;;  %v3404_v33 = vmul.f32 %v2995_v52, %v2995_v52  ;;  %2705 = vst [vmem:[%s5763_s24 + $0x4b0] sm:$0xff] %v2513_v24  ;;  %v2981_v43 = vmul.f32 %v5758_v42, %v2513_v24  ;;  %v7791_v9 = vld [vmem:[#allocation35_spill] sm:$0xff]  ;;  %v6415_v63 = vpop.f32.mrb[80].mxu0  ;;  %v6417_v52 = vpop.f32.mrb[78].mxu1 }
 0x240   : > { %2720 = vst [vmem:[%s5763_s24 + $0x528] sm:$0xff] %v2528_v55  ;;  %v2996_v34 = vmul.f32 %v5753_v30, %v2528_v55  ;;  %v2322_v7 = vmin.f32 %v2130_v19, 6.0  ;;  %v2159_v53 = vmax.f32 %v1290_v26, 0.0  ;;  %v1421_v3 = vadd.f32 3.0, %v7791_v9 }
 0x241   : > { %v3605_v22 = vadd.f32 %v6097_v40, %v3404_v33  ;;  %v3181_v0 = vadd.f32 %v3180_v8, %v2981_v43  ;;  %v3390_v37 = vmul.f32 %v2981_v43, %v2981_v43  ;;  %v1292_v10 = vadd.f32 3.0, %v6095_v21  ;;  %v6420_v40 = vpop.f32.mrb[81].mxu0  ;;  %v6422_v8 = vpop.f32.mrb[79].mxu1 }
 0x242   : > { %v3197_v24 = vadd.f32 %v3196_v23, %v2996_v34  ;;  %v3405_v11 = vmul.f32 %v2996_v34, %v2996_v34  ;;  %v2514_v31 = vmul.f32 0.16666667, %v2322_v7  ;;  %v2351_v38 = vmin.f32 %v2159_v53, 6.0  ;;  %7792 = vst [vmem:[#allocation33_spill] sm:$0xff] %v6422_v8  ;;  %v7793_v53 = vld [vmem:[#allocation37_spill] sm:$0xff] }
 0x243   : > { %v3590_v55 = vadd.f32 %v3589_v16, %v3390_v37  ;;  %v2145_v19 = vmax.f32 %v1421_v3, 0.0  ;;  %v2160_v26 = vmax.f32 %v1292_v10, 0.0  ;;  %v1423_v9 = vadd.f32 3.0, %v6088_v5 }
 0x244   : > { %v3606_v21 = vadd.f32 %v3605_v22, %v3405_v11  ;;  %2706 = vst [vmem:[%s5763_s24 + $0x4b8] sm:$0xff] %v2514_v31  ;;  %v2982_v33 = vmul.f32 %v5876_v18, %v2514_v31  ;;  %v2543_v43 = vmul.f32 0.16666667, %v2351_v38  ;;  %v1427_v23 = vadd.f32 3.0, %v6100_v12  ;;  %v6433_v22 = vld [vmem:[%s5167_s14 + $0x8] sm:$0xff] }
 0x245   : > { %v2337_v34 = vmin.f32 %v2145_v19, 6.0  ;;  %v2352_v7 = vmin.f32 %v2160_v26, 6.0  ;;  %v2146_v16 = vmax.f32 %v1423_v9, 0.0  ;;  %v1498_v3 = vadd.f32 3.0, %v7793_v53 }
 0x246   : > { %v6428_v37 = vadd.f32 %v3181_v0, %v2982_v33  ;;  %v3391_v5 = vmul.f32 %v2982_v33, %v2982_v33  ;;  %2735 = vst [vmem:[%s5763_s24 + $0x5a0] sm:$0xff] %v2543_v43  ;;  %v3011_v10 = vmul.f32 %v5748_v29, %v2543_v43  ;;  %v2161_v11 = vmax.f32 %v1427_v23, 0.0 }
 0x247   : > { %v2529_v31 = vmul.f32 0.16666667, %v2337_v34  ;;  %v2544_v38 = vmul.f32 0.16666667, %v2352_v7  ;;  %v2338_v8 = vmin.f32 %v2146_v16, 6.0  ;;  %v1987_v12 = vmax.f32 %v1498_v3, 0.0 }
 0x248   : > { %v6435_v19 = vadd.f32 %v3590_v55, %v3391_v5  ;;  %v3213_v26 = vadd.f32 %v6116_v61, %v3011_v10  ;;  %v3420_v9 = vmul.f32 %v3011_v10, %v3011_v10  ;;  %v2353_v0 = vmin.f32 %v2161_v11, 6.0  ;;  %v7794_v16 = vld [vmem:[#allocation8_spill] sm:$0xff] }
 0x249   : > { %2721 = vst [vmem:[%s5763_s24 + $0x530] sm:$0xff] %v2529_v31  ;;  %v2997_v33 = vmul.f32 %v5758_v42, %v2529_v31  ;;  %2736 = vst [vmem:[%s5763_s24 + $0x5a8] sm:$0xff] %v2544_v38  ;;  %v3012_v29 = vmul.f32 %v5753_v30, %v2544_v38  ;;  %v2530_v43 = vmul.f32 0.16666667, %v2338_v8  ;;  %v2179_v23 = vmin.f32 %v1987_v12, 6.0  ;;  %v7796_v61 = vld [vmem:[#allocation36_spill] sm:$0xff] }
 0x24a   : > { %v3622_v34 = vadd.f32 %v6128_v59, %v3420_v9  ;;  %v2545_v7 = vmul.f32 0.16666667, %v2353_v0  ;;  %v7795_v55 = vsub.s32 0, %v7794_v16  ;;  %v1429_v3 = vadd.f32 3.0, %v7796_v61 }
 0x24b   : > { %v3198_v5 = vadd.f32 %v3197_v24, %v2997_v33  ;;  %v3406_v10 = vmul.f32 %v2997_v33, %v2997_v33  ;;  %v3214_v11 = vadd.f32 %v3213_v26, %v3012_v29  ;;  %v3421_v31 = vmul.f32 %v3012_v29, %v3012_v29  ;;  %2722 = vst [vmem:[%s5763_s24 + $0x538] sm:$0xff] %v2530_v43 }
 0x24c   : > { %v6446_v53 = vrot.slane %v6433_v22, %v7795_v55  ;;  %v2998_v30 = vmul.f32 %v5876_v18, %v2530_v43  ;;  %2737 = vst [vmem:[%s5763_s24 + $0x5b0] sm:$0xff] %v2545_v7  ;;  %v3013_v8 = vmul.f32 %v5758_v42, %v2545_v7  ;;  %v2371_v59 = vmul.f32 0.16666667, %v2179_v23  ;;  %v6462_v43 = vpop.f32.mrb[82].mxu0 }
 0x24d   : > { %v2162_v38 = vmax.f32 %v1429_v3, 0.0  ;;  %v3607_v12 = vadd.f32 %v3606_v21, %v3406_v10  ;;  %v3623_v9 = vadd.f32 %v3622_v34, %v3421_v31  ;;  %v1500_v0 = vadd.f32 3.0, %v6113_v4  ;;  %7798 = vst [vmem:[#allocation34_spill] sm:$0xff] %v6462_v43  ;;  %v6466_v4 = vpop.f32.mrb[80].mxu1 }
 0x24e   : > { %v7797_v55 = vsub.s32 1, %v7794_v16  ;;  %v6459_v26 = vadd.f32 %v3198_v5, %v2998_v30  ;;  %v3407_v33 = vmul.f32 %v2998_v30, %v2998_v30  ;;  %v3215_v29 = vadd.f32 %v3214_v11, %v3013_v8  ;;  %2563 = vst [vmem:[%s5763_s24 + $0x40] sm:$0xff] %v2371_v59  ;;  %7799 = vst [vmem:[#allocation35_spill] sm:$0xff] %v6466_v4 }
 0x24f   : > { %v3422_v61 = vmul.f32 %v3013_v8, %v3013_v8  ;;  %v2839_v42 = vmul.f32 %v6446_v53, %v2371_v59  ;;  %v2354_v23 = vmin.f32 %v2162_v38, 6.0  ;;  %v1988_v21 = vmax.f32 %v1500_v0, 0.0  ;;  %v6477_v38 = vpop.f32.mrb[83].mxu0 }
 0x250   : > { %v6457_v24 = vrot.slane %v6433_v22, %v7797_v55  ;;  %v1504_v34 = vadd.f32 3.0, %v6124_v28  ;;  %v6468_v7 = vadd.f32 %v3607_v12, %v3407_v33  ;;  %v1635_v5 = vadd.f32 3.0, %v6118_v39  ;;  %7801 = vst [vmem:[#allocation37_spill] sm:$0xff] %v6477_v38  ;;  %v6479_v28 = vpop.f32.mrb[81].mxu1  ;;  %v7804_v39 = vld [vmem:[#allocation38_spill] sm:$0xff]  ;;  %v6498_v4 = vpop.f32.mrb[84].mxu0 }
 0x251   : > { %v3624_v3 = vadd.f32 %v3623_v9, %v3422_v61  ;;  %v7800_v10 = vsub.s32 2, %v7794_v16  ;;  %v3030_v31 = vadd.f32 %v6157_v17, %v2839_v42  ;;  %v3248_v30 = vmul.f32 %v2839_v42, %v2839_v42  ;;  %7802 = vst [vmem:[#allocation8_spill] sm:$0xff] %v6479_v28  ;;  %v7803_v9 = vld [vmem:[#allocation39_spill] sm:$0xff]  ;;  %7806 = vst [vmem:[#allocation36_spill] sm:$0xff] %v6498_v4 }
 0x252   : > { %v2546_v8 = vmul.f32 0.16666667, %v2354_v23  ;;  %v2180_v59 = vmin.f32 %v1988_v21, 6.0  ;;  %v2003_v12 = vmax.f32 %v1504_v34, 0.0  ;;  %v1989_v0 = vmax.f32 %v1635_v5, 0.0 }
 0x253   : > { %v6474_v11 = vrot.slane %v6433_v22, %v7800_v10  ;;  %v1506_v55 = vadd.f32 3.0, %v7803_v9  ;;  %v1637_v33 = vadd.f32 3.0, %v7804_v39  ;;  %v3439_v61 = vadd.f32 %v6164_v25, %v3248_v30 }
 0x254   : > { %2738 = vst [vmem:[%s5763_s24 + $0x5b8] sm:$0xff] %v2546_v8  ;;  %v3014_v10 = vmul.f32 %v5876_v18, %v2546_v8  ;;  %v2372_v17 = vmul.f32 0.16666667, %v2180_v59  ;;  %v7805_v42 = vsub.s32 3, %v7794_v16  ;;  %v2195_v21 = vmin.f32 %v2003_v12, 6.0 }
 0x255   : > { %v2181_v28 = vmin.f32 %v1989_v0, 6.0  ;;  %v2004_v38 = vmax.f32 %v1506_v55, 0.0  ;;  %v1990_v34 = vmax.f32 %v1637_v33, 0.0  ;;  %v1510_v18 = vadd.f32 3.0, %v6145_v50 }
 0x256   : > { %v6489_v23 = vrot.slane %v6433_v22, %v7805_v42  ;;  %v6491_v5 = vadd.f32 %v3215_v29, %v3014_v10  ;;  %v3423_v9 = vmul.f32 %v3014_v10, %v3014_v10  ;;  %2564 = vst [vmem:[%s5763_s24 + $0x48] sm:$0xff] %v2372_v17  ;;  %v2840_v25 = vmul.f32 %v6457_v24, %v2372_v17  ;;  %v7807_v17 = vld [vmem:[#allocation40_spill] sm:$0xff] }
 0x257   : > { %v2387_v30 = vmul.f32 0.16666667, %v2195_v21  ;;  %v2373_v8 = vmul.f32 0.16666667, %v2181_v28  ;;  %v2196_v59 = vmin.f32 %v2004_v38, 6.0  ;;  %v2182_v39 = vmin.f32 %v1990_v34, 6.0 }
 0x258   : > { %v6496_v42 = vadd.f32 %v3624_v3, %v3423_v9  ;;  %v3031_v12 = vadd.f32 %v3030_v31, %v2840_v25  ;;  %v3249_v0 = vmul.f32 %v2840_v25, %v2840_v25  ;;  %v2019_v55 = vmax.f32 %v1510_v18, 0.0  ;;  %v6506_v21 = vpop.f32.mrb[82].mxu1 }
 0x259   : > { %2579 = vst [vmem:[%s5763_s24 + $0xc0] sm:$0xff] %v2387_v30  ;;  %v2855_v29 = vmul.f32 %v6446_v53, %v2387_v30  ;;  %2565 = vst [vmem:[%s5763_s24 + $0x50] sm:$0xff] %v2373_v8  ;;  %v2841_v33 = vmul.f32 %v6474_v11, %v2373_v8  ;;  %v2388_v50 = vmul.f32 0.16666667, %v2196_v59  ;;  %v2374_v10 = vmul.f32 0.16666667, %v2182_v39 }
 0x25a   : > { %v3440_v28 = vadd.f32 %v3439_v61, %v3249_v0  ;;  %v2211_v38 = vmin.f32 %v2019_v55, 6.0  ;;  %v1641_v3 = vadd.f32 3.0, %v7807_v17  ;;  %v1512_v31 = vadd.f32 3.0, %v6148_v48  ;;  %7808 = vst [vmem:[#allocation39_spill] sm:$0xff] %v6506_v21  ;;  %v7809_v55 = vld [vmem:[#allocation41_spill] sm:$0xff] }
 0x25b   : > { %v3047_v34 = vadd.f32 %v6195_v54, %v2855_v29  ;;  %v3264_v9 = vmul.f32 %v2855_v29, %v2855_v29  ;;  %v3032_v25 = vadd.f32 %v3031_v12, %v2841_v33  ;;  %v3250_v18 = vmul.f32 %v2841_v33, %v2841_v33  ;;  %2580 = vst [vmem:[%s5763_s24 + $0xc8] sm:$0xff] %v2388_v50 }
 0x25c   : > { %2566 = vst [vmem:[%s5763_s24 + $0x58] sm:$0xff] %v2374_v10  ;;  %v2856_v30 = vmul.f32 %v6457_v24, %v2388_v50  ;;  %v2842_v8 = vmul.f32 %v6489_v23, %v2374_v10  ;;  %v2403_v61 = vmul.f32 0.16666667, %v2211_v38  ;;  %v2005_v59 = vmax.f32 %v1641_v3, 0.0  ;;  %v6519_v10 = vpop.f32.mrb[85].mxu0  ;;  %v6521_v38 = vpop.f32.mrb[83].mxu1 }
 0x25d   : > { %v3456_v39 = vadd.f32 %v6204_v41, %v3264_v9  ;;  %v3441_v0 = vadd.f32 %v3440_v28, %v3250_v18  ;;  %v2020_v48 = vmax.f32 %v1512_v31, 0.0  ;;  %v1643_v17 = vadd.f32 3.0, %v7809_v55 }
 0x25e   : > { %v3048_v21 = vadd.f32 %v3047_v34, %v2856_v30  ;;  %v3265_v54 = vmul.f32 %v2856_v30, %v2856_v30  ;;  %v6515_v29 = vadd.f32 %v3032_v25, %v2842_v8  ;;  %v3251_v12 = vmul.f32 %v2842_v8, %v2842_v8  ;;  %2595 = vst [vmem:[%s5763_s24 + $0x140] sm:$0xff] %v2403_v61  ;;  %v6527_v34 = vpop.f32.mrb[86].mxu0  ;;  %v6530_v8 = vpop.f32.mrb[84].mxu1 }
 0x25f   : > { %v2871_v33 = vmul.f32 %v6446_v53, %v2403_v61  ;;  %v2197_v4 = vmin.f32 %v2005_v59, 6.0  ;;  %v2212_v50 = vmin.f32 %v2020_v48, 6.0  ;;  %v2006_v43 = vmax.f32 %v1643_v17, 0.0  ;;  %7810 = vst [vmem:[#allocation38_spill] sm:$0xff] %v6530_v8 }
 0x260   : > { %v3457_v41 = vadd.f32 %v3456_v39, %v3265_v54  ;;  %v6523_v28 = vadd.f32 %v3441_v0, %v3251_v12  ;;  %v1516_v3 = vadd.f32 3.0, %v6159_v15  ;;  %v1647_v31 = vadd.f32 3.0, %v6151_v45 }
 0x261   : > { %v3064_v9 = vadd.f32 %v6228_v57, %v2871_v33  ;;  %v3280_v25 = vmul.f32 %v2871_v33, %v2871_v33  ;;  %v2389_v18 = vmul.f32 0.16666667, %v2197_v4  ;;  %v2404_v30 = vmul.f32 0.16666667, %v2212_v50  ;;  %v7811_v57 = vld [vmem:[#allocation42_spill] sm:$0xff]  ;;  %v6539_v4 = vpop.f32.mrb[87].mxu0 }
 0x262   : > { %v2198_v61 = vmin.f32 %v2006_v43, 6.0  ;;  %v2035_v59 = vmax.f32 %v1516_v3, 0.0  ;;  %v2021_v48 = vmax.f32 %v1647_v31, 0.0  ;;  %v1518_v39 = vadd.f32 3.0, %v6162_v32  ;;  %7812 = vst [vmem:[#allocation40_spill] sm:$0xff] %v6539_v4 }
 0x263   : > { %v3473_v0 = vadd.f32 %v6236_v56, %v3280_v25  ;;  %2581 = vst [vmem:[%s5763_s24 + $0xd0] sm:$0xff] %v2389_v18  ;;  %v2857_v45 = vmul.f32 %v6474_v11, %v2389_v18  ;;  %2596 = vst [vmem:[%s5763_s24 + $0x148] sm:$0xff] %v2404_v30  ;;  %v2872_v15 = vmul.f32 %v6457_v24, %v2404_v30  ;;  %v1649_v55 = vadd.f32 3.0, %v7811_v57  ;;  %v6545_v30 = vpop.f32.mrb[85].mxu1 }
 0x264   : > { %v2390_v17 = vmul.f32 0.16666667, %v2198_v61  ;;  %v2227_v54 = vmin.f32 %v2035_v59, 6.0  ;;  %v2213_v43 = vmin.f32 %v2021_v48, 6.0  ;;  %v2036_v12 = vmax.f32 %v1518_v39, 0.0  ;;  %7813 = vst [vmem:[#allocation41_spill] sm:$0xff] %v6545_v30 }
 0x265   : > { %v3049_v33 = vadd.f32 %v3048_v21, %v2857_v45  ;;  %v3266_v32 = vmul.f32 %v2857_v45, %v2857_v45  ;;  %v3065_v50 = vadd.f32 %v3064_v9, %v2872_v15  ;;  %v3281_v56 = vmul.f32 %v2872_v15, %v2872_v15  ;;  %v7814_v48 = vld [vmem:[#allocation45_spill] sm:$0xff]  ;;  %v6557_v15 = vpop.f32.mrb[88].mxu0 }
 0x266   : > { %2582 = vst [vmem:[%s5763_s24 + $0xd8] sm:$0xff] %v2390_v17  ;;  %v6543_v3 = vmul.f32 %v6489_v23, %v2390_v17  ;;  %v2419_v31 = vmul.f32 0.16666667, %v2227_v54  ;;  %v2405_v25 = vmul.f32 0.16666667, %v2213_v43  ;;  %v2228_v18 = vmin.f32 %v2036_v12, 6.0 }
 0x267   : > { %v6547_v57 = vadd.f32 %v3457_v41, %v3266_v32  ;;  %v3474_v61 = vadd.f32 %v3473_v0, %v3281_v56  ;;  %v2022_v59 = vmax.f32 %v1649_v55, 0.0  ;;  %v1522_v21 = vadd.f32 3.0, %v7814_v48  ;;  %7815 = vst [vmem:[#allocation42_spill] sm:$0xff] %v6557_v15  ;;  %v7816_v43 = vld [vmem:[#allocation43_spill] sm:$0xff]  ;;  %v6565_v15 = vpop.f32.mrb[89].mxu0 }
 0x268   : > { %v6551_v39 = vadd.f32 %v3049_v33, %v6543_v3  ;;  %2611 = vst [vmem:[%s5763_s24 + $0x1c0] sm:$0xff] %v2419_v31  ;;  %v2887_v9 = vmul.f32 %v6446_v53, %v2419_v31  ;;  %2597 = vst [vmem:[%s5763_s24 + $0x150] sm:$0xff] %v2405_v25  ;;  %v2873_v45 = vmul.f32 %v6474_v11, %v2405_v25  ;;  %v2420_v17 = vmul.f32 0.16666667, %v2228_v18  ;;  %v6563_v25 = vpop.f32.mrb[86].mxu1 }
 0x269   : > { %v2214_v54 = vmin.f32 %v2022_v59, 6.0  ;;  %v2051_v41 = vmax.f32 %v1522_v21, 0.0  ;;  %v1653_v0 = vadd.f32 3.0, %v7816_v43  ;;  %7817 = vst [vmem:[#allocation45_spill] sm:$0xff] %v6563_v25  ;;  %7818 = vst [vmem:[#allocation43_spill] sm:$0xff] %v6565_v15  ;;  %v1524_v21 = vadd.f32 3.0, %v6180_v13 }
 0x26a   : > { %v3081_v55 = vadd.f32 %v6258_v20, %v2887_v9  ;;  %v3296_v12 = vmul.f32 %v2887_v9, %v2887_v9  ;;  %v3066_v32 = vadd.f32 %v3065_v50, %v2873_v45  ;;  %v3282_v33 = vmul.f32 %v2873_v45, %v2873_v45  ;;  %2612 = vst [vmem:[%s5763_s24 + $0x1c8] sm:$0xff] %v2420_v17  ;;  %v7819_v20 = vld [vmem:[#allocation44_spill] sm:$0xff]  ;;  %v7821_v15 = vld [vmem:[#allocation47_spill] sm:$0xff] }
 0x26b   : > { %v2888_v56 = vmul.f32 %v6457_v24, %v2420_v17  ;;  %v2406_v31 = vmul.f32 0.16666667, %v2214_v54  ;;  %v2243_v48 = vmin.f32 %v2051_v41, 6.0  ;;  %v2037_v30 = vmax.f32 %v1653_v0, 0.0  ;;  %v6572_v41 = vpop.f32.mrb[87].mxu1 }
 0x26c   : > { %v3490_v18 = vadd.f32 %v6269_v47, %v3296_v12  ;;  %v3475_v59 = vadd.f32 %v3474_v61, %v3282_v33  ;;  %v1655_v9 = vadd.f32 3.0, %v7819_v20  ;;  %7820 = vst [vmem:[#allocation44_spill] sm:$0xff] %v6572_v41  ;;  %v2052_v0 = vmax.f32 %v1524_v21, 0.0  ;;  %v6575_v61 = vpop.f32.mrb[90].mxu0 }
 0x26d   : > { %v3082_v50 = vadd.f32 %v3081_v55, %v2888_v56  ;;  %v3297_v45 = vmul.f32 %v2888_v56, %v2888_v56  ;;  %2598 = vst [vmem:[%s5763_s24 + $0x158] sm:$0xff] %v2406_v31  ;;  %v2874_v17 = vmul.f32 %v6489_v23, %v2406_v31  ;;  %v2435_v54 = vmul.f32 0.16666667, %v2243_v48  ;;  %7822 = vst [vmem:[#allocation47_spill] sm:$0xff] %v6575_v61 }
 0x26e   : > { %v2229_v43 = vmin.f32 %v2037_v30, 6.0  ;;  %v2038_v25 = vmax.f32 %v1655_v9, 0.0  ;;  %v1528_v47 = vadd.f32 3.0, %v7821_v15  ;;  %v2244_v31 = vmin.f32 %v2052_v0, 6.0  ;;  %v7824_v30 = vld [vmem:[#allocation58_spill] sm:$0xff]  ;;  %v7825_v15 = vld [vmem:[#allocation15_spill] sm:$0xff] }
 0x26f   : > { %v3491_v13 = vadd.f32 %v3490_v18, %v3297_v45  ;;  %v6577_v12 = vadd.f32 %v3066_v32, %v2874_v17  ;;  %v3283_v33 = vmul.f32 %v2874_v17, %v2874_v17  ;;  %2627 = vst [vmem:[%s5763_s24 + $0x240] sm:$0xff] %v2435_v54  ;;  %v2903_v55 = vmul.f32 %v6446_v53, %v2435_v54  ;;  %v6587_v54 = vpop.f32.mrb[88].mxu1 }
 0x270   : > { %v2421_v56 = vmul.f32 0.16666667, %v2229_v43  ;;  %v2230_v48 = vmin.f32 %v2038_v25, 6.0  ;;  %v2067_v20 = vmax.f32 %v1528_v47, 0.0  ;;  %v1659_v61 = vadd.f32 3.0, %v7825_v15  ;;  %7826 = vst [vmem:[#allocation58_spill] sm:$0xff] %v6587_v54 }
 0x271   : > { %v6581_v41 = vadd.f32 %v3475_v59, %v3283_v33  ;;  %v3098_v21 = vadd.f32 %v7824_v30, %v2903_v55  ;;  %v3312_v9 = vmul.f32 %v2903_v55, %v2903_v55  ;;  %v2436_v18 = vmul.f32 0.16666667, %v2244_v31  ;;  %v7827_v43 = vld [vmem:[#allocation60_spill] sm:$0xff]  ;;  %v7828_v59 = vld [vmem:[#allocation9_spill] sm:$0xff]  ;;  %v7829_v33 = vld [vmem:[#allocation46_spill] sm:$0xff]  ;;  %v6596_v31 = vpop.f32.mrb[91].mxu0 }
 0x272   : > { %2613 = vst [vmem:[%s5763_s24 + $0x1d0] sm:$0xff] %v2421_v56  ;;  %v2889_v32 = vmul.f32 %v6474_v11, %v2421_v56  ;;  %v2422_v45 = vmul.f32 0.16666667, %v2230_v48  ;;  %v2259_v17 = vmin.f32 %v2067_v20, 6.0  ;;  %v2053_v0 = vmax.f32 %v1659_v61, 0.0  ;;  %7830 = vst [vmem:[#allocation15_spill] sm:$0xff] %v6596_v31 }
 0x273   : > { %7823 = vst [vmem:[#allocation62_spill] sm:$0xff] %v6581_v41  ;;  %v3507_v25 = vadd.f32 %v7827_v43, %v3312_v9  ;;  %v1530_v47 = vadd.f32 3.0, %v7828_v59  ;;  %v1661_v41 = vadd.f32 3.0, %v7829_v33  ;;  %2628 = vst [vmem:[%s5763_s24 + $0x248] sm:$0xff] %v2436_v18  ;;  %v2904_v15 = vmul.f32 %v6457_v24, %v2436_v18  ;;  %v6602_v8 = vpop.f32.mrb[89].mxu1  ;;  %v7842_v31 = vld [vmem:[#allocation17_spill] sm:$0xff] }
 0x274   : > { %v3083_v30 = vadd.f32 %v3082_v50, %v2889_v32  ;;  %v3298_v55 = vmul.f32 %v2889_v32, %v2889_v32  ;;  %2614 = vst [vmem:[%s5763_s24 + $0x1d8] sm:$0xff] %v2422_v45  ;;  %v2890_v56 = vmul.f32 %v6489_v23, %v2422_v45  ;;  %v2451_v48 = vmul.f32 0.16666667, %v2259_v17  ;;  %7831 = vst [vmem:[#allocation60_spill] sm:$0xff] %v6602_v8  ;;  %v6604_v45 = vpop.f32.mrb[92].mxu0  ;;  %v7839_v8 = vld [vmem:[#allocation21_spill] sm:$0xff] }
 0x275   : > { %v2245_v20 = vmin.f32 %v2053_v0, 6.0  ;;  %v2068_v54 = vmax.f32 %v1530_v47, 0.0  ;;  %v2054_v9 = vmax.f32 %v1661_v41, 0.0  ;;  %v3099_v43 = vadd.f32 %v3098_v21, %v2904_v15  ;;  %7832 = vst [vmem:[#allocation9_spill] sm:$0xff] %v6604_v45  ;;  %v7833_v47 = vld [vmem:[#allocation10_spill] sm:$0xff] }
 0x276   : > { %v3492_v61 = vadd.f32 %v3491_v13, %v3298_v55  ;;  %v3313_v59 = vmul.f32 %v2904_v15, %v2904_v15  ;;  %v6598_v33 = vadd.f32 %v3083_v30, %v2890_v56  ;;  %v3299_v50 = vmul.f32 %v2890_v56, %v2890_v56  ;;  %2643 = vst [vmem:[%s5763_s24 + $0x2c0] sm:$0xff] %v2451_v48  ;;  %v7834_v13 = vld [vmem:[#allocation48_spill] sm:$0xff]  ;;  %v6613_v56 = vpop.f32.mrb[90].mxu1  ;;  %v7836_v45 = vld [vmem:[#allocation50_spill] sm:$0xff] }
 0x277   : > { %v2919_v32 = vmul.f32 %v6446_v53, %v2451_v48  ;;  %v2437_v18 = vmul.f32 0.16666667, %v2245_v20  ;;  %v2260_v4 = vmin.f32 %v2068_v54, 6.0  ;;  %v2246_v0 = vmin.f32 %v2054_v9, 6.0  ;;  %7835 = vst [vmem:[#allocation46_spill] sm:$0xff] %v6613_v56 }
 0x278   : > { %v3508_v17 = vadd.f32 %v3507_v25, %v3313_v59  ;;  %v1534_v41 = vadd.f32 3.0, %v7833_v47  ;;  %v1665_v21 = vadd.f32 3.0, %v7834_v13  ;;  %v6608_v55 = vadd.f32 %v3492_v61, %v3299_v50  ;;  %v6617_v50 = vpop.f32.mrb[93].mxu0 }
 0x279   : > { %v3115_v30 = vadd.f32 %v6314_v58, %v2919_v32  ;;  %v3328_v15 = vmul.f32 %v2919_v32, %v2919_v32  ;;  %2629 = vst [vmem:[%s5763_s24 + $0x250] sm:$0xff] %v2437_v18  ;;  %v2905_v54 = vmul.f32 %v6474_v11, %v2437_v18  ;;  %v2452_v48 = vmul.f32 0.16666667, %v2260_v4  ;;  %7837 = vst [vmem:[#allocation10_spill] sm:$0xff] %v6617_v50  ;;  %v6627_v50 = vpop.f32.mrb[91].mxu1 }
 0x27a   : > { %v2438_v20 = vmul.f32 0.16666667, %v2246_v0  ;;  %v2083_v25 = vmax.f32 %v1534_v41, 0.0  ;;  %v2069_v9 = vmax.f32 %v1665_v21, 0.0  ;;  %v1536_v61 = vadd.f32 3.0, %v7836_v45  ;;  %v7838_v41 = vld [vmem:[#allocation49_spill] sm:$0xff] }
 0x27b   : > { %v3524_v59 = vadd.f32 %v6318_v1, %v3328_v15  ;;  %v3100_v47 = vadd.f32 %v3099_v43, %v2905_v54  ;;  %v3314_v13 = vmul.f32 %v2905_v54, %v2905_v54  ;;  %2644 = vst [vmem:[%s5763_s24 + $0x2c8] sm:$0xff] %v2452_v48  ;;  %v2920_v58 = vmul.f32 %v6457_v24, %v2452_v48  ;;  %v6629_v48 = vpop.f32.mrb[94].mxu0 }
 0x27c   : > { %2630 = vst [vmem:[%s5763_s24 + $0x258] sm:$0xff] %v2438_v20  ;;  %v2906_v32 = vmul.f32 %v6489_v23, %v2438_v20  ;;  %v2275_v18 = vmin.f32 %v2083_v25, 6.0  ;;  %v2261_v56 = vmin.f32 %v2069_v9, 6.0  ;;  %v2084_v0 = vmax.f32 %v1536_v61, 0.0  ;;  %7840 = vst [vmem:[#allocation48_spill] sm:$0xff] %v6627_v50 }
 0x27d   : > { %v3509_v4 = vadd.f32 %v3508_v17, %v3314_v13  ;;  %v1667_v21 = vadd.f32 3.0, %v7838_v41  ;;  %v1540_v1 = vadd.f32 3.0, %v7839_v8  ;;  %v3116_v43 = vadd.f32 %v3115_v30, %v2920_v58  ;;  %7841 = vst [vmem:[#allocation50_spill] sm:$0xff] %v6629_v48 }
 0x27e   : > { %v3329_v45 = vmul.f32 %v2920_v58, %v2920_v58  ;;  %v6625_v15 = vadd.f32 %v3100_v47, %v2906_v32  ;;  %v3315_v54 = vmul.f32 %v2906_v32, %v2906_v32  ;;  %v2467_v20 = vmul.f32 0.16666667, %v2275_v18 }
 0x27f   : > { %v2453_v25 = vmul.f32 0.16666667, %v2261_v56  ;;  %v2276_v9 = vmin.f32 %v2084_v0, 6.0  ;;  %v2070_v17 = vmax.f32 %v1667_v21, 0.0  ;;  %v2099_v41 = vmax.f32 %v1540_v1, 0.0  ;;  %v7843_v56 = vld [vmem:[#allocation19_spill] sm:$0xff] }
 0x280   : > { %v3525_v13 = vadd.f32 %v3524_v59, %v3329_v45  ;;  %v6631_v61 = vadd.f32 %v3509_v4, %v3315_v54  ;;  %v1671_v8 = vadd.f32 3.0, %v7842_v31  ;;  %2659 = vst [vmem:[%s5763_s24 + $0x340] sm:$0xff] %v2467_v20  ;;  %v2935_v30 = vmul.f32 %v6446_v53, %v2467_v20  ;;  %v7844_v21 = vld [vmem:[#allocation51_spill] sm:$0xff]  ;;  %v6640_v4 = vpop.f32.mrb[92].mxu1  ;;  %v6644_v20 = vpop.f32.mrb[95].mxu0 }
 0x281   : > { %2645 = vst [vmem:[%s5763_s24 + $0x2d0] sm:$0xff] %v2453_v25  ;;  %v2921_v47 = vmul.f32 %v6474_v11, %v2453_v25  ;;  %v2468_v58 = vmul.f32 0.16666667, %v2276_v9  ;;  %v2262_v32 = vmin.f32 %v2070_v17, 6.0  ;;  %v2291_v48 = vmin.f32 %v2099_v41, 6.0  ;;  %7845 = vst [vmem:[#allocation49_spill] sm:$0xff] %v6640_v4 }
 0x282   : > { %v2085_v18 = vmax.f32 %v1671_v8, 0.0  ;;  %v1542_v0 = vadd.f32 3.0, %v7843_v56  ;;  %v1673_v59 = vadd.f32 3.0, %v7844_v21  ;;  %v3132_v1 = vadd.f32 %v6341_v14, %v2935_v30  ;;  %7846 = vst [vmem:[#allocation21_spill] sm:$0xff] %v6644_v20 }
 0x283   : > { %v3344_v31 = vmul.f32 %v2935_v30, %v2935_v30  ;;  %v3117_v45 = vadd.f32 %v3116_v43, %v2921_v47  ;;  %v3330_v54 = vmul.f32 %v2921_v47, %v2921_v47  ;;  %2660 = vst [vmem:[%s5763_s24 + $0x348] sm:$0xff] %v2468_v58  ;;  %v2936_v25 = vmul.f32 %v6457_v24, %v2468_v58  ;;  %v6652_v47 = vpop.f32.mrb[93].mxu1 }
 0x284   : > { %v2454_v9 = vmul.f32 0.16666667, %v2262_v32  ;;  %v2483_v17 = vmul.f32 0.16666667, %v2291_v48  ;;  %v2277_v41 = vmin.f32 %v2085_v18, 6.0  ;;  %v2100_v21 = vmax.f32 %v1542_v0, 0.0 }
 0x285   : > { %v3541_v8 = vadd.f32 %v6352_v35, %v3344_v31  ;;  %v3526_v56 = vadd.f32 %v3525_v13, %v3330_v54  ;;  %v2086_v4 = vmax.f32 %v1673_v59, 0.0  ;;  %v3133_v50 = vadd.f32 %v3132_v1, %v2936_v25  ;;  %7847 = vst [vmem:[#allocation17_spill] sm:$0xff] %v6652_v47  ;;  %v7848_v18 = vld [vmem:[#allocation53_spill] sm:$0xff]  ;;  %v6655_v35 = vpop.f32.mrb[94].mxu1 }
 0x286   : > { %v3345_v14 = vmul.f32 %v2936_v25, %v2936_v25  ;;  %2646 = vst [vmem:[%s5763_s24 + $0x2d8] sm:$0xff] %v2454_v9  ;;  %v2922_v43 = vmul.f32 %v6489_v23, %v2454_v9  ;;  %2675 = vst [vmem:[%s5763_s24 + $0x3c0] sm:$0xff] %v2483_v17  ;;  %v2951_v30 = vmul.f32 %v6446_v53, %v2483_v17  ;;  %v2469_v58 = vmul.f32 0.16666667, %v2277_v41  ;;  %v6662_v17 = vpop.f32.mrb[95].mxu1 }
 0x287   : > { %v2292_v32 = vmin.f32 %v2100_v21, 6.0  ;;  %v2278_v48 = vmin.f32 %v2086_v4, 6.0  ;;  %v1546_v20 = vadd.f32 3.0, %v7848_v18  ;;  %7849 = vst [vmem:[#allocation19_spill] sm:$0xff] %v6655_v35  ;;  %7850 = vst [vmem:[#allocation51_spill] sm:$0xff] %v6662_v17  ;;  %v7852_v21 = vld [vmem:[#allocation52_spill] sm:$0xff] }
 0x288   : > { %v3542_v13 = vadd.f32 %v3541_v8, %v3345_v14  ;;  %v6657_v0 = vadd.f32 %v3117_v45, %v2922_v43  ;;  %v3331_v59 = vmul.f32 %v2922_v43, %v2922_v43  ;;  %v3149_v1 = vadd.f32 %v6366_v46, %v2951_v30  ;;  %2661 = vst [vmem:[%s5763_s24 + $0x350] sm:$0xff] %v2469_v58  ;;  %v7853_v45 = vld [vmem:[#allocation12_spill] sm:$0xff] }
 0x289   : > { %v3360_v31 = vmul.f32 %v2951_v30, %v2951_v30  ;;  %v2937_v54 = vmul.f32 %v6474_v11, %v2469_v58  ;;  %v2484_v25 = vmul.f32 0.16666667, %v2292_v32  ;;  %v2470_v9 = vmul.f32 0.16666667, %v2278_v48 }
 0x28a   : > { %v6664_v4 = vadd.f32 %v3526_v56, %v3331_v59  ;;  %v2115_v41 = vmax.f32 %v1546_v20, 0.0  ;;  %v1677_v8 = vadd.f32 3.0, %v7852_v21  ;;  %v1548_v14 = vadd.f32 3.0, %v7853_v45  ;;  %v7854_v21 = vld [vmem:[#allocation11_spill] sm:$0xff] }
 0x28b   : > { %v3558_v43 = vadd.f32 %v6377_v27, %v3360_v31  ;;  %v3134_v18 = vadd.f32 %v3133_v50, %v2937_v54  ;;  %v3346_v46 = vmul.f32 %v2937_v54, %v2937_v54  ;;  %2676 = vst [vmem:[%s5763_s24 + $0x3c8] sm:$0xff] %v2484_v25  ;;  %v2952_v30 = vmul.f32 %v6457_v24, %v2484_v25 }
 0x28c   : > { %7851 = vst [vmem:[#allocation53_spill] sm:$0xff] %v6664_v4  ;;  %2662 = vst [vmem:[%s5763_s24 + $0x358] sm:$0xff] %v2470_v9  ;;  %v2938_v58 = vmul.f32 %v6489_v23, %v2470_v9  ;;  %v2307_v32 = vmin.f32 %v2115_v41, 6.0  ;;  %v2101_v48 = vmax.f32 %v1677_v8, 0.0  ;;  %v2116_v56 = vmax.f32 %v1548_v14, 0.0  ;;  %v7855_v4 = vld [vmem:[#allocation55_spill] sm:$0xff] }
 0x28d   : > { %v3543_v59 = vadd.f32 %v3542_v13, %v3346_v46  ;;  %v3150_v20 = vadd.f32 %v3149_v1, %v2952_v30  ;;  %v3361_v17 = vmul.f32 %v2952_v30, %v2952_v30  ;;  %v1679_v35 = vadd.f32 3.0, %v7854_v21  ;;  %v7856_v8 = vld [vmem:[#allocation54_spill] sm:$0xff] }
 0x28e   : > { %v6674_v45 = vadd.f32 %v3134_v18, %v2938_v58  ;;  %v3347_v27 = vmul.f32 %v2938_v58, %v2938_v58  ;;  %v2499_v50 = vmul.f32 0.16666667, %v2307_v32  ;;  %v2293_v31 = vmin.f32 %v2101_v48, 6.0  ;;  %v7857_v58 = vld [vmem:[#allocation56_spill] sm:$0xff] }
 0x28f   : > { %v3559_v54 = vadd.f32 %v3558_v43, %v3361_v17  ;;  %v2308_v25 = vmin.f32 %v2116_v56, 6.0  ;;  %v2102_v47 = vmax.f32 %v1679_v35, 0.0  ;;  %v1552_v9 = vadd.f32 3.0, %v7855_v4 }
 0x290   : > { %v6677_v41 = vadd.f32 %v3543_v59, %v3347_v27  ;;  %2691 = vst [vmem:[%s5763_s24 + $0x440] sm:$0xff] %v2499_v50  ;;  %v2967_v13 = vmul.f32 %v6446_v53, %v2499_v50  ;;  %v2485_v1 = vmul.f32 0.16666667, %v2293_v31  ;;  %v1683_v14 = vadd.f32 3.0, %v7856_v8 }
 0x291   : > { %v2500_v18 = vmul.f32 0.16666667, %v2308_v25  ;;  %v2294_v46 = vmin.f32 %v2102_v47, 6.0  ;;  %v2131_v30 = vmax.f32 %v1552_v9, 0.0  ;;  %v1554_v32 = vadd.f32 3.0, %v7857_v58 }
 0x292   : > { %v3166_v17 = vadd.f32 %v6392_v60, %v2967_v13  ;;  %v3376_v35 = vmul.f32 %v2967_v13, %v2967_v13  ;;  %2677 = vst [vmem:[%s5763_s24 + $0x3d0] sm:$0xff] %v2485_v1  ;;  %v2953_v4 = vmul.f32 %v6474_v11, %v2485_v1  ;;  %v2117_v43 = vmax.f32 %v1683_v14, 0.0 }
 0x293   : > { %2692 = vst [vmem:[%s5763_s24 + $0x448] sm:$0xff] %v2500_v18  ;;  %v2968_v48 = vmul.f32 %v6457_v24, %v2500_v18  ;;  %v2486_v56 = vmul.f32 0.16666667, %v2294_v46  ;;  %v2323_v59 = vmin.f32 %v2131_v30, 6.0  ;;  %v2132_v21 = vmax.f32 %v1554_v32, 0.0  ;;  %v7858_v18 = vld [vmem:[#allocation20_spill] sm:$0xff] }
 0x294   : > { %v3575_v27 = vadd.f32 %v6401_v2, %v3376_v35  ;;  %v3151_v47 = vadd.f32 %v3150_v20, %v2953_v4  ;;  %v3362_v50 = vmul.f32 %v2953_v4, %v2953_v4  ;;  %v2309_v31 = vmin.f32 %v2117_v43, 6.0  ;;  %v7859_v4 = vld [vmem:[#allocation14_spill] sm:$0xff] }
 0x295   : > { %v3167_v60 = vadd.f32 %v3166_v17, %v2968_v48  ;;  %v3377_v25 = vmul.f32 %v2968_v48, %v2968_v48  ;;  %2678 = vst [vmem:[%s5763_s24 + $0x3d8] sm:$0xff] %v2486_v56  ;;  %v2954_v9 = vmul.f32 %v6489_v23, %v2486_v56  ;;  %v2515_v13 = vmul.f32 0.16666667, %v2323_v59  ;;  %v7860_v59 = vld [vmem:[#allocation13_spill] sm:$0xff] }
 0x296   : > { %v3560_v1 = vadd.f32 %v3559_v54, %v3362_v50  ;;  %v2501_v8 = vmul.f32 0.16666667, %v2309_v31  ;;  %v2324_v14 = vmin.f32 %v2132_v21, 6.0  ;;  %v1685_v46 = vadd.f32 3.0, %v7858_v18 }
 0x297   : > { %v3576_v30 = vadd.f32 %v3575_v27, %v3377_v25  ;;  %v6692_v58 = vadd.f32 %v3151_v47, %v2954_v9  ;;  %v3363_v2 = vmul.f32 %v2954_v9, %v2954_v9  ;;  %2707 = vst [vmem:[%s5763_s24 + $0x4c0] sm:$0xff] %v2515_v13  ;;  %v2983_v20 = vmul.f32 %v6446_v53, %v2515_v13 }
 0x298   : > { %2693 = vst [vmem:[%s5763_s24 + $0x450] sm:$0xff] %v2501_v8  ;;  %v2969_v32 = vmul.f32 %v6474_v11, %v2501_v8  ;;  %v2516_v17 = vmul.f32 0.16666667, %v2324_v14  ;;  %v2118_v35 = vmax.f32 %v1685_v46, 0.0  ;;  %v1558_v43 = vadd.f32 3.0, %v7859_v4  ;;  %v7861_v8 = vld [vmem:[#allocation22_spill] sm:$0xff] }
 0x299   : > { %v6699_v54 = vadd.f32 %v3560_v1, %v3363_v2  ;;  %v3183_v48 = vadd.f32 %v6428_v37, %v2983_v20  ;;  %v3392_v56 = vmul.f32 %v2983_v20, %v2983_v20  ;;  %v1689_v21 = vadd.f32 3.0, %v7860_v59 }
 0x29a   : > { %v3168_v27 = vadd.f32 %v3167_v60, %v2969_v32  ;;  %v3378_v47 = vmul.f32 %v2969_v32, %v2969_v32  ;;  %2708 = vst [vmem:[%s5763_s24 + $0x4c8] sm:$0xff] %v2516_v17  ;;  %v2984_v50 = vmul.f32 %v6457_v24, %v2516_v17  ;;  %v2310_v31 = vmin.f32 %v2118_v35, 6.0  ;;  %v7862_v32 = vld [vmem:[#allocation57_spill] sm:$0xff] }
 0x29b   : > { %v3592_v25 = vadd.f32 %v6435_v19, %v3392_v56  ;;  %v2147_v9 = vmax.f32 %v1558_v43, 0.0  ;;  %v2133_v13 = vmax.f32 %v1689_v21, 0.0  ;;  %v1560_v14 = vadd.f32 3.0, %v7861_v8  ;;  %v7863_v19 = vld [vmem:[#allocation25_spill] sm:$0xff]  ;;  %v7864_v43 = vld [vmem:[#allocation59_spill] sm:$0xff] }
 0x29c   : > { %v3577_v1 = vadd.f32 %v3576_v30, %v3378_v47  ;;  %v3184_v18 = vadd.f32 %v3183_v48, %v2984_v50  ;;  %v3393_v46 = vmul.f32 %v2984_v50, %v2984_v50  ;;  %v2502_v37 = vmul.f32 0.16666667, %v2310_v31 }
 0x29d   : > { %v2339_v2 = vmin.f32 %v2147_v9, 6.0  ;;  %v2325_v20 = vmin.f32 %v2133_v13, 6.0  ;;  %v2148_v60 = vmax.f32 %v1560_v14, 0.0  ;;  %v1691_v4 = vadd.f32 3.0, %v7862_v32 }
 0x29e   : > { %v3593_v59 = vadd.f32 %v3592_v25, %v3393_v46  ;;  %2694 = vst [vmem:[%s5763_s24 + $0x458] sm:$0xff] %v2502_v37  ;;  %v2970_v17 = vmul.f32 %v6489_v23, %v2502_v37  ;;  %v1564_v35 = vadd.f32 3.0, %v7863_v19  ;;  %v1695_v56 = vadd.f32 3.0, %v7864_v43 }
 0x29f   : > { %v2531_v21 = vmul.f32 0.16666667, %v2339_v2  ;;  %v2517_v30 = vmul.f32 0.16666667, %v2325_v20  ;;  %v2340_v48 = vmin.f32 %v2148_v60, 6.0  ;;  %v2134_v47 = vmax.f32 %v1691_v4, 0.0 }
 0x2a0   : > { %v6712_v50 = vadd.f32 %v3168_v27, %v2970_v17  ;;  %v3379_v31 = vmul.f32 %v2970_v17, %v2970_v17  ;;  %v2163_v9 = vmax.f32 %v1564_v35, 0.0  ;;  %v2149_v13 = vmax.f32 %v1695_v56, 0.0  ;;  %v7866_v60 = vld [vmem:[#allocation16_spill] sm:$0xff] }
 0x2a1   : > { %2723 = vst [vmem:[%s5763_s24 + $0x540] sm:$0xff] %v2531_v21  ;;  %v2999_v25 = vmul.f32 %v6446_v53, %v2531_v21  ;;  %2709 = vst [vmem:[%s5763_s24 + $0x4d0] sm:$0xff] %v2517_v30  ;;  %v2985_v8 = vmul.f32 %v6474_v11, %v2517_v30  ;;  %v2532_v14 = vmul.f32 0.16666667, %v2340_v48  ;;  %v2326_v46 = vmin.f32 %v2134_v47, 6.0  ;;  %v7867_v47 = vld [vmem:[#allocation61_spill] sm:$0xff] }
 0x2a2   : > { %v6718_v37 = vadd.f32 %v3577_v1, %v3379_v31  ;;  %v2355_v2 = vmin.f32 %v2163_v9, 6.0  ;;  %v2341_v20 = vmin.f32 %v2149_v13, 6.0  ;;  %v1566_v32 = vadd.f32 3.0, %v7866_v60 }
 0x2a3   : > { %v3200_v27 = vadd.f32 %v6459_v26, %v2999_v25  ;;  %v3408_v4 = vmul.f32 %v2999_v25, %v2999_v25  ;;  %v3185_v17 = vadd.f32 %v3184_v18, %v2985_v8  ;;  %v3394_v19 = vmul.f32 %v2985_v8, %v2985_v8  ;;  %2724 = vst [vmem:[%s5763_s24 + $0x548] sm:$0xff] %v2532_v14 }
 0x2a4   : > { %7865 = vst [vmem:[#allocation52_spill] sm:$0xff] %v6718_v37  ;;  %v3000_v35 = vmul.f32 %v6457_v24, %v2532_v14  ;;  %v2518_v43 = vmul.f32 0.16666667, %v2326_v46  ;;  %v2547_v56 = vmul.f32 0.16666667, %v2355_v2  ;;  %v2164_v48 = vmax.f32 %v1566_v32, 0.0 }
 0x2a5   : > { %v2533_v21 = vmul.f32 0.16666667, %v2341_v20  ;;  %v3609_v1 = vadd.f32 %v6468_v7, %v3408_v4  ;;  %v3594_v30 = vadd.f32 %v3593_v59, %v3394_v19  ;;  %v1697_v31 = vadd.f32 3.0, %v7867_v47 }
 0x2a6   : > { %v3201_v9 = vadd.f32 %v3200_v27, %v3000_v35  ;;  %v3409_v13 = vmul.f32 %v3000_v35, %v3000_v35  ;;  %2710 = vst [vmem:[%s5763_s24 + $0x4d8] sm:$0xff] %v2518_v43  ;;  %v2986_v26 = vmul.f32 %v6489_v23, %v2518_v43  ;;  %2739 = vst [vmem:[%s5763_s24 + $0x5c0] sm:$0xff] %v2547_v56  ;;  %v2356_v8 = vmin.f32 %v2164_v48, 6.0  ;;  %v7869_v43 = vld [vmem:[#allocation18_spill] sm:$0xff] }
 0x2a7   : > { %v3015_v18 = vmul.f32 %v6446_v53, %v2547_v56  ;;  %2725 = vst [vmem:[%s5763_s24 + $0x550] sm:$0xff] %v2533_v21  ;;  %v3001_v25 = vmul.f32 %v6474_v11, %v2533_v21  ;;  %v2150_v14 = vmax.f32 %v1697_v31, 0.0  ;;  %v1701_v7 = vadd.f32 3.0, %v6323_v6  ;;  %v7871_v31 = vld [vmem:[#allocation26_spill] sm:$0xff] }
 0x2a8   : > { %v3610_v59 = vadd.f32 %v3609_v1, %v3409_v13  ;;  %v6733_v46 = vadd.f32 %v3185_v17, %v2986_v26  ;;  %v3395_v2 = vmul.f32 %v2986_v26, %v2986_v26  ;;  %v2548_v4 = vmul.f32 0.16666667, %v2356_v8 }
 0x2a9   : > { %v3217_v20 = vadd.f32 %v6491_v5, %v3015_v18  ;;  %v3424_v60 = vmul.f32 %v3015_v18, %v3015_v18  ;;  %v3202_v32 = vadd.f32 %v3201_v9, %v3001_v25  ;;  %v3410_v27 = vmul.f32 %v3001_v25, %v3001_v25  ;;  %v7872_v18 = vld [vmem:[#allocation23_spill] sm:$0xff] }
 0x2aa   : > { %v6736_v19 = vadd.f32 %v3594_v30, %v3395_v2  ;;  %v2342_v53 = vmin.f32 %v2150_v14, 6.0  ;;  %v2165_v35 = vmax.f32 %v1701_v7, 0.0  ;;  %v1772_v56 = vadd.f32 3.0, %v7869_v43  ;;  %2740 = vst [vmem:[%s5763_s24 + $0x5c8] sm:$0xff] %v2548_v4 }
 0x2ab   : > { %v3626_v21 = vadd.f32 %v6496_v42, %v3424_v60  ;;  %v3611_v6 = vadd.f32 %v3610_v59, %v3410_v27  ;;  %v3016_v17 = vmul.f32 %v6457_v24, %v2548_v4  ;;  %v7870_v1 = vsub.s32 4, %v7794_v16  ;;  %v7874_v27 = vld [vmem:[#allocation24_spill] sm:$0xff] }
 0x2ac   : > { %7868 = vst [vmem:[#allocation12_spill] sm:$0xff] %v6736_v19  ;;  %v2534_v48 = vmul.f32 0.16666667, %v2342_v53  ;;  %v2357_v47 = vmin.f32 %v2165_v35, 6.0  ;;  %v1991_v30 = vmax.f32 %v1772_v56, 0.0  ;;  %v1703_v9 = vadd.f32 3.0, %v7871_v31 }
 0x2ad   : > { %v6745_v5 = vrot.slane %v6433_v22, %v7870_v1  ;;  %v3218_v13 = vadd.f32 %v3217_v20, %v3016_v17  ;;  %v3425_v26 = vmul.f32 %v3016_v17, %v3016_v17  ;;  %v1774_v25 = vadd.f32 3.0, %v7872_v18  ;;  %v7875_v20 = vld [vmem:[#allocation30_spill] sm:$0xff] }
 0x2ae   : > { %v7873_v42 = vsub.s32 5, %v7794_v16  ;;  %2726 = vst [vmem:[%s5763_s24 + $0x558] sm:$0xff] %v2534_v48  ;;  %v3002_v24 = vmul.f32 %v6489_v23, %v2534_v48  ;;  %v2549_v14 = vmul.f32 0.16666667, %v2357_v47  ;;  %v2183_v7 = vmin.f32 %v1991_v30, 6.0 }
 0x2af   : > { %v2166_v59 = vmax.f32 %v1703_v9, 0.0  ;;  %v3627_v2 = vadd.f32 %v3626_v21, %v3425_v26  ;;  %v1992_v60 = vmax.f32 %v1774_v25, 0.0  ;;  %v1778_v4 = vadd.f32 3.0, %v7874_v27 }
 0x2b0   : > { %v6752_v8 = vrot.slane %v6433_v22, %v7873_v42  ;;  %v1909_v53 = vadd.f32 3.0, %v7875_v20  ;;  %v6758_v35 = vadd.f32 %v3202_v32, %v3002_v24  ;;  %v3411_v43 = vmul.f32 %v3002_v24, %v3002_v24  ;;  %2741 = vst [vmem:[%s5763_s24 + $0x5d0] sm:$0xff] %v2549_v14  ;;  %v7877_v24 = vld [vmem:[#allocation29_spill] sm:$0xff] }
 0x2b1   : > { %v3017_v22 = vmul.f32 %v6474_v11, %v2549_v14  ;;  %v2375_v56 = vmul.f32 0.16666667, %v2183_v7  ;;  %v2358_v17 = vmin.f32 %v2166_v59, 6.0  ;;  %v2184_v1 = vmin.f32 %v1992_v60, 6.0 }
 0x2b2   : > { %v2007_v48 = vmax.f32 %v1778_v4, 0.0  ;;  %v1993_v47 = vmax.f32 %v1909_v53, 0.0  ;;  %v6762_v21 = vadd.f32 %v3611_v6, %v3411_v43  ;;  %v6770_v11 = vmul.f32 %v6543_v3, %v6543_v3  ;;  %v7878_v6 = vld [vmem:[#allocation31_spill] sm:$0xff] }
 0x2b3   : > { %v3219_v30 = vadd.f32 %v3218_v13, %v3017_v22  ;;  %v3426_v31 = vmul.f32 %v3017_v22, %v3017_v22  ;;  %2567 = vst [vmem:[%s5763_s24 + $0x60] sm:$0xff] %v2375_v56  ;;  %v6766_v9 = vmul.f32 %v6745_v5, %v2375_v56  ;;  %v2550_v32 = vmul.f32 0.16666667, %v2358_v17 }
 0x2b4   : > { %7876 = vst [vmem:[#allocation11_spill] sm:$0xff] %v6762_v21  ;;  %v2376_v26 = vmul.f32 0.16666667, %v2184_v1  ;;  %v2199_v18 = vmin.f32 %v2007_v48, 6.0  ;;  %v2185_v25 = vmin.f32 %v1993_v47, 6.0  ;;  %v1780_v14 = vadd.f32 3.0, %v7877_v24 }
 0x2b5   : > { %v3628_v42 = vadd.f32 %v3627_v2, %v3426_v31  ;;  %v1911_v7 = vadd.f32 3.0, %v7878_v6  ;;  %2742 = vst [vmem:[%s5763_s24 + $0x5d8] sm:$0xff] %v2550_v32  ;;  %v3018_v13 = vmul.f32 %v6489_v23, %v2550_v32  ;;  %v1784_v2 = vadd.f32 3.0, %v6373_v49 }
 0x2b6   : > { %2568 = vst [vmem:[%s5763_s24 + $0x68] sm:$0xff] %v2376_v26  ;;  %v6778_v59 = vmul.f32 %v6752_v8, %v2376_v26  ;;  %v2391_v60 = vmul.f32 0.16666667, %v2199_v18  ;;  %v6780_v27 = vmul.f32 0.16666667, %v2185_v25  ;;  %v2008_v4 = vmax.f32 %v1780_v14, 0.0 }
 0x2b7   : > { %v1994_v3 = vmax.f32 %v1911_v7, 0.0  ;;  %v1915_v20 = vadd.f32 3.0, %v6369_v62  ;;  %v6786_v53 = vmul.f32 %v6766_v9, %v6766_v9  ;;  %v6788_v43 = vadd.f32 %v3219_v30, %v3018_v13  ;;  %v7880_v14 = vld [vmem:[#allocation27_spill] sm:$0xff] }
 0x2b8   : > { %v3427_v23 = vmul.f32 %v3018_v13, %v3018_v13  ;;  %2583 = vst [vmem:[%s5763_s24 + $0xe0] sm:$0xff] %v2391_v60  ;;  %v2859_v22 = vmul.f32 %v6745_v5, %v2391_v60  ;;  %2569 = vst [vmem:[%s5763_s24 + $0x70] sm:$0xff] %v6780_v27  ;;  %v2200_v56 = vmin.f32 %v2008_v4, 6.0  ;;  %v2023_v1 = vmax.f32 %v1784_v2, 0.0  ;;  %v4595_v13 = vld [vmem:[%s5167_s14 + $0x8] sm:$0xff]  ;;  %s7194_s14 = scalar_lea.vmem [#allocation6], %s4559_s11 }
 0x2b9   : > { %v2186_v17 = vmin.f32 %v1994_v3, 6.0  ;;  %v2009_v49 = vmax.f32 %v1915_v20, 0.0  ;;  %v6798_v62 = vmul.f32 %v6778_v59, %v6778_v59  ;;  %v1917_v25 = vadd.f32 3.0, %v6375_v36  ;;  %v7882_v3 = vld [vmem:[#allocation28_spill] sm:$0xff] }
 0x2ba   : > { %v6794_v48 = vadd.f32 %v3628_v42, %v3427_v23  ;;  %v6801_v47 = vadd.f32 %v6551_v39, %v2859_v22  ;;  %v6803_v30 = vmul.f32 %v2859_v22, %v2859_v22  ;;  %v2392_v31 = vmul.f32 0.16666667, %v2200_v56 }
 0x2bb   : > { %v6805_v32 = vmul.f32 0.16666667, %v2186_v17  ;;  %v2215_v26 = vmin.f32 %v2023_v1, 6.0  ;;  %v2201_v18 = vmin.f32 %v2009_v49, 6.0  ;;  %v1786_v42 = vadd.f32 3.0, %v6389_v44  ;;  %v7883_v17 = vld [vmem:[#allocation32_spill] sm:$0xff] }
 0x2bc   : > { %7879 = vst [vmem:[#allocation55_spill] sm:$0xff] %v6794_v48  ;;  %v1790_v24 = vadd.f32 3.0, %v6396_v51  ;;  %v1921_v6 = vadd.f32 3.0, %v7880_v14  ;;  %2584 = vst [vmem:[%s5763_s24 + $0xe8] sm:$0xff] %v2392_v31  ;;  %v7881_v60 = vsub.s32 6, %v7794_v16  ;;  %v1792_v36 = vadd.f32 3.0, %v7882_v3 }
 0x2bd   : > { %2570 = vst [vmem:[%s5763_s24 + $0x78] sm:$0xff] %v6805_v32  ;;  %v2407_v39 = vmul.f32 0.16666667, %v2215_v26  ;;  %v2393_v7 = vmul.f32 0.16666667, %v2201_v18  ;;  %v2010_v2 = vmax.f32 %v1917_v25, 0.0  ;;  %v6821_v51 = vmul.f32 %v6752_v8, %v2392_v31 }
 0x2be   : > { %v6817_v4 = vrot.slane %v4595_v13, %v7881_v60  ;;  %v2024_v20 = vmax.f32 %v1786_v42, 0.0  ;;  %v2039_v44 = vmax.f32 %v1790_v24, 0.0  ;;  %v2025_v23 = vmax.f32 %v1921_v6, 0.0  ;;  %v7888_v48 = vld [vmem:[#allocation37_spill] sm:$0xff] }
 0x2bf   : > { %2599 = vst [vmem:[%s5763_s24 + $0x160] sm:$0xff] %v2407_v39  ;;  %v2875_v22 = vmul.f32 %v6745_v5, %v2407_v39  ;;  %2585 = vst [vmem:[%s5763_s24 + $0xf0] sm:$0xff] %v2393_v7  ;;  %v2040_v56 = vmax.f32 %v1792_v36, 0.0  ;;  %v1923_v1 = vadd.f32 3.0, %v7883_v17  ;;  %v2202_v49 = vmin.f32 %v2010_v2, 6.0 }
 0x2c0   : > { %v2216_v26 = vmin.f32 %v2024_v20, 6.0  ;;  %v2231_v18 = vmin.f32 %v2039_v44, 6.0  ;;  %v2217_v14 = vmin.f32 %v2025_v23, 6.0  ;;  %v6831_v31 = vmul.f32 %v6817_v4, %v2393_v7 }
 0x2c1   : > { %v6828_v25 = vadd.f32 %v6577_v12, %v2875_v22  ;;  %v2232_v42 = vmin.f32 %v2040_v56, 6.0  ;;  %v2026_v24 = vmax.f32 %v1923_v1, 0.0  ;;  %v6833_v6 = vmul.f32 %v2875_v22, %v2875_v22 }
 0x2c2   : > { %v6835_v39 = vmul.f32 0.16666667, %v2202_v49  ;;  %v2408_v60 = vmul.f32 0.16666667, %v2216_v26  ;;  %v2423_v3 = vmul.f32 0.16666667, %v2231_v18 }
 0x2c3   : > { %v2409_v36 = vmul.f32 0.16666667, %v2217_v14  ;;  %v2424_v2 = vmul.f32 0.16666667, %v2232_v42  ;;  %v2218_v20 = vmin.f32 %v2026_v24, 6.0  ;;  %v1796_v44 = vadd.f32 3.0, %v6415_v63 }
 0x2c4   : > { %2586 = vst [vmem:[%s5763_s24 + $0xf8] sm:$0xff] %v6835_v39  ;;  %2600 = vst [vmem:[%s5763_s24 + $0x168] sm:$0xff] %v2408_v60  ;;  %v6842_v12 = vmul.f32 %v6752_v8, %v2408_v60  ;;  %v2891_v7 = vmul.f32 %v6745_v5, %v2423_v3  ;;  %v1927_v23 = vadd.f32 3.0, %v6417_v52  ;;  %v1798_v22 = vadd.f32 3.0, %v6420_v40 }
 0x2c5   : > { %2615 = vst [vmem:[%s5763_s24 + $0x1e0] sm:$0xff] %v2423_v3  ;;  %2601 = vst [vmem:[%s5763_s24 + $0x170] sm:$0xff] %v2409_v36  ;;  %v6851_v56 = vmul.f32 %v6752_v8, %v2424_v2  ;;  %v6853_v63 = vmul.f32 0.16666667, %v2218_v20  ;;  %v2055_v17 = vmax.f32 %v1796_v44, 0.0  ;;  %v7884_v1 = vsub.s32 7, %v7794_v16 }
 0x2c6   : > { %2616 = vst [vmem:[%s5763_s24 + $0x1e8] sm:$0xff] %v2424_v2  ;;  %v6861_v26 = vmul.f32 %v6842_v12, %v6842_v12  ;;  %v6864_v52 = vadd.f32 %v6598_v33, %v2891_v7  ;;  %v6867_v40 = vmul.f32 %v6817_v4, %v2409_v36  ;;  %v2041_v18 = vmax.f32 %v1927_v23, 0.0 }
 0x2c7   : > { %v6857_v49 = vrot.slane %v4595_v13, %v7884_v1  ;;  %v6869_v14 = vmul.f32 %v2891_v7, %v2891_v7  ;;  %2602 = vst [vmem:[%s5763_s24 + $0x178] sm:$0xff] %v6853_v63  ;;  %v2247_v42 = vmin.f32 %v2055_v17, 6.0  ;;  %v2056_v16 = vmax.f32 %v1798_v22, 0.0  ;;  %v7885_v13 = vld [vmem:[#allocation33_spill] sm:$0xff]  ;;  %v7886_v7 = vld [vmem:[#allocation34_spill] sm:$0xff]  ;;  %v7887_v1 = vld [vmem:[#allocation35_spill] sm:$0xff] }
 0x2c8   : > { %v1929_v24 = vadd.f32 3.0, %v7885_v13  ;;  %v6876_v60 = vmul.f32 %v6851_v56, %v6851_v56  ;;  %v2233_v3 = vmin.f32 %v2041_v18, 6.0  ;;  %v2845_v33 = vmul.f32 %v6817_v4, %v6780_v27 }
 0x2c9   : > { %v3034_v36 = vadd.f32 %v6515_v29, %v6766_v9  ;;  %v2439_v2 = vmul.f32 0.16666667, %v2247_v42  ;;  %v2248_v20 = vmin.f32 %v2056_v16, 6.0  ;;  %v1802_v23 = vadd.f32 3.0, %v7886_v7  ;;  %v7889_v7 = vld [vmem:[#allocation8_spill] sm:$0xff] }
 0x2ca   : > { %v2042_v44 = vmax.f32 %v1929_v24, 0.0  ;;  %v2425_v22 = vmul.f32 0.16666667, %v2233_v3  ;;  %v1933_v13 = vadd.f32 3.0, %v7887_v1  ;;  %v1804_v18 = vadd.f32 3.0, %v7888_v48 }
 0x2cb   : > { %v3035_v17 = vadd.f32 %v3034_v36, %v6778_v59  ;;  %2631 = vst [vmem:[%s5763_s24 + $0x260] sm:$0xff] %v2439_v2  ;;  %v2907_v21 = vmul.f32 %v6745_v5, %v2439_v2  ;;  %v2440_v27 = vmul.f32 0.16666667, %v2248_v20  ;;  %v2071_v37 = vmax.f32 %v1802_v23, 0.0 }
 0x2cc   : > { %v2234_v19 = vmin.f32 %v2042_v44, 6.0  ;;  %2617 = vst [vmem:[%s5763_s24 + $0x1f0] sm:$0xff] %v2425_v22  ;;  %v2846_v29 = vmul.f32 %v6857_v49, %v6805_v32  ;;  %v2057_v42 = vmax.f32 %v1933_v13, 0.0  ;;  %v2072_v16 = vmax.f32 %v1804_v18, 0.0  ;;  %v7890_v18 = vld [vmem:[#allocation36_spill] sm:$0xff] }
 0x2cd   : > { %v3036_v9 = vadd.f32 %v3035_v17, %v2845_v33  ;;  %v6892_v59 = vadd.f32 %v6625_v15, %v2907_v21  ;;  %v6895_v24 = vmul.f32 %v6817_v4, %v2425_v22  ;;  %2632 = vst [vmem:[%s5763_s24 + $0x268] sm:$0xff] %v2440_v27  ;;  %v6899_v48 = vmul.f32 %v6752_v8, %v2440_v27 }
 0x2ce   : > { %v6901_v3 = vmul.f32 0.16666667, %v2234_v19  ;;  %v2263_v2 = vmin.f32 %v2071_v37, 6.0  ;;  %v2249_v20 = vmin.f32 %v2057_v42, 6.0  ;;  %v2264_v32 = vmin.f32 %v2072_v16, 6.0 }
 0x2cf   : > { %v3037_v36 = vadd.f32 %v3036_v9, %v2846_v29  ;;  %v6903_v44 = vmul.f32 %v2907_v21, %v2907_v21  ;;  %v6907_v15 = vmul.f32 %v6899_v48, %v6899_v48  ;;  %v1935_v23 = vadd.f32 3.0, %v7889_v7  ;;  %v7891_v9 = vld [vmem:[#allocation39_spill] sm:$0xff] }
 0x2d0   : > { %2618 = vst [vmem:[%s5763_s24 + $0x1f8] sm:$0xff] %v6901_v3  ;;  %v3254_v22 = vmul.f32 %v2845_v33, %v2845_v33  ;;  %v2455_v19 = vmul.f32 0.16666667, %v2263_v2  ;;  %v2441_v17 = vmul.f32 0.16666667, %v2249_v20  ;;  %v3443_v1 = vadd.f32 %v6523_v28, %v6786_v53 }
 0x2d1   : > { %3038 = vadd.xlane.f32.xlu0 %v3037_v36  ;;  %v2456_v37 = vmul.f32 0.16666667, %v2264_v32  ;;  %v2058_v21 = vmax.f32 %v1935_v23, 0.0  ;;  %v3255_v13 = vmul.f32 %v2846_v29, %v2846_v29  ;;  %v1808_v27 = vadd.f32 3.0, %v7890_v18 }
 0x2d2   : > { %v1939_v42 = vadd.f32 3.0, %v7891_v9  ;;  %2647 = vst [vmem:[%s5763_s24 + $0x2e0] sm:$0xff] %v2455_v19  ;;  %v2923_v16 = vmul.f32 %v6745_v5, %v2455_v19  ;;  %2633 = vst [vmem:[%s5763_s24 + $0x270] sm:$0xff] %v2441_v17  ;;  %v3444_v36 = vadd.f32 %v3443_v1, %v6798_v62  ;;  %v2862_v2 = vmul.f32 %v6857_v49, %v6835_v39 }
 0x2d3   : > { %2648 = vst [vmem:[%s5763_s24 + $0x2e8] sm:$0xff] %v2456_v37  ;;  %v6921_v33 = vmul.f32 %v6752_v8, %v2456_v37  ;;  %v6927_v28 = vmul.f32 %v6817_v4, %v2441_v17  ;;  %v2250_v53 = vmin.f32 %v2058_v21, 6.0  ;;  %v2087_v29 = vmax.f32 %v1808_v27, 0.0 }
 0x2d4   : > { %v2073_v20 = vmax.f32 %v1939_v42, 0.0  ;;  %v6930_v32 = vadd.f32 %v6657_v0, %v2923_v16  ;;  %v6932_v7 = vmul.f32 %v2923_v16, %v2923_v16  ;;  %v3445_v23 = vadd.f32 %v3444_v36, %v3254_v22 }
 0x2d5   : > { %v3269_v19 = vmul.f32 %v6821_v51, %v6821_v51  ;;  %v6938_v62 = vmul.f32 %v6921_v33, %v6921_v33  ;;  %v6940_v39 = vmul.f32 0.16666667, %v2250_v53  ;;  %v2279_v17 = vmin.f32 %v2087_v29, 6.0  ;;  %v7892_v53 = vld [vmem:[#allocation38_spill] sm:$0xff] }
 0x2d6   : > { %v2265_v37 = vmin.f32 %v2073_v20, 6.0  ;;  %v3446_v1 = vadd.f32 %v3445_v23, %v3255_v13  ;;  %v3270_v0 = vmul.f32 %v6831_v31, %v6831_v31  ;;  %v3459_v22 = vadd.f32 %v6547_v57, %v6770_v11 }
 0x2d7   : > { %v1810_v21 = vadd.f32 3.0, %v6519_v10  ;;  %2634 = vst [vmem:[%s5763_s24 + $0x278] sm:$0xff] %v6940_v39  ;;  %v2471_v18 = vmul.f32 0.16666667, %v2279_v17  ;;  %v1941_v9 = vadd.f32 3.0, %v6521_v38  ;;  %v3052_v42 = vadd.f32 %v6801_v47, %v6821_v51 }
 0x2d8   : > { %v2457_v27 = vmul.f32 0.16666667, %v2265_v37  ;;  %3447 = vadd.xlane.f32.xlu0 %v3446_v1  ;;  %v3460_v13 = vadd.f32 %v3459_v22, %v6803_v30  ;;  %v1814_v36 = vadd.f32 3.0, %v6527_v34  ;;  %v1945_v29 = vadd.f32 3.0, %v7892_v53  ;;  %v7894_v53 = vld [vmem:[#allocation41_spill] sm:$0xff] }
 0x2d9   : > { %v2088_v16 = vmax.f32 %v1810_v21, 0.0  ;;  %2663 = vst [vmem:[%s5763_s24 + $0x360] sm:$0xff] %v2471_v18  ;;  %v2939_v10 = vmul.f32 %v6745_v5, %v2471_v18  ;;  %v3271_v57 = vmul.f32 %v2862_v2, %v2862_v2  ;;  %v2074_v11 = vmax.f32 %v1941_v9, 0.0 }
 0x2da   : > { %2649 = vst [vmem:[%s5763_s24 + $0x2f0] sm:$0xff] %v2457_v27  ;;  %v3053_v20 = vadd.f32 %v3052_v42, %v6831_v31  ;;  %v3461_v38 = vadd.f32 %v3460_v13, %v3269_v19  ;;  %v2103_v17 = vmax.f32 %v1814_v36, 0.0  ;;  %v2089_v47 = vmax.f32 %v1945_v29, 0.0  ;;  %v7893_v19 = vld [vmem:[#allocation40_spill] sm:$0xff] }
 0x2db   : > { %v2280_v23 = vmin.f32 %v2088_v16, 6.0  ;;  %v6960_v30 = vadd.f32 %v6674_v45, %v2939_v10  ;;  %v6963_v34 = vmul.f32 %v6817_v4, %v2457_v27  ;;  %v2266_v51 = vmin.f32 %v2074_v11, 6.0 }
 0x2dc   : > { %v3054_v37 = vadd.f32 %v3053_v20, %v2862_v2  ;;  %v3462_v1 = vadd.f32 %v3461_v38, %v3270_v0  ;;  %v2295_v21 = vmin.f32 %v2103_v17, 6.0  ;;  %v2281_v18 = vmin.f32 %v2089_v47, 6.0 }
 0x2dd   : > { %v2472_v22 = vmul.f32 0.16666667, %v2280_v23  ;;  %v6965_v9 = vmul.f32 0.16666667, %v2266_v51  ;;  %v2878_v31 = vmul.f32 %v6857_v49, %v6853_v63  ;;  %v3069_v45 = vadd.f32 %v6828_v25, %v6842_v12  ;;  %v7895_v23 = vld [vmem:[#allocation62_spill] sm:$0xff] }
 0x2de   : > { %3055 = vadd.xlane.f32.xlu0 %v3054_v37  ;;  %v1816_v27 = vadd.f32 3.0, %v7893_v19  ;;  %v3463_v42 = vadd.f32 %v3462_v1, %v3271_v57  ;;  %v2487_v0 = vmul.f32 0.16666667, %v2295_v21  ;;  %v2473_v13 = vmul.f32 0.16666667, %v2281_v18  ;;  %v7896_v37 = vld [vmem:[#allocation42_spill] sm:$0xff] }
 0x2df   : > { %2664 = vst [vmem:[%s5763_s24 + $0x368] sm:$0xff] %v2472_v22  ;;  %v6974_v2 = vmul.f32 %v6752_v8, %v2472_v22  ;;  %v6976_v16 = vmul.f32 %v2939_v10, %v2939_v10  ;;  %2650 = vst [vmem:[%s5763_s24 + $0x2f8] sm:$0xff] %v6965_v9  ;;  %v3070_v36 = vadd.f32 %v3069_v45, %v6867_v40  ;;  %v1947_v29 = vadd.f32 3.0, %v7894_v53  ;;  %v7897_v22 = vld [vmem:[#allocation45_spill] sm:$0xff] }
 0x2e0   : > { %v2104_v63 = vmax.f32 %v1816_v27, 0.0  ;;  %3464 = vadd.xlane.f32.xlu1 %v3463_v42  ;;  %2679 = vst [vmem:[%s5763_s24 + $0x3e0] sm:$0xff] %v2487_v0  ;;  %v2955_v12 = vmul.f32 %v6745_v5, %v2487_v0  ;;  %2665 = vst [vmem:[%s5763_s24 + $0x370] sm:$0xff] %v2473_v13  ;;  %v6990_v57 = vmul.f32 %v6817_v4, %v2473_v13  ;;  %v1820_v1 = vadd.f32 3.0, %v7896_v37 }
 0x2e1   : > { %v6984_v25 = vmul.f32 %v6974_v2, %v6974_v2  ;;  %v3286_v10 = vmul.f32 %v6867_v40, %v6867_v40  ;;  %v3071_v11 = vadd.f32 %v3070_v36, %v2878_v31  ;;  %v2090_v38 = vmax.f32 %v1947_v29, 0.0 }
 0x2e2   : > { %v2296_v20 = vmin.f32 %v2104_v63, 6.0  ;;  %v3477_v17 = vadd.f32 %v7895_v23, %v6833_v6  ;;  %v6997_v47 = vadd.f32 %v6692_v58, %v2955_v12  ;;  %v3287_v51 = vmul.f32 %v2878_v31, %v2878_v31  ;;  %v7898_v6 = vld [vmem:[#allocation43_spill] sm:$0xff] }
 0x2e3   : > { %v1951_v21 = vadd.f32 3.0, %v7897_v22  ;;  %v2282_v45 = vmin.f32 %v2090_v38, 6.0  ;;  %v2894_v40 = vmul.f32 %v6857_v49, %v6901_v3  ;;  %v2119_v27 = vmax.f32 %v1820_v1, 0.0 }
 0x2e4   : > { %v2488_v18 = vmul.f32 0.16666667, %v2296_v20  ;;  %v3478_v19 = vadd.f32 %v3477_v17, %v6861_v26  ;;  %3072 = vadd.xlane.f32.xlu1 %v3071_v11  ;;  %v3086_v58 = vadd.f32 %v6864_v52, %v6851_v56  ;;  %v1822_v31 = vadd.f32 3.0, %v7898_v6  ;;  %v7899_v26 = vld [vmem:[#allocation44_spill] sm:$0xff] }
 0x2e5   : > { %v2105_v42 = vmax.f32 %v1951_v21, 0.0  ;;  %v7011_v13 = vmul.f32 0.16666667, %v2282_v45  ;;  %v1953_v63 = vadd.f32 3.0, %v7899_v26  ;;  %v2311_v53 = vmin.f32 %v2119_v27, 6.0  ;;  %v7900_v21 = vld [vmem:[#allocation47_spill] sm:$0xff] }
 0x2e6   : > { %2680 = vst [vmem:[%s5763_s24 + $0x3e8] sm:$0xff] %v2488_v18  ;;  %v7009_v0 = vmul.f32 %v6752_v8, %v2488_v18  ;;  %v3479_v36 = vadd.f32 %v3478_v19, %v3286_v10  ;;  %v3087_v29 = vadd.f32 %v3086_v58, %v6895_v24  ;;  %v2120_v11 = vmax.f32 %v1822_v31, 0.0  ;;  %v7901_v18 = vld [vmem:[#allocation58_spill] sm:$0xff] }
 0x2e7   : > { %v2297_v3 = vmin.f32 %v2105_v42, 6.0  ;;  %v7015_v20 = vmul.f32 %v2955_v12, %v2955_v12  ;;  %2666 = vst [vmem:[%s5763_s24 + $0x378] sm:$0xff] %v7011_v13  ;;  %v2106_v52 = vmax.f32 %v1953_v63, 0.0  ;;  %v2910_v38 = vmul.f32 %v6857_v49, %v6940_v39 }
 0x2e8   : > { %v3480_v56 = vadd.f32 %v3479_v36, %v3287_v51  ;;  %v2503_v23 = vmul.f32 0.16666667, %v2311_v53  ;;  %v3088_v17 = vadd.f32 %v3087_v29, %v2894_v40  ;;  %v2312_v37 = vmin.f32 %v2120_v11, 6.0 }
 0x2e9   : > { %v2489_v10 = vmul.f32 0.16666667, %v2297_v3  ;;  %v2298_v1 = vmin.f32 %v2106_v52, 6.0  ;;  %v3103_v22 = vadd.f32 %v6892_v59, %v6899_v48  ;;  %v1826_v12 = vadd.f32 3.0, %v7900_v21  ;;  %v7904_v21 = vld [vmem:[#allocation9_spill] sm:$0xff] }
 0x2ea   : > { %3481 = vadd.xlane.f32.xlu0 %v3480_v56  ;;  %v1957_v45 = vadd.f32 3.0, %v7901_v18  ;;  %v7027_v51 = vmul.f32 %v7009_v0, %v7009_v0  ;;  %2695 = vst [vmem:[%s5763_s24 + $0x460] sm:$0xff] %v2503_v23  ;;  %v2971_v39 = vmul.f32 %v6745_v5, %v2503_v23  ;;  %3089 = vadd.xlane.f32.xlu1 %v3088_v17  ;;  %v2504_v27 = vmul.f32 0.16666667, %v2312_v37  ;;  %v7902_v56 = vld [vmem:[#allocation15_spill] sm:$0xff]  ;;  %v7903_v23 = vld [vmem:[#allocation60_spill] sm:$0xff] }
 0x2eb   : > { %2681 = vst [vmem:[%s5763_s24 + $0x3f0] sm:$0xff] %v2489_v10  ;;  %v7033_v19 = vmul.f32 %v6817_v4, %v2489_v10  ;;  %v7035_v59 = vmul.f32 0.16666667, %v2298_v1  ;;  %v3104_v48 = vadd.f32 %v3103_v22, %v6927_v28  ;;  %v2135_v42 = vmax.f32 %v1826_v12, 0.0 }
 0x2ec   : > { %v2121_v58 = vmax.f32 %v1957_v45, 0.0  ;;  %v7039_v6 = vadd.f32 %v6712_v50, %v2971_v39  ;;  %v7041_v31 = vmul.f32 %v2971_v39, %v2971_v39  ;;  %2696 = vst [vmem:[%s5763_s24 + $0x468] sm:$0xff] %v2504_v27  ;;  %v7045_v36 = vmul.f32 %v6752_v8, %v2504_v27  ;;  %v7905_v39 = vld [vmem:[#allocation46_spill] sm:$0xff] }
 0x2ed   : > { %v3302_v26 = vmul.f32 %v6895_v24, %v6895_v24  ;;  %2682 = vst [vmem:[%s5763_s24 + $0x3f8] sm:$0xff] %v7035_v59  ;;  %v3105_v63 = vadd.f32 %v3104_v48, %v2910_v38  ;;  %v2327_v53 = vmin.f32 %v2135_v42, 6.0  ;;  %v3494_v29 = vadd.f32 %v6608_v55, %v6869_v14 }
 0x2ee   : > { %v2313_v3 = vmin.f32 %v2121_v58, 6.0  ;;  %v7055_v50 = vmul.f32 %v7045_v36, %v7045_v36  ;;  %v3303_v11 = vmul.f32 %v2894_v40, %v2894_v40  ;;  %v1828_v52 = vadd.f32 3.0, %v7902_v56  ;;  %v7906_v56 = vld [vmem:[#allocation10_spill] sm:$0xff] }
 0x2ef   : > { %v1959_v10 = vadd.f32 3.0, %v7903_v23  ;;  %3106 = vadd.xlane.f32.xlu0 %v3105_v63  ;;  %v2519_v24 = vmul.f32 0.16666667, %v2327_v53  ;;  %v3495_v37 = vadd.f32 %v3494_v29, %v6876_v60  ;;  %v3318_v1 = vmul.f32 %v6927_v28, %v6927_v28 }
 0x2f0   : > { %v2505_v17 = vmul.f32 0.16666667, %v2313_v3  ;;  %v2136_v22 = vmax.f32 %v1828_v52, 0.0  ;;  %v3511_v14 = vadd.f32 %v6631_v61, %v6903_v44  ;;  %v1832_v12 = vadd.f32 3.0, %v7904_v21 }
 0x2f1   : > { %v2122_v55 = vmax.f32 %v1959_v10, 0.0  ;;  %2711 = vst [vmem:[%s5763_s24 + $0x4e0] sm:$0xff] %v2519_v24  ;;  %v2987_v40 = vmul.f32 %v6745_v5, %v2519_v24  ;;  %v3496_v18 = vadd.f32 %v3495_v37, %v3302_v26  ;;  %v3319_v45 = vmul.f32 %v2910_v38, %v2910_v38  ;;  %v7907_v24 = vld [vmem:[#allocation48_spill] sm:$0xff] }
 0x2f2   : > { %2697 = vst [vmem:[%s5763_s24 + $0x470] sm:$0xff] %v2505_v17  ;;  %v1963_v27 = vadd.f32 3.0, %v7905_v39  ;;  %v2328_v48 = vmin.f32 %v2136_v22, 6.0  ;;  %v3512_v28 = vadd.f32 %v3511_v14, %v6907_v15  ;;  %v2151_v42 = vmax.f32 %v1832_v12, 0.0 }
 0x2f3   : > { %v2314_v60 = vmin.f32 %v2122_v55, 6.0  ;;  %v7071_v58 = vadd.f32 %v6733_v46, %v2987_v40  ;;  %v7074_v61 = vmul.f32 %v6817_v4, %v2505_v17  ;;  %v3497_v44 = vadd.f32 %v3496_v18, %v3303_v11  ;;  %v7908_v18 = vld [vmem:[#allocation50_spill] sm:$0xff] }
 0x2f4   : > { %v2137_v63 = vmax.f32 %v1963_v27, 0.0  ;;  %v2520_v53 = vmul.f32 0.16666667, %v2328_v48  ;;  %v3513_v38 = vadd.f32 %v3512_v28, %v3318_v1  ;;  %v2343_v3 = vmin.f32 %v2151_v42, 6.0  ;;  %v7909_v28 = vld [vmem:[#allocation49_spill] sm:$0xff] }
 0x2f5   : > { %v7076_v26 = vmul.f32 0.16666667, %v2314_v60  ;;  %3498 = vadd.xlane.f32.xlu1 %v3497_v44  ;;  %v2926_v15 = vmul.f32 %v6857_v49, %v6965_v9  ;;  %v3120_v46 = vadd.f32 %v6930_v32, %v6921_v33  ;;  %v1834_v52 = vadd.f32 3.0, %v7906_v56  ;;  %v7911_v56 = vld [vmem:[#allocation21_spill] sm:$0xff] }
 0x2f6   : > { %v2329_v29 = vmin.f32 %v2137_v63, 6.0  ;;  %2712 = vst [vmem:[%s5763_s24 + $0x4e8] sm:$0xff] %v2520_v53  ;;  %v7085_v11 = vmul.f32 %v6752_v8, %v2520_v53  ;;  %v3514_v23 = vadd.f32 %v3513_v38, %v3319_v45  ;;  %v2535_v10 = vmul.f32 0.16666667, %v2343_v3  ;;  %v7910_v53 = vld [vmem:[#allocation53_spill] sm:$0xff] }
 0x2f7   : > { %2698 = vst [vmem:[%s5763_s24 + $0x478] sm:$0xff] %v7076_v26  ;;  %v1965_v17 = vadd.f32 3.0, %v7907_v24  ;;  %v7090_v37 = vmul.f32 %v2987_v40, %v2987_v40  ;;  %v3121_v9 = vadd.f32 %v3120_v46, %v6963_v34  ;;  %v2152_v22 = vmax.f32 %v1834_v52, 0.0  ;;  %v7912_v24 = vld [vmem:[#allocation17_spill] sm:$0xff] }
 0x2f8   : > { %v2521_v1 = vmul.f32 0.16666667, %v2329_v29  ;;  %3515 = vadd.xlane.f32.xlu0 %v3514_v23  ;;  %2727 = vst [vmem:[%s5763_s24 + $0x560] sm:$0xff] %v2535_v10  ;;  %v3003_v33 = vmul.f32 %v6745_v5, %v2535_v10  ;;  %v2942_v55 = vmul.f32 %v6857_v49, %v7011_v13  ;;  %v3137_v14 = vadd.f32 %v6960_v30, %v6974_v2 }
 0x2f9   : > { %v2138_v32 = vmax.f32 %v1965_v17, 0.0  ;;  %v7101_v21 = vmul.f32 %v7085_v11, %v7085_v11  ;;  %v3122_v12 = vadd.f32 %v3121_v9, %v2926_v15  ;;  %v2344_v40 = vmin.f32 %v2152_v22, 6.0 }
 0x2fa   : > { %2713 = vst [vmem:[%s5763_s24 + $0x4f0] sm:$0xff] %v2521_v1  ;;  %v1838_v45 = vadd.f32 3.0, %v7908_v18  ;;  %v7106_v39 = vadd.f32 %v6758_v35, %v3003_v33  ;;  %v7109_v27 = vmul.f32 %v6817_v4, %v2521_v1  ;;  %v3138_v30 = vadd.f32 %v3137_v14, %v6990_v57 }
 0x2fb   : > { %v2330_v13 = vmin.f32 %v2138_v32, 6.0  ;;  %v7112_v2 = vmul.f32 %v3003_v33, %v3003_v33  ;;  %3123 = vadd.xlane.f32.xlu1 %v3122_v12  ;;  %v2536_v48 = vmul.f32 0.16666667, %v2344_v40  ;;  %v1969_v42 = vadd.f32 3.0, %v7909_v28  ;;  %v7913_v12 = vld [vmem:[#allocation19_spill] sm:$0xff] }
 0x2fc   : > { %v2167_v60 = vmax.f32 %v1838_v45, 0.0  ;;  %v3139_v63 = vadd.f32 %v3138_v30, %v2942_v55  ;;  %v3334_v35 = vmul.f32 %v6963_v34, %v6963_v34  ;;  %v3528_v38 = vadd.f32 %v7910_v53, %v6932_v7 }
 0x2fd   : > { %v7115_v44 = vmul.f32 0.16666667, %v2330_v13  ;;  %2728 = vst [vmem:[%s5763_s24 + $0x568] sm:$0xff] %v2536_v48  ;;  %v7123_v3 = vmul.f32 %v6752_v8, %v2536_v48  ;;  %v2153_v46 = vmax.f32 %v1969_v42, 0.0  ;;  %v1840_v52 = vadd.f32 3.0, %v7911_v56 }
 0x2fe   : > { %v2359_v29 = vmin.f32 %v2167_v60, 6.0  ;;  %3140 = vadd.xlane.f32.xlu0 %v3139_v63  ;;  %v3335_v23 = vmul.f32 %v2926_v15, %v2926_v15  ;;  %v3529_v10 = vadd.f32 %v3528_v38, %v6938_v62  ;;  %v1971_v34 = vadd.f32 3.0, %v7912_v24 }
 0x2ff   : > { %2714 = vst [vmem:[%s5763_s24 + $0x4f8] sm:$0xff] %v7115_v44  ;;  %v3350_v7 = vmul.f32 %v6990_v57, %v6990_v57  ;;  %v2345_v1 = vmin.f32 %v2153_v46, 6.0  ;;  %v2168_v9 = vmax.f32 %v1840_v52, 0.0  ;;  %v3351_v22 = vmul.f32 %v2942_v55, %v2942_v55 }
 0x300   : > { %v2551_v17 = vmul.f32 0.16666667, %v2359_v29  ;;  %v3530_v33 = vadd.f32 %v3529_v10, %v3334_v35  ;;  %v2154_v32 = vmax.f32 %v1971_v34, 0.0  ;;  %v3545_v14 = vadd.f32 %v6677_v41, %v6976_v16 }
 0x301   : > { %v1975_v40 = vadd.f32 3.0, %v7913_v12  ;;  %v7137_v62 = vmul.f32 %v7123_v3, %v7123_v3  ;;  %v2537_v57 = vmul.f32 0.16666667, %v2345_v1  ;;  %v2360_v18 = vmin.f32 %v2168_v9, 6.0 }
 0x302   : > { %2743 = vst [vmem:[%s5763_s24 + $0x5e0] sm:$0xff] %v2551_v17  ;;  %v3019_v15 = vmul.f32 %v6745_v5, %v2551_v17  ;;  %v3531_v45 = vadd.f32 %v3530_v33, %v3335_v23  ;;  %v2346_v55 = vmin.f32 %v2154_v32, 6.0  ;;  %v3546_v13 = vadd.f32 %v3545_v14, %v6984_v25  ;;  %v7916_v14 = vld [vmem:[#allocation12_spill] sm:$0xff] }
 0x303   : > { %v2169_v30 = vmax.f32 %v1975_v40, 0.0  ;;  %2729 = vst [vmem:[%s5763_s24 + $0x570] sm:$0xff] %v2537_v57  ;;  %v2552_v16 = vmul.f32 0.16666667, %v2360_v18  ;;  %v2958_v60 = vmul.f32 %v6857_v49, %v7035_v59  ;;  %v3154_v63 = vadd.f32 %v6997_v47, %v7009_v0  ;;  %v7917_v18 = vld [vmem:[#allocation11_spill] sm:$0xff] }
 0x304   : > { %v3221_v48 = vadd.f32 %v6788_v43, %v3019_v15  ;;  %v7143_v41 = vmul.f32 %v3019_v15, %v3019_v15  ;;  %3532 = vadd.xlane.f32.xlu1 %v3531_v45  ;;  %v2538_v5 = vmul.f32 0.16666667, %v2346_v55  ;;  %v3547_v28 = vadd.f32 %v3546_v13, %v3350_v7  ;;  %v7914_v43 = vld [vmem:[#allocation51_spill] sm:$0xff] }
 0x305   : > { %v2361_v42 = vmin.f32 %v2169_v30, 6.0  ;;  %2744 = vst [vmem:[%s5763_s24 + $0x5e8] sm:$0xff] %v2552_v16  ;;  %v3020_v25 = vmul.f32 %v6752_v8, %v2552_v16  ;;  %v1977_v35 = vadd.f32 3.0, %v7914_v43  ;;  %v2974_v53 = vmul.f32 %v6857_v49, %v7076_v26 }
 0x306   : > { %v3171_v38 = vadd.f32 %v7039_v6, %v7045_v36  ;;  %v3005_v59 = vmul.f32 %v6817_v4, %v2537_v57  ;;  %2730 = vst [vmem:[%s5763_s24 + $0x578] sm:$0xff] %v2538_v5  ;;  %v3548_v29 = vadd.f32 %v3547_v28, %v3351_v22  ;;  %v3155_v56 = vadd.f32 %v3154_v63, %v7033_v19 }
 0x307   : > { %v2553_v46 = vmul.f32 0.16666667, %v2361_v42  ;;  %v3222_v47 = vadd.f32 %v3221_v48, %v3020_v25  ;;  %v2170_v0 = vmax.f32 %v1977_v35, 0.0  ;;  %v3366_v8 = vmul.f32 %v7033_v19, %v7033_v19  ;;  %v7915_v19 = vld [vmem:[#allocation52_spill] sm:$0xff] }
 0x308   : > { %v3172_v52 = vadd.f32 %v3171_v38, %v7074_v61  ;;  %v3429_v23 = vmul.f32 %v3020_v25, %v3020_v25  ;;  %3549 = vadd.xlane.f32.xlu0 %v3548_v29  ;;  %v3156_v6 = vadd.f32 %v3155_v56, %v2958_v60  ;;  %v3562_v36 = vadd.f32 %v6699_v54, %v7015_v20 }
 0x309   : > { %2745 = vst [vmem:[%s5763_s24 + $0x5f0] sm:$0xff] %v2553_v46  ;;  %v3021_v26 = vmul.f32 %v6817_v4, %v2553_v46  ;;  %v2362_v10 = vmin.f32 %v2170_v0, 6.0  ;;  %v3367_v34 = vmul.f32 %v2958_v60, %v2958_v60  ;;  %v3382_v7 = vmul.f32 %v7074_v61, %v7074_v61 }
 0x30a   : > { %v3173_v24 = vadd.f32 %v3172_v52, %v2974_v53  ;;  %3157 = vadd.xlane.f32.xlu1 %v3156_v6  ;;  %v3563_v17 = vadd.f32 %v3562_v36, %v7027_v51  ;;  %v3579_v1 = vadd.f32 %v7915_v19, %v7041_v31  ;;  %v2990_v4 = vmul.f32 %v6857_v49, %v7115_v44 }
 0x30b   : > { %v3188_v9 = vadd.f32 %v7071_v58, %v7085_v11  ;;  %v2554_v54 = vmul.f32 0.16666667, %v2362_v10  ;;  %v3383_v20 = vmul.f32 %v2974_v53, %v2974_v53  ;;  %v3006_v22 = vmul.f32 %v6857_v49, %v2538_v5 }
 0x30c   : > { %v3205_v33 = vadd.f32 %v7106_v39, %v7123_v3  ;;  %3174 = vadd.xlane.f32.xlu0 %v3173_v24  ;;  %v3564_v61 = vadd.f32 %v3563_v17, %v3366_v8  ;;  %v3580_v51 = vadd.f32 %v3579_v1, %v7055_v50  ;;  %v3398_v31 = vmul.f32 %v7109_v27, %v7109_v27  ;;  %v3675_v1 = vld [vmem:[%s5763_s24] sm:$0xff] (%p7919_p7) }
 0x30d   : > { %v3189_v32 = vadd.f32 %v3188_v9, %v7109_v27  ;;  %2746 = vst [vmem:[%s5763_s24 + $0x5f8] sm:$0xff] %v2554_v54  ;;  %v3022_v44 = vmul.f32 %v6857_v49, %v2554_v54  ;;  %v3399_v11 = vmul.f32 %v2990_v4, %v2990_v4  ;;  %v3596_v12 = vadd.f32 %v7916_v14, %v7090_v37  ;;  %v7918_v49 = vld [vmem:[#allocation55_spill] sm:$0xff]  ;;  %v3679_v9 = vld [vmem:[%s5763_s24 + $0x10] sm:$0xff] (%p7919_p7) }
 0x30e   : > { %v3206_v58 = vadd.f32 %v3205_v33, %v3005_v59  ;;  %v3565_v40 = vadd.f32 %v3564_v61, %v3367_v34  ;;  %v3581_v15 = vadd.f32 %v3580_v51, %v3382_v7  ;;  %v3414_v3 = vmul.f32 %v3005_v59, %v3005_v59  ;;  %v3681_v54 = vld [vmem:[%s5763_s24 + $0x18] sm:$0xff] (%p7919_p7)  ;;  %3676 = vst [vmem:[%s7253_s6] sm:$0xff] (%p7919_p7), %v3675_v1  ;;  %v3687_v33 = vld [vmem:[%s5763_s24 + $0x30] sm:$0xff] (%p7919_p7)  ;;  %v3691_v51 = vld [vmem:[%s5763_s24 + $0x40] sm:$0xff] (%p7919_p7) }
 0x30f   : > { %v3190_v39 = vadd.f32 %v3189_v32, %v2990_v4  ;;  %v3597_v50 = vadd.f32 %v3596_v12, %v7101_v21  ;;  %v3613_v45 = vadd.f32 %v7917_v18, %v7112_v2  ;;  %v3223_v55 = vadd.f32 %v3222_v47, %v3021_v26  ;;  %v3677_v4 = vld [vmem:[%s5763_s24 + $0x8] sm:$0xff] (%p7919_p7)  ;;  %3680 = vst [vmem:[%s7253_s6 + $0x10] sm:$0xff] (%p7919_p7), %v3679_v9  ;;  %v3689_v61 = vld [vmem:[%s5763_s24 + $0x38] sm:$0xff] (%p7919_p7)  ;;  %v3703_v14 = vld [vmem:[%s5763_s24 + $0x70] sm:$0xff] (%p7919_p7) }
 0x310   : > { %v3207_v57 = vadd.f32 %v3206_v58, %v3006_v22  ;;  %3566 = vadd.xlane.f32.xlu1 %v3565_v40  ;;  %v3582_v27 = vadd.f32 %v3581_v15, %v3383_v20  ;;  %v3430_v13 = vmul.f32 %v3021_v26, %v3021_v26  ;;  %v3630_v30 = vadd.f32 %v7918_v49, %v7143_v41  ;;  %v3683_v20 = vld [vmem:[%s5763_s24 + $0x20] sm:$0xff] (%p7919_p7)  ;;  %v3693_v32 = vld [vmem:[%s5763_s24 + $0x48] sm:$0xff] (%p7919_p7)  ;;  %v3705_v12 = vld [vmem:[%s5763_s24 + $0x78] sm:$0xff] (%p7919_p7) }
 0x311   : > { %v3598_v48 = vadd.f32 %v3597_v50, %v3398_v31  ;;  %v3415_v16 = vmul.f32 %v3006_v22, %v3006_v22  ;;  %v3614_v37 = vadd.f32 %v3613_v45, %v7137_v62  ;;  %v3224_v60 = vadd.f32 %v3223_v55, %v3022_v44  ;;  %v3685_v22 = vld [vmem:[%s5763_s24 + $0x28] sm:$0xff] (%p7919_p7)  ;;  %3678 = vst [vmem:[%s7253_s6 + $0x8] sm:$0xff] (%p7919_p7), %v3677_v4  ;;  %v3695_v31 = vld [vmem:[%s5763_s24 + $0x50] sm:$0xff] (%p7919_p7)  ;;  %v3699_v58 = vld [vmem:[%s5763_s24 + $0x60] sm:$0xff] (%p7919_p7) }
 0x312   : > { %3583 = vadd.xlane.f32.xlu0 %v3582_v27  ;;  %v3431_v5 = vmul.f32 %v3022_v44, %v3022_v44  ;;  %v3631_v28 = vadd.f32 %v3630_v30, %v3429_v23  ;;  %3682 = vst [vmem:[%s7253_s6 + $0x18] sm:$0xff] (%p7919_p7), %v3681_v54  ;;  %3684 = vst [vmem:[%s7253_s6 + $0x20] sm:$0xff] (%p7919_p7), %v3683_v20  ;;  %v3697_v44 = vld [vmem:[%s5763_s24 + $0x58] sm:$0xff] (%p7919_p7)  ;;  %v3707_v40 = vld [vmem:[%s5763_s24 + $0x80] sm:$0xff] (%p7919_p7) }
 0x313   : > { %v3599_v21 = vadd.f32 %v3598_v48, %v3399_v11  ;;  %v3615_v42 = vadd.f32 %v3614_v37, %v3414_v3  ;;  %3686 = vst [vmem:[%s7253_s6 + $0x28] sm:$0xff] (%p7919_p7), %v3685_v22  ;;  %3688 = vst [vmem:[%s7253_s6 + $0x30] sm:$0xff] (%p7919_p7), %v3687_v33  ;;  %v3701_v11 = vld [vmem:[%s5763_s24 + $0x68] sm:$0xff] (%p7919_p7)  ;;  %v3713_v3 = vld [vmem:[%s5763_s24 + $0x98] sm:$0xff] (%p7919_p7) }
 0x314   : > { %3191 = vadd.xlane.f32.xlu1 %v3190_v39  ;;  %v3632_v2 = vadd.f32 %v3631_v28, %v3430_v13  ;;  %3690 = vst [vmem:[%s7253_s6 + $0x38] sm:$0xff] (%p7919_p7), %v3689_v61  ;;  %3692 = vst [vmem:[%s7253_s6 + $0x40] sm:$0xff] (%p7919_p7), %v3691_v51  ;;  %v3709_v15 = vld [vmem:[%s5763_s24 + $0x88] sm:$0xff] (%p7919_p7)  ;;  %v3711_v39 = vld [vmem:[%s5763_s24 + $0x90] sm:$0xff] (%p7919_p7) }
 0x315   : > { %v3616_v63 = vadd.f32 %v3615_v42, %v3415_v16  ;;  %3694 = vst [vmem:[%s7253_s6 + $0x48] sm:$0xff] (%p7919_p7), %v3693_v32  ;;  %3696 = vst [vmem:[%s7253_s6 + $0x50] sm:$0xff] (%p7919_p7), %v3695_v31  ;;  %v3717_v50 = vld [vmem:[%s5763_s24 + $0xa8] sm:$0xff] (%p7919_p7)  ;;  %v3719_v18 = vld [vmem:[%s5763_s24 + $0xb0] sm:$0xff] (%p7919_p7) }
 0x316   : > { %3208 = vadd.xlane.f32.xlu0 %v3207_v57  ;;  %v3633_v25 = vadd.f32 %v3632_v2, %v3431_v5  ;;  %3698 = vst [vmem:[%s7253_s6 + $0x58] sm:$0xff] (%p7919_p7), %v3697_v44  ;;  %3700 = vst [vmem:[%s7253_s6 + $0x60] sm:$0xff] (%p7919_p7), %v3699_v58  ;;  %v3715_v57 = vld [vmem:[%s5763_s24 + $0xa0] sm:$0xff] (%p7919_p7)  ;;  %v3721_v45 = vld [vmem:[%s5763_s24 + $0xb8] sm:$0xff] (%p7919_p7) }
 0x317   : > { %3702 = vst [vmem:[%s7253_s6 + $0x68] sm:$0xff] (%p7919_p7), %v3701_v11  ;;  %3704 = vst [vmem:[%s7253_s6 + $0x70] sm:$0xff] (%p7919_p7), %v3703_v14  ;;  %v3723_v55 = vld [vmem:[%s5763_s24 + $0xc0] sm:$0xff] (%p7919_p7)  ;;  %v3725_v27 = vld [vmem:[%s5763_s24 + $0xc8] sm:$0xff] (%p7919_p7) }
 0x318   : > { %3600 = vadd.xlane.f32.xlu1 %v3599_v21  ;;  %3706 = vst [vmem:[%s7253_s6 + $0x78] sm:$0xff] (%p7919_p7), %v3705_v12  ;;  %3708 = vst [vmem:[%s7253_s6 + $0x180] sm:$0xff] (%p7919_p7), %v3707_v40  ;;  %v3727_v13 = vld [vmem:[%s5763_s24 + $0xd0] sm:$0xff] (%p7919_p7)  ;;  %v3729_v49 = vld [vmem:[%s5763_s24 + $0xd8] sm:$0xff] (%p7919_p7) }
 0x319   : > { %3710 = vst [vmem:[%s7253_s6 + $0x188] sm:$0xff] (%p7919_p7), %v3709_v15  ;;  %3712 = vst [vmem:[%s7253_s6 + $0x190] sm:$0xff] (%p7919_p7), %v3711_v39  ;;  %v3731_v30 = vld [vmem:[%s5763_s24 + $0xe0] sm:$0xff] (%p7919_p7)  ;;  %v3733_v48 = vld [vmem:[%s5763_s24 + $0xe8] sm:$0xff] (%p7919_p7) }
 0x31a   : > { %3617 = vadd.xlane.f32.xlu0 %v3616_v63  ;;  %3714 = vst [vmem:[%s7253_s6 + $0x198] sm:$0xff] (%p7919_p7), %v3713_v3  ;;  %3716 = vst [vmem:[%s7253_s6 + $0x1a0] sm:$0xff] (%p7919_p7), %v3715_v57  ;;  %v3735_v16 = vld [vmem:[%s5763_s24 + $0xf0] sm:$0xff] (%p7919_p7)  ;;  %v3737_v37 = vld [vmem:[%s5763_s24 + $0xf8] sm:$0xff] (%p7919_p7) }
 0x31b   : > { %3718 = vst [vmem:[%s7253_s6 + $0x1a8] sm:$0xff] (%p7919_p7), %v3717_v50  ;;  %3720 = vst [vmem:[%s7253_s6 + $0x1b0] sm:$0xff] (%p7919_p7), %v3719_v18  ;;  %v3741_v5 = vld [vmem:[%s5763_s24 + $0x108] sm:$0xff] (%p7919_p7)  ;;  %v3743_v28 = vld [vmem:[%s5763_s24 + $0x110] sm:$0xff] (%p7919_p7) }
 0x31c   : > { %3225 = vadd.xlane.f32.xlu1 %v3224_v60  ;;  %3722 = vst [vmem:[%s7253_s6 + $0x1b8] sm:$0xff] (%p7919_p7), %v3721_v45  ;;  %3724 = vst [vmem:[%s7253_s6 + $0x1c0] sm:$0xff] (%p7919_p7), %v3723_v55  ;;  %v3739_v60 = vld [vmem:[%s5763_s24 + $0x100] sm:$0xff] (%p7919_p7)  ;;  %v3745_v21 = vld [vmem:[%s5763_s24 + $0x118] sm:$0xff] (%p7919_p7) }
 0x31d   : > { %3726 = vst [vmem:[%s7253_s6 + $0x1c8] sm:$0xff] (%p7919_p7), %v3725_v27  ;;  %3728 = vst [vmem:[%s7253_s6 + $0x1d0] sm:$0xff] (%p7919_p7), %v3727_v13  ;;  %v3747_v42 = vld [vmem:[%s5763_s24 + $0x120] sm:$0xff] (%p7919_p7)  ;;  %v3749_v2 = vld [vmem:[%s5763_s24 + $0x128] sm:$0xff] (%p7919_p7) }
 0x31e   : > { %3730 = vst [vmem:[%s7253_s6 + $0x1d8] sm:$0xff] (%p7919_p7), %v3729_v49  ;;  %3732 = vst [vmem:[%s7253_s6 + $0x1e0] sm:$0xff] (%p7919_p7), %v3731_v30  ;;  %v3751_v63 = vld [vmem:[%s5763_s24 + $0x130] sm:$0xff] (%p7919_p7)  ;;  %v3803_v1 = vld [vmem:[%s5763_s24 + $0x200] sm:$0xff] (%p7919_p7) }
 0x31f   : > { %3734 = vst [vmem:[%s7253_s6 + $0x1e8] sm:$0xff] (%p7919_p7), %v3733_v48  ;;  %3736 = vst [vmem:[%s7253_s6 + $0x1f0] sm:$0xff] (%p7919_p7), %v3735_v16  ;;  %v3805_v4 = vld [vmem:[%s5763_s24 + $0x208] sm:$0xff] (%p7919_p7)  ;;  %v3807_v9 = vld [vmem:[%s5763_s24 + $0x210] sm:$0xff] (%p7919_p7) }
 0x320   : > { %3634 = vadd.xlane.f32.xlu1 %v3633_v25  ;;  %3738 = vst [vmem:[%s7253_s6 + $0x1f8] sm:$0xff] (%p7919_p7), %v3737_v37  ;;  %3740 = vst [vmem:[%s7253_s6 + $0x300] sm:$0xff] (%p7919_p7), %v3739_v60  ;;  %v3753_v25 = vld [vmem:[%s5763_s24 + $0x138] sm:$0xff] (%p7919_p7)  ;;  %v3811_v20 = vld [vmem:[%s5763_s24 + $0x220] sm:$0xff] (%p7919_p7) }
 0x321   : > { %3742 = vst [vmem:[%s7253_s6 + $0x308] sm:$0xff] (%p7919_p7), %v3741_v5  ;;  %3744 = vst [vmem:[%s7253_s6 + $0x310] sm:$0xff] (%p7919_p7), %v3743_v28  ;;  %v3809_v54 = vld [vmem:[%s5763_s24 + $0x218] sm:$0xff] (%p7919_p7)  ;;  %v3813_v22 = vld [vmem:[%s5763_s24 + $0x228] sm:$0xff] (%p7919_p7) }
 0x322   : > { %3746 = vst [vmem:[%s7253_s6 + $0x318] sm:$0xff] (%p7919_p7), %v3745_v21  ;;  %3748 = vst [vmem:[%s7253_s6 + $0x320] sm:$0xff] (%p7919_p7), %v3747_v42  ;;  %v3815_v33 = vld [vmem:[%s5763_s24 + $0x230] sm:$0xff] (%p7919_p7)  ;;  %v3817_v61 = vld [vmem:[%s5763_s24 + $0x238] sm:$0xff] (%p7919_p7) }
 0x323   : > { %3750 = vst [vmem:[%s7253_s6 + $0x328] sm:$0xff] (%p7919_p7), %v3749_v2  ;;  %3752 = vst [vmem:[%s7253_s6 + $0x330] sm:$0xff] (%p7919_p7), %v3751_v63  ;;  %v3819_v51 = vld [vmem:[%s5763_s24 + $0x240] sm:$0xff] (%p7919_p7)  ;;  %v3821_v32 = vld [vmem:[%s5763_s24 + $0x248] sm:$0xff] (%p7919_p7) }
 0x324   : > { %3754 = vst [vmem:[%s7253_s6 + $0x338] sm:$0xff] (%p7919_p7), %v3753_v25  ;;  %3804 = vst [vmem:[%s7253_s6 + $0x600] sm:$0xff] (%p7919_p7), %v3803_v1  ;;  %v3823_v31 = vld [vmem:[%s5763_s24 + $0x250] sm:$0xff] (%p7919_p7)  ;;  %v3825_v44 = vld [vmem:[%s5763_s24 + $0x258] sm:$0xff] (%p7919_p7) }
 0x325   : > { %3806 = vst [vmem:[%s7253_s6 + $0x608] sm:$0xff] (%p7919_p7), %v3805_v4  ;;  %3808 = vst [vmem:[%s7253_s6 + $0x610] sm:$0xff] (%p7919_p7), %v3807_v9  ;;  %v3827_v58 = vld [vmem:[%s5763_s24 + $0x260] sm:$0xff] (%p7919_p7)  ;;  %v3829_v11 = vld [vmem:[%s5763_s24 + $0x268] sm:$0xff] (%p7919_p7) }
 0x326   : > { %3810 = vst [vmem:[%s7253_s6 + $0x618] sm:$0xff] (%p7919_p7), %v3809_v54  ;;  %3812 = vst [vmem:[%s7253_s6 + $0x620] sm:$0xff] (%p7919_p7), %v3811_v20  ;;  %v3831_v14 = vld [vmem:[%s5763_s24 + $0x270] sm:$0xff] (%p7919_p7)  ;;  %v3833_v12 = vld [vmem:[%s5763_s24 + $0x278] sm:$0xff] (%p7919_p7) }
 0x327   : > { %3814 = vst [vmem:[%s7253_s6 + $0x628] sm:$0xff] (%p7919_p7), %v3813_v22  ;;  %3816 = vst [vmem:[%s7253_s6 + $0x630] sm:$0xff] (%p7919_p7), %v3815_v33  ;;  %v3835_v40 = vld [vmem:[%s5763_s24 + $0x280] sm:$0xff] (%p7919_p7)  ;;  %v3837_v15 = vld [vmem:[%s5763_s24 + $0x288] sm:$0xff] (%p7919_p7) }
 0x328   : > { %3818 = vst [vmem:[%s7253_s6 + $0x638] sm:$0xff] (%p7919_p7), %v3817_v61  ;;  %3820 = vst [vmem:[%s7253_s6 + $0x640] sm:$0xff] (%p7919_p7), %v3819_v51  ;;  %v3839_v39 = vld [vmem:[%s5763_s24 + $0x290] sm:$0xff] (%p7919_p7)  ;;  %v3841_v3 = vld [vmem:[%s5763_s24 + $0x298] sm:$0xff] (%p7919_p7) }
 0x329   : > { %3822 = vst [vmem:[%s7253_s6 + $0x648] sm:$0xff] (%p7919_p7), %v3821_v32  ;;  %3824 = vst [vmem:[%s7253_s6 + $0x650] sm:$0xff] (%p7919_p7), %v3823_v31  ;;  %v3843_v57 = vld [vmem:[%s5763_s24 + $0x2a0] sm:$0xff] (%p7919_p7)  ;;  %v3845_v50 = vld [vmem:[%s5763_s24 + $0x2a8] sm:$0xff] (%p7919_p7) }
 0x32a   : > { %3826 = vst [vmem:[%s7253_s6 + $0x658] sm:$0xff] (%p7919_p7), %v3825_v44  ;;  %3828 = vst [vmem:[%s7253_s6 + $0x660] sm:$0xff] (%p7919_p7), %v3827_v58  ;;  %v3847_v18 = vld [vmem:[%s5763_s24 + $0x2b0] sm:$0xff] (%p7919_p7)  ;;  %v3849_v45 = vld [vmem:[%s5763_s24 + $0x2b8] sm:$0xff] (%p7919_p7) }
 0x32b   : > { %3830 = vst [vmem:[%s7253_s6 + $0x668] sm:$0xff] (%p7919_p7), %v3829_v11  ;;  %3832 = vst [vmem:[%s7253_s6 + $0x670] sm:$0xff] (%p7919_p7), %v3831_v14  ;;  %v3851_v55 = vld [vmem:[%s5763_s24 + $0x2c0] sm:$0xff] (%p7919_p7)  ;;  %v3853_v27 = vld [vmem:[%s5763_s24 + $0x2c8] sm:$0xff] (%p7919_p7) }
 0x32c   : > { %3834 = vst [vmem:[%s7253_s6 + $0x678] sm:$0xff] (%p7919_p7), %v3833_v12  ;;  %3836 = vst [vmem:[%s7253_s6 + $0x780] sm:$0xff] (%p7919_p7), %v3835_v40  ;;  %v3855_v13 = vld [vmem:[%s5763_s24 + $0x2d0] sm:$0xff] (%p7919_p7)  ;;  %v3857_v49 = vld [vmem:[%s5763_s24 + $0x2d8] sm:$0xff] (%p7919_p7) }
 0x32d   : > { %3838 = vst [vmem:[%s7253_s6 + $0x788] sm:$0xff] (%p7919_p7), %v3837_v15  ;;  %3840 = vst [vmem:[%s7253_s6 + $0x790] sm:$0xff] (%p7919_p7), %v3839_v39  ;;  %v3859_v30 = vld [vmem:[%s5763_s24 + $0x2e0] sm:$0xff] (%p7919_p7)  ;;  %v3861_v48 = vld [vmem:[%s5763_s24 + $0x2e8] sm:$0xff] (%p7919_p7) }
 0x32e   : > { %3842 = vst [vmem:[%s7253_s6 + $0x798] sm:$0xff] (%p7919_p7), %v3841_v3  ;;  %3844 = vst [vmem:[%s7253_s6 + $0x7a0] sm:$0xff] (%p7919_p7), %v3843_v57  ;;  %v3863_v16 = vld [vmem:[%s5763_s24 + $0x2f0] sm:$0xff] (%p7919_p7)  ;;  %v3865_v37 = vld [vmem:[%s5763_s24 + $0x2f8] sm:$0xff] (%p7919_p7) }
 0x32f   : > { %3846 = vst [vmem:[%s7253_s6 + $0x7a8] sm:$0xff] (%p7919_p7), %v3845_v50  ;;  %3848 = vst [vmem:[%s7253_s6 + $0x7b0] sm:$0xff] (%p7919_p7), %v3847_v18  ;;  %v3867_v60 = vld [vmem:[%s5763_s24 + $0x300] sm:$0xff] (%p7919_p7)  ;;  %v3869_v5 = vld [vmem:[%s5763_s24 + $0x308] sm:$0xff] (%p7919_p7) }
 0x330   : > { %3850 = vst [vmem:[%s7253_s6 + $0x7b8] sm:$0xff] (%p7919_p7), %v3849_v45  ;;  %3852 = vst [vmem:[%s7253_s6 + $0x7c0] sm:$0xff] (%p7919_p7), %v3851_v55  ;;  %v3871_v28 = vld [vmem:[%s5763_s24 + $0x310] sm:$0xff] (%p7919_p7)  ;;  %v3873_v21 = vld [vmem:[%s5763_s24 + $0x318] sm:$0xff] (%p7919_p7) }
 0x331   : > { %3854 = vst [vmem:[%s7253_s6 + $0x7c8] sm:$0xff] (%p7919_p7), %v3853_v27  ;;  %3856 = vst [vmem:[%s7253_s6 + $0x7d0] sm:$0xff] (%p7919_p7), %v3855_v13  ;;  %v3875_v42 = vld [vmem:[%s5763_s24 + $0x320] sm:$0xff] (%p7919_p7)  ;;  %v3877_v2 = vld [vmem:[%s5763_s24 + $0x328] sm:$0xff] (%p7919_p7) }
 0x332   : > { %3858 = vst [vmem:[%s7253_s6 + $0x7d8] sm:$0xff] (%p7919_p7), %v3857_v49  ;;  %3860 = vst [vmem:[%s7253_s6 + $0x7e0] sm:$0xff] (%p7919_p7), %v3859_v30  ;;  %v3879_v63 = vld [vmem:[%s5763_s24 + $0x330] sm:$0xff] (%p7919_p7)  ;;  %v3881_v25 = vld [vmem:[%s5763_s24 + $0x338] sm:$0xff] (%p7919_p7) }
 0x333   : > { %3862 = vst [vmem:[%s7253_s6 + $0x7e8] sm:$0xff] (%p7919_p7), %v3861_v48  ;;  %3864 = vst [vmem:[%s7253_s6 + $0x7f0] sm:$0xff] (%p7919_p7), %v3863_v16  ;;  %v3931_v1 = vld [vmem:[%s5763_s24 + $0x400] sm:$0xff] (%p7919_p7)  ;;  %v3933_v4 = vld [vmem:[%s5763_s24 + $0x408] sm:$0xff] (%p7919_p7) }
 0x334   : > { %3866 = vst [vmem:[%s7253_s6 + $0x7f8] sm:$0xff] (%p7919_p7), %v3865_v37  ;;  %3868 = vst [vmem:[%s7253_s6 + $0x900] sm:$0xff] (%p7919_p7), %v3867_v60  ;;  %v3935_v9 = vld [vmem:[%s5763_s24 + $0x410] sm:$0xff] (%p7919_p7)  ;;  %v3937_v54 = vld [vmem:[%s5763_s24 + $0x418] sm:$0xff] (%p7919_p7) }
 0x335   : > { %3870 = vst [vmem:[%s7253_s6 + $0x908] sm:$0xff] (%p7919_p7), %v3869_v5  ;;  %3872 = vst [vmem:[%s7253_s6 + $0x910] sm:$0xff] (%p7919_p7), %v3871_v28  ;;  %v3939_v20 = vld [vmem:[%s5763_s24 + $0x420] sm:$0xff] (%p7919_p7)  ;;  %v3941_v22 = vld [vmem:[%s5763_s24 + $0x428] sm:$0xff] (%p7919_p7) }
 0x336   : > { %3874 = vst [vmem:[%s7253_s6 + $0x918] sm:$0xff] (%p7919_p7), %v3873_v21  ;;  %3876 = vst [vmem:[%s7253_s6 + $0x920] sm:$0xff] (%p7919_p7), %v3875_v42  ;;  %v3943_v33 = vld [vmem:[%s5763_s24 + $0x430] sm:$0xff] (%p7919_p7)  ;;  %v3945_v61 = vld [vmem:[%s5763_s24 + $0x438] sm:$0xff] (%p7919_p7) }
 0x337   : > { %3878 = vst [vmem:[%s7253_s6 + $0x928] sm:$0xff] (%p7919_p7), %v3877_v2  ;;  %3880 = vst [vmem:[%s7253_s6 + $0x930] sm:$0xff] (%p7919_p7), %v3879_v63  ;;  %v3947_v51 = vld [vmem:[%s5763_s24 + $0x440] sm:$0xff] (%p7919_p7)  ;;  %v3949_v32 = vld [vmem:[%s5763_s24 + $0x448] sm:$0xff] (%p7919_p7) }
 0x338   : > { %3882 = vst [vmem:[%s7253_s6 + $0x938] sm:$0xff] (%p7919_p7), %v3881_v25  ;;  %3932 = vst [vmem:[%s7253_s6 + $0xc00] sm:$0xff] (%p7919_p7), %v3931_v1  ;;  %v3951_v31 = vld [vmem:[%s5763_s24 + $0x450] sm:$0xff] (%p7919_p7)  ;;  %v3953_v44 = vld [vmem:[%s5763_s24 + $0x458] sm:$0xff] (%p7919_p7) }
 0x339   : > { %3934 = vst [vmem:[%s7253_s6 + $0xc08] sm:$0xff] (%p7919_p7), %v3933_v4  ;;  %3936 = vst [vmem:[%s7253_s6 + $0xc10] sm:$0xff] (%p7919_p7), %v3935_v9  ;;  %v3955_v58 = vld [vmem:[%s5763_s24 + $0x460] sm:$0xff] (%p7919_p7)  ;;  %v3957_v11 = vld [vmem:[%s5763_s24 + $0x468] sm:$0xff] (%p7919_p7) }
 0x33a   : > { %3938 = vst [vmem:[%s7253_s6 + $0xc18] sm:$0xff] (%p7919_p7), %v3937_v54  ;;  %3940 = vst [vmem:[%s7253_s6 + $0xc20] sm:$0xff] (%p7919_p7), %v3939_v20  ;;  %v3959_v14 = vld [vmem:[%s5763_s24 + $0x470] sm:$0xff] (%p7919_p7)  ;;  %v3961_v12 = vld [vmem:[%s5763_s24 + $0x478] sm:$0xff] (%p7919_p7) }
 0x33b   : > { %3942 = vst [vmem:[%s7253_s6 + $0xc28] sm:$0xff] (%p7919_p7), %v3941_v22  ;;  %3944 = vst [vmem:[%s7253_s6 + $0xc30] sm:$0xff] (%p7919_p7), %v3943_v33  ;;  %v3963_v40 = vld [vmem:[%s5763_s24 + $0x480] sm:$0xff] (%p7919_p7)  ;;  %v3965_v15 = vld [vmem:[%s5763_s24 + $0x488] sm:$0xff] (%p7919_p7) }
 0x33c   : > { %3946 = vst [vmem:[%s7253_s6 + $0xc38] sm:$0xff] (%p7919_p7), %v3945_v61  ;;  %3948 = vst [vmem:[%s7253_s6 + $0xc40] sm:$0xff] (%p7919_p7), %v3947_v51  ;;  %v3967_v39 = vld [vmem:[%s5763_s24 + $0x490] sm:$0xff] (%p7919_p7)  ;;  %v3969_v3 = vld [vmem:[%s5763_s24 + $0x498] sm:$0xff] (%p7919_p7) }
 0x33d   : > { %3950 = vst [vmem:[%s7253_s6 + $0xc48] sm:$0xff] (%p7919_p7), %v3949_v32  ;;  %3952 = vst [vmem:[%s7253_s6 + $0xc50] sm:$0xff] (%p7919_p7), %v3951_v31  ;;  %v3971_v57 = vld [vmem:[%s5763_s24 + $0x4a0] sm:$0xff] (%p7919_p7)  ;;  %v3973_v50 = vld [vmem:[%s5763_s24 + $0x4a8] sm:$0xff] (%p7919_p7) }
 0x33e   : > { %3954 = vst [vmem:[%s7253_s6 + $0xc58] sm:$0xff] (%p7919_p7), %v3953_v44  ;;  %3956 = vst [vmem:[%s7253_s6 + $0xc60] sm:$0xff] (%p7919_p7), %v3955_v58  ;;  %v3975_v18 = vld [vmem:[%s5763_s24 + $0x4b0] sm:$0xff] (%p7919_p7)  ;;  %v3977_v45 = vld [vmem:[%s5763_s24 + $0x4b8] sm:$0xff] (%p7919_p7) }
 0x33f   : > { %3958 = vst [vmem:[%s7253_s6 + $0xc68] sm:$0xff] (%p7919_p7), %v3957_v11  ;;  %3960 = vst [vmem:[%s7253_s6 + $0xc70] sm:$0xff] (%p7919_p7), %v3959_v14  ;;  %v3979_v55 = vld [vmem:[%s5763_s24 + $0x4c0] sm:$0xff] (%p7919_p7)  ;;  %v3981_v27 = vld [vmem:[%s5763_s24 + $0x4c8] sm:$0xff] (%p7919_p7) }
 0x340   : > { %3962 = vst [vmem:[%s7253_s6 + $0xc78] sm:$0xff] (%p7919_p7), %v3961_v12  ;;  %3964 = vst [vmem:[%s7253_s6 + $0xd80] sm:$0xff] (%p7919_p7), %v3963_v40  ;;  %v3983_v13 = vld [vmem:[%s5763_s24 + $0x4d0] sm:$0xff] (%p7919_p7)  ;;  %v3985_v49 = vld [vmem:[%s5763_s24 + $0x4d8] sm:$0xff] (%p7919_p7) }
 0x341   : > { %3966 = vst [vmem:[%s7253_s6 + $0xd88] sm:$0xff] (%p7919_p7), %v3965_v15  ;;  %3968 = vst [vmem:[%s7253_s6 + $0xd90] sm:$0xff] (%p7919_p7), %v3967_v39  ;;  %v3987_v30 = vld [vmem:[%s5763_s24 + $0x4e0] sm:$0xff] (%p7919_p7)  ;;  %v3989_v48 = vld [vmem:[%s5763_s24 + $0x4e8] sm:$0xff] (%p7919_p7) }
 0x342   : > { %3970 = vst [vmem:[%s7253_s6 + $0xd98] sm:$0xff] (%p7919_p7), %v3969_v3  ;;  %3972 = vst [vmem:[%s7253_s6 + $0xda0] sm:$0xff] (%p7919_p7), %v3971_v57  ;;  %v3991_v16 = vld [vmem:[%s5763_s24 + $0x4f0] sm:$0xff] (%p7919_p7)  ;;  %v3993_v37 = vld [vmem:[%s5763_s24 + $0x4f8] sm:$0xff] (%p7919_p7) }
 0x343   : > { %3974 = vst [vmem:[%s7253_s6 + $0xda8] sm:$0xff] (%p7919_p7), %v3973_v50  ;;  %3976 = vst [vmem:[%s7253_s6 + $0xdb0] sm:$0xff] (%p7919_p7), %v3975_v18  ;;  %v3995_v60 = vld [vmem:[%s5763_s24 + $0x500] sm:$0xff] (%p7919_p7)  ;;  %v3997_v5 = vld [vmem:[%s5763_s24 + $0x508] sm:$0xff] (%p7919_p7) }
 0x344   : > { %3978 = vst [vmem:[%s7253_s6 + $0xdb8] sm:$0xff] (%p7919_p7), %v3977_v45  ;;  %3980 = vst [vmem:[%s7253_s6 + $0xdc0] sm:$0xff] (%p7919_p7), %v3979_v55  ;;  %v3999_v28 = vld [vmem:[%s5763_s24 + $0x510] sm:$0xff] (%p7919_p7)  ;;  %v4001_v21 = vld [vmem:[%s5763_s24 + $0x518] sm:$0xff] (%p7919_p7) }
 0x345   : > { %3982 = vst [vmem:[%s7253_s6 + $0xdc8] sm:$0xff] (%p7919_p7), %v3981_v27  ;;  %3984 = vst [vmem:[%s7253_s6 + $0xdd0] sm:$0xff] (%p7919_p7), %v3983_v13  ;;  %v4003_v42 = vld [vmem:[%s5763_s24 + $0x520] sm:$0xff] (%p7919_p7)  ;;  %v4005_v2 = vld [vmem:[%s5763_s24 + $0x528] sm:$0xff] (%p7919_p7) }
 0x346   : > { %3986 = vst [vmem:[%s7253_s6 + $0xdd8] sm:$0xff] (%p7919_p7), %v3985_v49  ;;  %3988 = vst [vmem:[%s7253_s6 + $0xde0] sm:$0xff] (%p7919_p7), %v3987_v30  ;;  %v4007_v63 = vld [vmem:[%s5763_s24 + $0x530] sm:$0xff] (%p7919_p7)  ;;  %v4009_v25 = vld [vmem:[%s5763_s24 + $0x538] sm:$0xff] (%p7919_p7) }
 0x347   : > { %3990 = vst [vmem:[%s7253_s6 + $0xde8] sm:$0xff] (%p7919_p7), %v3989_v48  ;;  %3992 = vst [vmem:[%s7253_s6 + $0xdf0] sm:$0xff] (%p7919_p7), %v3991_v16 }
 0x348   : > { %3994 = vst [vmem:[%s7253_s6 + $0xdf8] sm:$0xff] (%p7919_p7), %v3993_v37  ;;  %3996 = vst [vmem:[%s7253_s6 + $0xf00] sm:$0xff] (%p7919_p7), %v3995_v60 }
 0x349   : > { %3998 = vst [vmem:[%s7253_s6 + $0xf08] sm:$0xff] (%p7919_p7), %v3997_v5  ;;  %4000 = vst [vmem:[%s7253_s6 + $0xf10] sm:$0xff] (%p7919_p7), %v3999_v28 }
 0x34a   : > { %4002 = vst [vmem:[%s7253_s6 + $0xf18] sm:$0xff] (%p7919_p7), %v4001_v21  ;;  %4004 = vst [vmem:[%s7253_s6 + $0xf20] sm:$0xff] (%p7919_p7), %v4003_v42 }
 0x34b   : > { %4006 = vst [vmem:[%s7253_s6 + $0xf28] sm:$0xff] (%p7919_p7), %v4005_v2  ;;  %4008 = vst [vmem:[%s7253_s6 + $0xf30] sm:$0xff] (%p7919_p7), %v4007_v63 }
 0x34c   : > { %4010 = vst [vmem:[%s7253_s6 + $0xf38] sm:$0xff] (%p7919_p7), %v4009_v25 }
 0x35e   : > { %v3039_v41 = vpop.xlane.xlu0 %3038 }
 0x35f   : > { %3228 = vst.msk [vmem:[%s7194_s14] sm:$0xff] %vm3227_vm1, %v3039_v41  ;;  %v3755_v41 = vld [vmem:[%s5763_s24 + $0x140] sm:$0xff] (%p7919_p7) }
 0x360   : > { %3756 = vst [vmem:[%s7253_s6 + $0x340] sm:$0xff] (%p7919_p7), %v3755_v41  ;;  %v3883_v41 = vld [vmem:[%s5763_s24 + $0x340] sm:$0xff] (%p7919_p7) }
 0x361   : > { %3884 = vst [vmem:[%s7253_s6 + $0x940] sm:$0xff] (%p7919_p7), %v3883_v41  ;;  %v4011_v41 = vld [vmem:[%s5763_s24 + $0x540] sm:$0xff] (%p7919_p7) }
 0x362   : > { %4012 = vst [vmem:[%s7253_s6 + $0xf40] sm:$0xff] (%p7919_p7), %v4011_v41 }
 0x365   : > { %v3448_v62 = vpop.xlane.xlu0 %3447 }
 0x366   : > { %3637 = vst.msk [vmem:[%s7194_s14] sm:$0xff] %vm3636_vm2, %v3448_v62  ;;  %v3757_v62 = vld [vmem:[%s5763_s24 + $0x148] sm:$0xff] (%p7919_p7) }
 0x367   : > { %3758 = vst [vmem:[%s7253_s6 + $0x348] sm:$0xff] (%p7919_p7), %v3757_v62  ;;  %v3885_v62 = vld [vmem:[%s5763_s24 + $0x348] sm:$0xff] (%p7919_p7) }
 0x368   : > { %3886 = vst [vmem:[%s7253_s6 + $0x948] sm:$0xff] (%p7919_p7), %v3885_v62  ;;  %v4013_v62 = vld [vmem:[%s5763_s24 + $0x548] sm:$0xff] (%p7919_p7) }
 0x369   : > { %4014 = vst [vmem:[%s7253_s6 + $0xf48] sm:$0xff] (%p7919_p7), %v4013_v62 }
 0x36b   : > { %v3056_v43 = vpop.xlane.xlu0 %3055 }
 0x36c   : > { %3229 = vst.msk [vmem:[%s7194_s14 + $0x8] sm:$0xff] %vm3227_vm1, %v3056_v43  ;;  %v3759_v43 = vld [vmem:[%s5763_s24 + $0x150] sm:$0xff] (%p7919_p7) }
 0x36d   : > { %v3465_v35 = vpop.xlane.xlu1 %3464  ;;  %3760 = vst [vmem:[%s7253_s6 + $0x350] sm:$0xff] (%p7919_p7), %v3759_v43  ;;  %v3887_v43 = vld [vmem:[%s5763_s24 + $0x350] sm:$0xff] (%p7919_p7) }
 0x36e   : > { %3638 = vst.msk [vmem:[%s7194_s14 + $0x8] sm:$0xff] %vm3636_vm2, %v3465_v35  ;;  %v3761_v35 = vld [vmem:[%s5763_s24 + $0x158] sm:$0xff] (%p7919_p7)  ;;  %3888 = vst [vmem:[%s7253_s6 + $0x950] sm:$0xff] (%p7919_p7), %v3887_v43  ;;  %v4015_v43 = vld [vmem:[%s5763_s24 + $0x550] sm:$0xff] (%p7919_p7) }
 0x36f   : > { %3762 = vst [vmem:[%s7253_s6 + $0x358] sm:$0xff] (%p7919_p7), %v3761_v35  ;;  %v3889_v35 = vld [vmem:[%s5763_s24 + $0x358] sm:$0xff] (%p7919_p7)  ;;  %4016 = vst [vmem:[%s7253_s6 + $0xf50] sm:$0xff] (%p7919_p7), %v4015_v43 }
 0x370   : > { %3890 = vst [vmem:[%s7253_s6 + $0x958] sm:$0xff] (%p7919_p7), %v3889_v35  ;;  %v4017_v35 = vld [vmem:[%s5763_s24 + $0x558] sm:$0xff] (%p7919_p7) }
 0x371   : > { %v3073_v53 = vpop.xlane.xlu1 %3072  ;;  %4018 = vst [vmem:[%s7253_s6 + $0xf58] sm:$0xff] (%p7919_p7), %v4017_v35 }
 0x372   : > { %3230 = vst.msk [vmem:[%s7194_s14 + $0x10] sm:$0xff] %vm3227_vm1, %v3073_v53  ;;  %v3763_v53 = vld [vmem:[%s5763_s24 + $0x160] sm:$0xff] (%p7919_p7) }
 0x373   : > { %3764 = vst [vmem:[%s7253_s6 + $0x360] sm:$0xff] (%p7919_p7), %v3763_v53  ;;  %v3891_v53 = vld [vmem:[%s5763_s24 + $0x360] sm:$0xff] (%p7919_p7) }
 0x374   : > { %3892 = vst [vmem:[%s7253_s6 + $0x960] sm:$0xff] (%p7919_p7), %v3891_v53  ;;  %v4019_v53 = vld [vmem:[%s5763_s24 + $0x560] sm:$0xff] (%p7919_p7) }
 0x375   : > { %4020 = vst [vmem:[%s7253_s6 + $0xf60] sm:$0xff] (%p7919_p7), %v4019_v53 }
 0x377   : > { %v3482_v38 = vpop.xlane.xlu0 %3481  ;;  %v3090_v59 = vpop.xlane.xlu1 %3089 }
 0x378   : > { %3639 = vst.msk [vmem:[%s7194_s14 + $0x10] sm:$0xff] %vm3636_vm2, %v3482_v38  ;;  %v3765_v38 = vld [vmem:[%s5763_s24 + $0x168] sm:$0xff] (%p7919_p7) }
 0x379   : > { %3231 = vst.msk [vmem:[%s7194_s14 + $0x18] sm:$0xff] %vm3227_vm1, %v3090_v59  ;;  %v3767_v59 = vld [vmem:[%s5763_s24 + $0x170] sm:$0xff] (%p7919_p7)  ;;  %3766 = vst [vmem:[%s7253_s6 + $0x368] sm:$0xff] (%p7919_p7), %v3765_v38  ;;  %v3893_v38 = vld [vmem:[%s5763_s24 + $0x368] sm:$0xff] (%p7919_p7) }
 0x37a   : > { %3768 = vst [vmem:[%s7253_s6 + $0x370] sm:$0xff] (%p7919_p7), %v3767_v59  ;;  %v3895_v59 = vld [vmem:[%s5763_s24 + $0x370] sm:$0xff] (%p7919_p7)  ;;  %3894 = vst [vmem:[%s7253_s6 + $0x968] sm:$0xff] (%p7919_p7), %v3893_v38  ;;  %v4021_v38 = vld [vmem:[%s5763_s24 + $0x568] sm:$0xff] (%p7919_p7) }
 0x37b   : > { %3896 = vst [vmem:[%s7253_s6 + $0x970] sm:$0xff] (%p7919_p7), %v3895_v59  ;;  %4022 = vst [vmem:[%s7253_s6 + $0xf68] sm:$0xff] (%p7919_p7), %v4021_v38  ;;  %v4023_v59 = vld [vmem:[%s5763_s24 + $0x570] sm:$0xff] (%p7919_p7) }
 0x37c   : > { %v3107_v29 = vpop.xlane.xlu0 %3106  ;;  %4024 = vst [vmem:[%s7253_s6 + $0xf70] sm:$0xff] (%p7919_p7), %v4023_v59 }
 0x37d   : > { %3232 = vst.msk [vmem:[%s7194_s14 + $0x20] sm:$0xff] %vm3227_vm1, %v3107_v29  ;;  %v3769_v29 = vld [vmem:[%s5763_s24 + $0x178] sm:$0xff] (%p7919_p7) }
 0x37e   : > { %3770 = vst [vmem:[%s7253_s6 + $0x378] sm:$0xff] (%p7919_p7), %v3769_v29  ;;  %v3897_v29 = vld [vmem:[%s5763_s24 + $0x378] sm:$0xff] (%p7919_p7) }
 0x37f   : > { %3898 = vst [vmem:[%s7253_s6 + $0x978] sm:$0xff] (%p7919_p7), %v3897_v29  ;;  %v4025_v29 = vld [vmem:[%s5763_s24 + $0x578] sm:$0xff] (%p7919_p7) }
 0x380   : > { %4026 = vst [vmem:[%s7253_s6 + $0xf78] sm:$0xff] (%p7919_p7), %v4025_v29 }
 0x382   : > { %v3499_v46 = vpop.xlane.xlu1 %3498 }
 0x383   : > { %3640 = vst.msk [vmem:[%s7194_s14 + $0x18] sm:$0xff] %vm3636_vm2, %v3499_v46  ;;  %v3771_v46 = vld [vmem:[%s5763_s24 + $0x180] sm:$0xff] (%p7919_p7) }
 0x384   : > { %3772 = vst [vmem:[%s7253_s6 + $0x480] sm:$0xff] (%p7919_p7), %v3771_v46  ;;  %v3899_v46 = vld [vmem:[%s5763_s24 + $0x380] sm:$0xff] (%p7919_p7) }
 0x385   : > { %v3516_v56 = vpop.xlane.xlu0 %3515  ;;  %3900 = vst [vmem:[%s7253_s6 + $0xa80] sm:$0xff] (%p7919_p7), %v3899_v46  ;;  %v4027_v46 = vld [vmem:[%s5763_s24 + $0x580] sm:$0xff] (%p7919_p7) }
 0x386   : > { %3641 = vst.msk [vmem:[%s7194_s14 + $0x20] sm:$0xff] %vm3636_vm2, %v3516_v56  ;;  %v3773_v56 = vld [vmem:[%s5763_s24 + $0x188] sm:$0xff] (%p7919_p7)  ;;  %4028 = vst [vmem:[%s7253_s6 + $0x1080] sm:$0xff] (%p7919_p7), %v4027_v46 }
 0x387   : > { %3774 = vst [vmem:[%s7253_s6 + $0x488] sm:$0xff] (%p7919_p7), %v3773_v56  ;;  %v3901_v56 = vld [vmem:[%s5763_s24 + $0x388] sm:$0xff] (%p7919_p7) }
 0x388   : > { %v3124_v47 = vpop.xlane.xlu1 %3123  ;;  %3902 = vst [vmem:[%s7253_s6 + $0xa88] sm:$0xff] (%p7919_p7), %v3901_v56  ;;  %v4029_v56 = vld [vmem:[%s5763_s24 + $0x588] sm:$0xff] (%p7919_p7) }
 0x389   : > { %3233 = vst.msk [vmem:[%s7194_s14 + $0x28] sm:$0xff] %vm3227_vm1, %v3124_v47  ;;  %v3775_v47 = vld [vmem:[%s5763_s24 + $0x190] sm:$0xff] (%p7919_p7)  ;;  %4030 = vst [vmem:[%s7253_s6 + $0x1088] sm:$0xff] (%p7919_p7), %v4029_v56 }
 0x38a   : > { %3776 = vst [vmem:[%s7253_s6 + $0x490] sm:$0xff] (%p7919_p7), %v3775_v47  ;;  %v3903_v47 = vld [vmem:[%s5763_s24 + $0x390] sm:$0xff] (%p7919_p7) }
 0x38b   : > { %v3141_v0 = vpop.xlane.xlu0 %3140  ;;  %3904 = vst [vmem:[%s7253_s6 + $0xa90] sm:$0xff] (%p7919_p7), %v3903_v47  ;;  %v4031_v47 = vld [vmem:[%s5763_s24 + $0x590] sm:$0xff] (%p7919_p7) }
 0x38c   : > { %3234 = vst.msk [vmem:[%s7194_s14 + $0x30] sm:$0xff] %vm3227_vm1, %v3141_v0  ;;  %v3777_v0 = vld [vmem:[%s5763_s24 + $0x198] sm:$0xff] (%p7919_p7)  ;;  %4032 = vst [vmem:[%s7253_s6 + $0x1090] sm:$0xff] (%p7919_p7), %v4031_v47 }
 0x38d   : > { %3778 = vst [vmem:[%s7253_s6 + $0x498] sm:$0xff] (%p7919_p7), %v3777_v0  ;;  %v3905_v0 = vld [vmem:[%s5763_s24 + $0x398] sm:$0xff] (%p7919_p7) }
 0x38e   : > { %3906 = vst [vmem:[%s7253_s6 + $0xa98] sm:$0xff] (%p7919_p7), %v3905_v0  ;;  %v4033_v0 = vld [vmem:[%s5763_s24 + $0x598] sm:$0xff] (%p7919_p7) }
 0x38f   : > { %4034 = vst [vmem:[%s7253_s6 + $0x1098] sm:$0xff] (%p7919_p7), %v4033_v0 }
 0x391   : > { %v3533_v52 = vpop.xlane.xlu1 %3532 }
 0x392   : > { %3642 = vst.msk [vmem:[%s7194_s14 + $0x28] sm:$0xff] %vm3636_vm2, %v3533_v52  ;;  %v3779_v52 = vld [vmem:[%s5763_s24 + $0x1a0] sm:$0xff] (%p7919_p7) }
 0x393   : > { %3780 = vst [vmem:[%s7253_s6 + $0x4a0] sm:$0xff] (%p7919_p7), %v3779_v52  ;;  %v3907_v52 = vld [vmem:[%s5763_s24 + $0x3a0] sm:$0xff] (%p7919_p7) }
 0x394   : > { %3908 = vst [vmem:[%s7253_s6 + $0xaa0] sm:$0xff] (%p7919_p7), %v3907_v52  ;;  %v4035_v52 = vld [vmem:[%s5763_s24 + $0x5a0] sm:$0xff] (%p7919_p7) }
 0x395   : > { %v3550_v8 = vpop.xlane.xlu0 %3549  ;;  %4036 = vst [vmem:[%s7253_s6 + $0x10a0] sm:$0xff] (%p7919_p7), %v4035_v52 }
 0x396   : > { %3643 = vst.msk [vmem:[%s7194_s14 + $0x30] sm:$0xff] %vm3636_vm2, %v3550_v8  ;;  %v3781_v8 = vld [vmem:[%s5763_s24 + $0x1a8] sm:$0xff] (%p7919_p7) }
 0x397   : > { %v3158_v23 = vpop.xlane.xlu1 %3157  ;;  %3782 = vst [vmem:[%s7253_s6 + $0x4a8] sm:$0xff] (%p7919_p7), %v3781_v8  ;;  %v3909_v8 = vld [vmem:[%s5763_s24 + $0x3a8] sm:$0xff] (%p7919_p7) }
 0x398   : > { %3235 = vst.msk [vmem:[%s7194_s14 + $0x38] sm:$0xff] %vm3227_vm1, %v3158_v23  ;;  %v3783_v23 = vld [vmem:[%s5763_s24 + $0x1b0] sm:$0xff] (%p7919_p7)  ;;  %3910 = vst [vmem:[%s7253_s6 + $0xaa8] sm:$0xff] (%p7919_p7), %v3909_v8  ;;  %v4037_v8 = vld [vmem:[%s5763_s24 + $0x5a8] sm:$0xff] (%p7919_p7) }
 0x399   : > { %v3175_v26 = vpop.xlane.xlu0 %3174  ;;  %3784 = vst [vmem:[%s7253_s6 + $0x4b0] sm:$0xff] (%p7919_p7), %v3783_v23  ;;  %v3911_v23 = vld [vmem:[%s5763_s24 + $0x3b0] sm:$0xff] (%p7919_p7)  ;;  %4038 = vst [vmem:[%s7253_s6 + $0x10a8] sm:$0xff] (%p7919_p7), %v4037_v8 }
 0x39a   : > { %3236 = vst.msk [vmem:[%s7194_s14 + $0x40] sm:$0xff] %vm3227_vm1, %v3175_v26  ;;  %v3785_v26 = vld [vmem:[%s5763_s24 + $0x1b8] sm:$0xff] (%p7919_p7)  ;;  %3912 = vst [vmem:[%s7253_s6 + $0xab0] sm:$0xff] (%p7919_p7), %v3911_v23  ;;  %v4039_v23 = vld [vmem:[%s5763_s24 + $0x5b0] sm:$0xff] (%p7919_p7) }
 0x39b   : > { %3786 = vst [vmem:[%s7253_s6 + $0x4b8] sm:$0xff] (%p7919_p7), %v3785_v26  ;;  %v3913_v26 = vld [vmem:[%s5763_s24 + $0x3b8] sm:$0xff] (%p7919_p7)  ;;  %4040 = vst [vmem:[%s7253_s6 + $0x10b0] sm:$0xff] (%p7919_p7), %v4039_v23 }
 0x39c   : > { %3914 = vst [vmem:[%s7253_s6 + $0xab8] sm:$0xff] (%p7919_p7), %v3913_v26  ;;  %v4041_v26 = vld [vmem:[%s5763_s24 + $0x5b8] sm:$0xff] (%p7919_p7) }
 0x39d   : > { %v3567_v6 = vpop.xlane.xlu1 %3566  ;;  %4042 = vst [vmem:[%s7253_s6 + $0x10b8] sm:$0xff] (%p7919_p7), %v4041_v26 }
 0x39e   : > { %3644 = vst.msk [vmem:[%s7194_s14 + $0x38] sm:$0xff] %vm3636_vm2, %v3567_v6  ;;  %v3787_v6 = vld [vmem:[%s5763_s24 + $0x1c0] sm:$0xff] (%p7919_p7) }
 0x39f   : > { %v3584_v36 = vpop.xlane.xlu0 %3583  ;;  %3788 = vst [vmem:[%s7253_s6 + $0x4c0] sm:$0xff] (%p7919_p7), %v3787_v6  ;;  %v3915_v6 = vld [vmem:[%s5763_s24 + $0x3c0] sm:$0xff] (%p7919_p7) }
 0x3a0   : > { %3645 = vst.msk [vmem:[%s7194_s14 + $0x40] sm:$0xff] %vm3636_vm2, %v3584_v36  ;;  %v3789_v36 = vld [vmem:[%s5763_s24 + $0x1c8] sm:$0xff] (%p7919_p7)  ;;  %3916 = vst [vmem:[%s7253_s6 + $0xac0] sm:$0xff] (%p7919_p7), %v3915_v6  ;;  %v4043_v6 = vld [vmem:[%s5763_s24 + $0x5c0] sm:$0xff] (%p7919_p7) }
 0x3a1   : > { %v3192_v10 = vpop.xlane.xlu1 %3191  ;;  %3790 = vst [vmem:[%s7253_s6 + $0x4c8] sm:$0xff] (%p7919_p7), %v3789_v36  ;;  %v3917_v36 = vld [vmem:[%s5763_s24 + $0x3c8] sm:$0xff] (%p7919_p7)  ;;  %4044 = vst [vmem:[%s7253_s6 + $0x10c0] sm:$0xff] (%p7919_p7), %v4043_v6 }
 0x3a2   : > { %3237 = vst.msk [vmem:[%s7194_s14 + $0x48] sm:$0xff] %vm3227_vm1, %v3192_v10  ;;  %v3791_v10 = vld [vmem:[%s5763_s24 + $0x1d0] sm:$0xff] (%p7919_p7)  ;;  %3918 = vst [vmem:[%s7253_s6 + $0xac8] sm:$0xff] (%p7919_p7), %v3917_v36  ;;  %v4045_v36 = vld [vmem:[%s5763_s24 + $0x5c8] sm:$0xff] (%p7919_p7) }
 0x3a3   : > { %v3209_v24 = vpop.xlane.xlu0 %3208  ;;  %3792 = vst [vmem:[%s7253_s6 + $0x4d0] sm:$0xff] (%p7919_p7), %v3791_v10  ;;  %v3919_v10 = vld [vmem:[%s5763_s24 + $0x3d0] sm:$0xff] (%p7919_p7)  ;;  %4046 = vst [vmem:[%s7253_s6 + $0x10c8] sm:$0xff] (%p7919_p7), %v4045_v36 }
 0x3a4   : > { %3238 = vst.msk [vmem:[%s7194_s14 + $0x50] sm:$0xff] %vm3227_vm1, %v3209_v24  ;;  %v3793_v24 = vld [vmem:[%s5763_s24 + $0x1d8] sm:$0xff] (%p7919_p7)  ;;  %3920 = vst [vmem:[%s7253_s6 + $0xad0] sm:$0xff] (%p7919_p7), %v3919_v10  ;;  %v4047_v10 = vld [vmem:[%s5763_s24 + $0x5d0] sm:$0xff] (%p7919_p7) }
 0x3a5   : > { %v3601_v34 = vpop.xlane.xlu1 %3600  ;;  %3794 = vst [vmem:[%s7253_s6 + $0x4d8] sm:$0xff] (%p7919_p7), %v3793_v24  ;;  %v3921_v24 = vld [vmem:[%s5763_s24 + $0x3d8] sm:$0xff] (%p7919_p7)  ;;  %4048 = vst [vmem:[%s7253_s6 + $0x10d0] sm:$0xff] (%p7919_p7), %v4047_v10 }
 0x3a6   : > { %3646 = vst.msk [vmem:[%s7194_s14 + $0x48] sm:$0xff] %vm3636_vm2, %v3601_v34  ;;  %v3795_v34 = vld [vmem:[%s5763_s24 + $0x1e0] sm:$0xff] (%p7919_p7)  ;;  %3922 = vst [vmem:[%s7253_s6 + $0xad8] sm:$0xff] (%p7919_p7), %v3921_v24  ;;  %v4049_v24 = vld [vmem:[%s5763_s24 + $0x5d8] sm:$0xff] (%p7919_p7) }
 0x3a7   : > { %v3618_v7 = vpop.xlane.xlu0 %3617  ;;  %3796 = vst [vmem:[%s7253_s6 + $0x4e0] sm:$0xff] (%p7919_p7), %v3795_v34  ;;  %v3923_v34 = vld [vmem:[%s5763_s24 + $0x3e0] sm:$0xff] (%p7919_p7)  ;;  %4050 = vst [vmem:[%s7253_s6 + $0x10d8] sm:$0xff] (%p7919_p7), %v4049_v24 }
 0x3a8   : > { %3647 = vst.msk [vmem:[%s7194_s14 + $0x50] sm:$0xff] %vm3636_vm2, %v3618_v7  ;;  %3659 = sbr.rel (!%p7919_p7) target bundleno = 946 (0x3b2), region = 63  ;;  %v3797_v7 = vld [vmem:[%s5763_s24 + $0x1e8] sm:$0xff] (%p7919_p7)  ;;  %3924 = vst [vmem:[%s7253_s6 + $0xae0] sm:$0xff] (%p7919_p7), %v3923_v34  ;;  %v4051_v34 = vld [vmem:[%s5763_s24 + $0x5e0] sm:$0xff] (%p7919_p7) }
 0x3a9   : > { %v3226_v17 = vpop.xlane.xlu1 %3225  ;;  %3798 = vst [vmem:[%s7253_s6 + $0x4e8] sm:$0xff] (%p7919_p7), %v3797_v7  ;;  %v3925_v7 = vld [vmem:[%s5763_s24 + $0x3e8] sm:$0xff] (%p7919_p7)  ;;  %4052 = vst [vmem:[%s7253_s6 + $0x10e0] sm:$0xff] (%p7919_p7), %v4051_v34 }
 0x3aa   : > { %3239 = vst.msk [vmem:[%s7194_s14 + $0x58] sm:$0xff] %vm3227_vm1, %v3226_v17  ;;  %v3799_v17 = vld [vmem:[%s5763_s24 + $0x1f0] sm:$0xff] (%p7919_p7)  ;;  %3926 = vst [vmem:[%s7253_s6 + $0xae8] sm:$0xff] (%p7919_p7), %v3925_v7  ;;  %v4053_v7 = vld [vmem:[%s5763_s24 + $0x5e8] sm:$0xff] (%p7919_p7) }
 0x3ab   : > { %3800 = vst [vmem:[%s7253_s6 + $0x4f0] sm:$0xff] (%p7919_p7), %v3799_v17  ;;  %v3927_v17 = vld [vmem:[%s5763_s24 + $0x3f0] sm:$0xff] (%p7919_p7)  ;;  %4054 = vst [vmem:[%s7253_s6 + $0x10e8] sm:$0xff] (%p7919_p7), %v4053_v7 }
 0x3ac   : > { %3928 = vst [vmem:[%s7253_s6 + $0xaf0] sm:$0xff] (%p7919_p7), %v3927_v17  ;;  %v4055_v17 = vld [vmem:[%s5763_s24 + $0x5f0] sm:$0xff] (%p7919_p7) }
 0x3ad   : > { %v3635_v19 = vpop.xlane.xlu1 %3634  ;;  %4056 = vst [vmem:[%s7253_s6 + $0x10f0] sm:$0xff] (%p7919_p7), %v4055_v17 }
 0x3ae   : > { %3648 = vst.msk [vmem:[%s7194_s14 + $0x58] sm:$0xff] %vm3636_vm2, %v3635_v19  ;;  %v3801_v19 = vld [vmem:[%s5763_s24 + $0x1f8] sm:$0xff] (%p7919_p7) }
 0x3af   : > { %3802 = vst [vmem:[%s7253_s6 + $0x4f8] sm:$0xff] %v3801_v19  ;;  %v3929_v19 = vld [vmem:[%s5763_s24 + $0x3f8] sm:$0xff] }
 0x3b0   : > { %3930 = vst [vmem:[%s7253_s6 + $0xaf8] sm:$0xff] %v3929_v19  ;;  %v4057_v19 = vld [vmem:[%s5763_s24 + $0x5f8] sm:$0xff] }
 0x3b1   : > { %4058 = vst [vmem:[%s7253_s6 + $0x10f8] sm:$0xff] %v4057_v19 }
 0x3b2 PF: > { %p7920_p8 = scmp.ne.s32.totalorder %s7685_s26, 0 }
 0x3b3   : > { %s4359_s7 = sshll.u32 (%p7920_p8), %s4706_s19, 3  ;;  %v4116_v1 = vld [vmem:[%s7194_s14] sm:$0xff] (%p7920_p8)  ;;  %v4118_v4 = vld [vmem:[%s7194_s14 + $0x8] sm:$0xff] (%p7920_p8)  ;;  %v4120_v9 = vld [vmem:[%s7194_s14 + $0x10] sm:$0xff] (%p7920_p8) }
 0x3b4   : > { %4064 = sbr.rel (!%p7920_p8) target bundleno = 955 (0x3bb), region = 86  ;;  %s4066_s12 = scalar_lea.vmem (%p7920_p8), %s7671_s4, %s4359_s7  ;;  %v4122_v54 = vld [vmem:[%s7194_s14 + $0x18] sm:$0xff] (%p7920_p8)  ;;  %v4124_v20 = vld [vmem:[%s7194_s14 + $0x20] sm:$0xff] (%p7920_p8)  ;;  %v4126_v22 = vld [vmem:[%s7194_s14 + $0x28] sm:$0xff] (%p7920_p8) }
 0x3b5   : > { %4117 = vst [vmem:[%s4066_s12] sm:$0xff] (%p7920_p8), %v4116_v1  ;;  %4119 = vst [vmem:[%s4066_s12 + $0x18] sm:$0xff] (%p7920_p8), %v4118_v4  ;;  %v4128_v33 = vld [vmem:[%s7194_s14 + $0x30] sm:$0xff] (%p7920_p8)  ;;  %v4130_v61 = vld [vmem:[%s7194_s14 + $0x38] sm:$0xff] (%p7920_p8) }
 0x3b6   : > { %4121 = vst [vmem:[%s4066_s12 + $0x30] sm:$0xff] (%p7920_p8), %v4120_v9  ;;  %4123 = vst [vmem:[%s4066_s12 + $0x48] sm:$0xff] (%p7920_p8), %v4122_v54  ;;  %v4132_v51 = vld [vmem:[%s7194_s14 + $0x40] sm:$0xff] (%p7920_p8)  ;;  %v4134_v32 = vld [vmem:[%s7194_s14 + $0x48] sm:$0xff] (%p7920_p8) }
 0x3b7   : > { %4125 = vst [vmem:[%s4066_s12 + $0x60] sm:$0xff] (%p7920_p8), %v4124_v20  ;;  %4127 = vst [vmem:[%s4066_s12 + $0x78] sm:$0xff] (%p7920_p8), %v4126_v22  ;;  %v4136_v31 = vld [vmem:[%s7194_s14 + $0x50] sm:$0xff] (%p7920_p8) }
 0x3b8   : > { %4129 = vst [vmem:[%s4066_s12 + $0x90] sm:$0xff] (%p7920_p8), %v4128_v33  ;;  %4131 = vst [vmem:[%s4066_s12 + $0xa8] sm:$0xff] (%p7920_p8), %v4130_v61  ;;  %v4138_v44 = vld [vmem:[%s7194_s14 + $0x58] sm:$0xff] (%p7920_p8) }
 0x3b9   : > { %4133 = vst [vmem:[%s4066_s12 + $0xc0] sm:$0xff] (%p7920_p8), %v4132_v51  ;;  %4135 = vst [vmem:[%s4066_s12 + $0xd8] sm:$0xff] (%p7920_p8), %v4134_v32 }
 0x3ba   : > { %4137 = vst [vmem:[%s4066_s12 + $0xf0] sm:$0xff] (%p7920_p8), %v4136_v31  ;;  %4139 = vst [vmem:[%s4066_s12 + $0x108] sm:$0xff] (%p7920_p8), %v4138_v44 }
 0x3bb PF: > { %p15_p2 = scmp.ge.s32.totalorder %s4709_s20, 5   ;;  %s7921_s15 = smov %s4650_s16 }
 0x3bc   : > { %s7922_s16 = smov %s4654_s17  ;;  %s7923_s17 = smov %s4719_s23 }
 0x3bd   : > { %s7924_s18 = smov %s4709_s20  ;;  %17 = sbr.rel (!%p15_p2) target bundleno = 3 (0x3), region = 176 }
 0x3c4   :  { %4162 = vsyncpa [#allocation4], 1 }
 0x3c5   :  { %4164 = vsyncpa [#allocation4 + $0x1], 1 }

</bundles_post_ra>
